<compile_context>
chip_gen: v6e
topology: v6e:2x2x1
jax: 0.10.0
libtpu: 0.0.40
codegen_flags: <defaults>
</compile_context>

<pallas_src>
import functools

import jax
import jax.numpy as jnp
from jax.experimental import pallas as pl
from jax.experimental.pallas import tpu as pltpu

BN_EPS = 1e-5
LRELU_SLOPE = 0.01                      # PyTorch LeakyReLU default
UNITS = [64, 64, 64, 128, 1024, 512, 256, 64]
IN_PAD = 128                            # lane-dense padding of input features
OUT_PAD = 128                           # lane-dense padding of output channels


def _round_up(v, m):
    return ((v + m - 1) // m) * m


# Packed per-channel parameter slab layout (one [2, PCP_COLS] f32 array):
#   row 0 = gamma per BN layer  (+ final linear bias in the last segment)
#   row 1 = beta  per BN layer
# Each layer's segment starts at a 128-lane-aligned column offset.
PCP_OFFS = []
_c = 0
for _u in UNITS:
    PCP_OFFS.append(_c)
    _c += _round_up(_u, 128)
PCP_FINAL_OFF = _c
PCP_COLS = _c + OUT_PAD


# -----------------------------------------------------------------------------
# Fused kernel: whole forward pass.  13 inputs, 1 output, 3 scratch refs.
# -----------------------------------------------------------------------------
def pointnet_seg_kernel(x_ref, mask_ref,
                        w0_ref, w1_ref, w2_ref, w3_ref,
                        w4_hbm_ref, w5a_hbm_ref,
                        w5b_ref, w6_ref, w7_ref, w8_ref,
                        pcp_ref, o_ref,
                        w4_buf, w5a_buf, dma_sem,
                        *, B, N_pad, inv_cnt):
    # Kick off the two big late-layer weight DMAs (HBM -> VMEM scratch) so they
    # overlap with the layer-0..3 compute instead of serializing ahead of it.
    cp4 = pltpu.make_async_copy(w4_hbm_ref, w4_buf, dma_sem.at[0])
    cp5 = pltpu.make_async_copy(w5a_hbm_ref, w5a_buf, dma_sem.at[1])
    cp4.start()
    cp5.start()

    mask = mask_ref[...]                    # [rows, 1] f32, 1.0 = real row
    rows = B * N_pad

    def mm(h, w):
        # bf16 MXU operands, f32 accumulation.
        return jnp.dot(h.astype(jnp.bfloat16), w,
                       preferred_element_type=jnp.float32)

    def bn_act(y, i):
        # Training-mode BatchNorm1d over the real (non-padded) rows, folded
        # with LeakyReLU(0.01).  Centered variance: sum((y-mean) * (y*mask))
        # equals the sum over real rows of (y - mean)^2.  The preceding Linear
        # bias is omitted (cancels exactly under batch-stat normalization).
        gamma = pcp_ref[0:1, PCP_OFFS[i]:PCP_OFFS[i] + UNITS[i]]
        beta = pcp_ref[1:2, PCP_OFFS[i]:PCP_OFFS[i] + UNITS[i]]
        ym = y * mask
        mean = jnp.sum(ym, axis=0, keepdims=True) * inv_cnt
        d = y - mean
        var = jnp.maximum(jnp.sum(d * ym, axis=0, keepdims=True) * inv_cnt, 0.0)
        scale = gamma * jax.lax.rsqrt(var + BN_EPS)
        z = d * scale + beta
        return jnp.maximum(z, LRELU_SLOPE * z)        # LeakyReLU(0.01)

    h = x_ref[...]                                    # [rows, IN_PAD] f32
    h = bn_act(mm(h, w0_ref[...]), 0)                 # L0: F -> 64
    h = bn_act(mm(h, w1_ref[...]), 1)                 # L1: 64 -> 64
    pointfeat = h                                     # saved per-point feature
    h = bn_act(mm(h, w2_ref[...]), 2)                 # L2: 64 -> 64
    h = bn_act(mm(h, w3_ref[...]), 3)                 # L3: 64 -> 128

    cp4.wait()                                        # w4 needed now
    h = bn_act(mm(h, w4_buf[...]), 4)                 # L4: 128 -> 1024

    # L5: MaxPool1d over the object axis -> per-scene global feature (B rows),
    # matmul'd against the global half of W5 BEFORE replication; the concat
    # with pointfeat is folded into a split matmul.
    hm = jnp.where(mask > 0.0, h, -jnp.inf)           # exclude padded objects
    g = jnp.max(hm.reshape(B, N_pad, UNITS[4]), axis=1)        # [B, 1024]
    cp5.wait()                                        # W5a needed now
    gw = jnp.dot(g.astype(jnp.bfloat16), w5a_buf[...],
                 preferred_element_type=jnp.float32)            # [B, 512]
    rep = jnp.broadcast_to(gw[:, None, :], (B, N_pad, UNITS[5]))
    rep = rep.reshape(rows, UNITS[5])                           # [rows, 512]
    h = bn_act(rep + mm(pointfeat, w5b_ref[...]), 5)  # L5: 1088 -> 512

    h = bn_act(mm(h, w6_ref[...]), 6)                 # L6: 512 -> 256
    h = bn_act(mm(h, w7_ref[...]), 7)                 # L7: 256 -> 64

    # TODO(synk): Dropout(0.3) (PyTorch train-mode RNG) applied as identity.
    out = mm(h, w8_ref[...]) + pcp_ref[0:1, PCP_FINAL_OFF:PCP_FINAL_OFF + OUT_PAD]
    o_ref[...] = out                                  # [rows, OUT_PAD], lane-dense


# -----------------------------------------------------------------------------
# Wrapper: one gridless pallas_call for the whole network.
# -----------------------------------------------------------------------------
def pointnet_seg_forward(x, params):
    B, N, F = x.shape
    out_dim = params["out_dim"]
    pool_k = params["pool_k"]
    # MaxPool1d(kernel=stride=num_obj) followed by reshape(numscene, feat) in
    # the reference only works when num_obj == numobj.
    assert pool_k == N, (pool_k, N)
    assert F <= IN_PAD

    # Per-scene pad the object axis to a multiple of 8 so every row tile is a
    # full sublane vreg; padded rows are masked out of BN stats / max-pool and
    # sliced off again below.
    N_pad = _round_up(N, 8)
    rows = B * N_pad

    x_p = jnp.zeros((B, N_pad, IN_PAD), jnp.float32)
    x_p = x_p.at[:, :N, :F].set(x.astype(jnp.float32))
    obj_mask = (jnp.arange(N_pad) < N).astype(jnp.float32)
    row_mask = jnp.tile(obj_mask, (B,)).reshape(rows, 1)

    flat_inputs = ([x_p.reshape(rows, IN_PAD), row_mask]
                   + params["weights"] + [params["pcp_slab"]])
    W4_IDX, W5A_IDX = 6, 7          # async-DMA'd late-layer weights
    in_specs = [
        pl.BlockSpec(memory_space=pl.ANY) if i in (W4_IDX, W5A_IDX)
        else pl.BlockSpec(memory_space=pltpu.MemorySpace.VMEM)
        for i in range(len(flat_inputs))
    ]

    out = pl.pallas_call(
        functools.partial(pointnet_seg_kernel, B=B, N_pad=N_pad,
                          inv_cnt=1.0 / float(B * N)),
        out_shape=jax.ShapeDtypeStruct((rows, OUT_PAD), jnp.float32),
        in_specs=in_specs,
        out_specs=pl.BlockSpec(memory_space=pltpu.MemorySpace.VMEM),
        scratch_shapes=[
            pltpu.VMEM((UNITS[3], UNITS[4]), jnp.bfloat16),   # w4 landing buf
            pltpu.VMEM((UNITS[4], UNITS[5]), jnp.bfloat16),   # W5a landing buf
            pltpu.SemaphoreType.DMA((2,)),
        ],
        compiler_params=pltpu.CompilerParams(vmem_limit_bytes=32 << 20),
    )(*flat_inputs)

    return out.reshape(B, N_pad, OUT_PAD)[:, :N, :out_dim]


# -----------------------------------------------------------------------------
# Deterministic parameter initialization (PyTorch-like Linear init; BN gamma=1,
# beta=0).  Weights are stored bf16 for the MXU; per-channel params stay f32.
# -----------------------------------------------------------------------------
class KeyGen:
    def __init__(self, key):
        self.key = key

    def __call__(self):
        self.key, sub = jax.random.split(self.key)
        return sub


def init_linear(kg, fan_in, fan_out):
    bound = 1.0 / (fan_in ** 0.5)
    W = jax.random.uniform(kg(), (fan_in, fan_out), jnp.float32, -bound, bound)
    b = jax.random.uniform(kg(), (1, fan_out), jnp.float32, -bound, bound)
    return W, b


def init_params(key, input_dim=7, out_dim=2, num_obj=7):
    # point_and_gloabl_feat=True path (the module default).
    kg = KeyGen(key)
    weights = []
    slab = jnp.zeros((2, PCP_COLS), jnp.float32)
    for i, u in enumerate(UNITS):
        if i == 0:
            cin = input_dim
        elif i == 5:
            cin = UNITS[4] + UNITS[1]          # 1024 + 64 = 1088
        else:
            cin = UNITS[i - 1]
        W, _b = init_linear(kg, cin, u)        # bias drawn (PyTorch-like init)
        # but never fed to the kernel: constant shift cancels under train BN.
        if i == 0:
            Wp = jnp.zeros((IN_PAD, u), jnp.float32).at[:cin, :].set(W)
            weights.append(Wp.astype(jnp.bfloat16))
        elif i == 5:
            # Pre-split so the kernel never materializes the 1088-wide concat.
            weights.append(W[:UNITS[4], :].astype(jnp.bfloat16))   # global half
            weights.append(W[UNITS[4]:, :].astype(jnp.bfloat16))   # pointfeat half
        else:
            weights.append(W.astype(jnp.bfloat16))
        # BN affine params (gamma=1, beta=0 at init); beta row already zero.
        slab = slab.at[0, PCP_OFFS[i]:PCP_OFFS[i] + u].set(
            jnp.ones((u,), jnp.float32))

    W_fin, b_fin = init_linear(kg, UNITS[-1], out_dim)
    w_fin = jnp.zeros((UNITS[-1], OUT_PAD), jnp.float32).at[:, :out_dim].set(W_fin)
    weights.append(w_fin.astype(jnp.bfloat16))
    slab = slab.at[0, PCP_FINAL_OFF:PCP_FINAL_OFF + out_dim].set(b_fin[0])

    return {"weights": weights, "pcp_slab": slab,
            "out_dim": out_dim, "pool_k": num_obj}


# -----------------------------------------------------------------------------
if __name__ == "__main__":
    NUMSCENE, NUMOBJ, FEAT, OUT_DIM = 2, 7, 7, 2
    key = jax.random.PRNGKey(0)
    pkey, xkey = jax.random.split(key)

    params = init_params(pkey, input_dim=FEAT, out_dim=OUT_DIM, num_obj=NUMOBJ)

    # Input: [numscene=2, numobj=7, featperobj=7]
    x = jax.random.normal(xkey, (NUMSCENE, NUMOBJ, FEAT), dtype=jnp.float32)

    out = pointnet_seg_forward(x, params)
    out = jax.block_until_ready(out)
    assert out.shape == (NUMSCENE, NUMOBJ, OUT_DIM), out.shape
    print("KERNEL_OK")
</pallas_src>

<mosaic_0001>
module attributes {stable_mosaic.version = 11 : i64} {
  func.func @pointnet_seg_kernel(%arg0: memref<16x128xf32, #tpu.memory_space<vmem>>, %arg1: memref<16x1xf32, #tpu.memory_space<vmem>>, %arg2: memref<128x64xbf16, #tpu.memory_space<vmem>>, %arg3: memref<64x64xbf16, #tpu.memory_space<vmem>>, %arg4: memref<64x64xbf16, #tpu.memory_space<vmem>>, %arg5: memref<64x128xbf16, #tpu.memory_space<vmem>>, %arg6: memref<128x1024xbf16, #tpu.memory_space<any>>, %arg7: memref<1024x512xbf16, #tpu.memory_space<any>>, %arg8: memref<64x512xbf16, #tpu.memory_space<vmem>>, %arg9: memref<512x256xbf16, #tpu.memory_space<vmem>>, %arg10: memref<256x64xbf16, #tpu.memory_space<vmem>>, %arg11: memref<64x128xbf16, #tpu.memory_space<vmem>>, %arg12: memref<2x2560xf32, #tpu.memory_space<vmem>>, %arg13: memref<16x128xf32, #tpu.memory_space<vmem>>, %arg14: memref<128x1024xbf16, #tpu.memory_space<vmem>>, %arg15: memref<1024x512xbf16, #tpu.memory_space<vmem>>, %arg16: memref<2x!tpu.dma_semaphore, #tpu.memory_space<semaphore_mem>>) attributes {dimension_semantics = [], scalar_prefetch = 0 : i64, scratch_operands = 3 : i64, tpu.core_type = #tpu.core_type<tc>} {
    %c0_i32 = arith.constant 0 : i32
    %0 = tpu.memref_slice %arg16[%c0_i32] : memref<2x!tpu.dma_semaphore, #tpu.memory_space<semaphore_mem>> -> memref<1x!tpu.dma_semaphore, #tpu.memory_space<semaphore_mem>>
    %1 = tpu.memref_squeeze %0 : memref<1x!tpu.dma_semaphore, #tpu.memory_space<semaphore_mem>> -> memref<!tpu.dma_semaphore, #tpu.memory_space<semaphore_mem>>
    tpu.enqueue_dma source(%arg6 : memref<128x1024xbf16, #tpu.memory_space<any>>) target(%arg14 : memref<128x1024xbf16, #tpu.memory_space<vmem>>) target_semaphore(%1 : memref<!tpu.dma_semaphore, #tpu.memory_space<semaphore_mem>>)
    %c1_i32 = arith.constant 1 : i32
    %2 = tpu.memref_slice %arg16[%c1_i32] : memref<2x!tpu.dma_semaphore, #tpu.memory_space<semaphore_mem>> -> memref<1x!tpu.dma_semaphore, #tpu.memory_space<semaphore_mem>>
    %3 = tpu.memref_squeeze %2 : memref<1x!tpu.dma_semaphore, #tpu.memory_space<semaphore_mem>> -> memref<!tpu.dma_semaphore, #tpu.memory_space<semaphore_mem>>
    tpu.enqueue_dma source(%arg7 : memref<1024x512xbf16, #tpu.memory_space<any>>) target(%arg15 : memref<1024x512xbf16, #tpu.memory_space<vmem>>) target_semaphore(%3 : memref<!tpu.dma_semaphore, #tpu.memory_space<semaphore_mem>>)
    %c0 = arith.constant 0 : index
    %c0_0 = arith.constant 0 : index
    %4 = vector.load %arg1[%c0, %c0_0] : memref<16x1xf32, #tpu.memory_space<vmem>>, vector<16x1xf32>
    %c0_1 = arith.constant 0 : index
    %c0_2 = arith.constant 0 : index
    %5 = vector.load %arg0[%c0_1, %c0_2] : memref<16x128xf32, #tpu.memory_space<vmem>>, vector<16x128xf32>
    %c0_3 = arith.constant 0 : index
    %c0_4 = arith.constant 0 : index
    %6 = vector.load %arg2[%c0_3, %c0_4] : memref<128x64xbf16, #tpu.memory_space<vmem>>, vector<128x64xbf16>
    %7 = arith.truncf %5 : vector<16x128xf32> to vector<16x128xbf16>
    %cst = arith.constant dense<0.000000e+00> : vector<16x64xf32>
    %8 = tpu.matmul %7, %6, %cst {dimension_numbers = #tpu.dot_dimension_numbers<[1], [0], [0], [1], [0, 0, 1, 1], [], []>} : vector<16x128xbf16>, vector<128x64xbf16>, vector<16x64xf32> -> vector<16x64xf32>
    %c0_5 = arith.constant 0 : index
    %c0_6 = arith.constant 0 : index
    %9 = vector.load %arg12[%c0_5, %c0_6] : memref<2x2560xf32, #tpu.memory_space<vmem>>, vector<1x64xf32>
    %c1 = arith.constant 1 : index
    %c0_7 = arith.constant 0 : index
    %10 = vector.load %arg12[%c1, %c0_7] : memref<2x2560xf32, #tpu.memory_space<vmem>>, vector<1x64xf32>
    %11 = vector.broadcast %4 : vector<16x1xf32> to vector<16x64xf32>
    %12 = arith.mulf %8, %11 : vector<16x64xf32>
    %cst_8 = arith.constant dense<0.000000e+00> : vector<64xf32>
    %13 = vector.multi_reduction <add>, %12, %cst_8 [0] : vector<16x64xf32> to vector<64xf32>
    %14 = vector.shape_cast %13 : vector<64xf32> to vector<1x64xf32>
    %cst_9 = arith.constant 0.0714285746 : f32
    %15 = vector.broadcast %cst_9 : f32 to vector<1x64xf32>
    %16 = arith.mulf %14, %15 : vector<1x64xf32>
    %17 = vector.broadcast %16 : vector<1x64xf32> to vector<16x64xf32>
    %18 = arith.subf %8, %17 : vector<16x64xf32>
    %19 = arith.mulf %18, %12 : vector<16x64xf32>
    %cst_10 = arith.constant dense<0.000000e+00> : vector<64xf32>
    %20 = vector.multi_reduction <add>, %19, %cst_10 [0] : vector<16x64xf32> to vector<64xf32>
    %21 = vector.shape_cast %20 : vector<64xf32> to vector<1x64xf32>
    %cst_11 = arith.constant 0.0714285746 : f32
    %22 = vector.broadcast %cst_11 : f32 to vector<1x64xf32>
    %23 = arith.mulf %21, %22 : vector<1x64xf32>
    %cst_12 = arith.constant 0.000000e+00 : f32
    %24 = vector.broadcast %cst_12 : f32 to vector<1x64xf32>
    %25 = arith.maximumf %23, %24 : vector<1x64xf32>
    %cst_13 = arith.constant 9.99999974E-6 : f32
    %26 = vector.broadcast %cst_13 : f32 to vector<1x64xf32>
    %27 = arith.addf %25, %26 : vector<1x64xf32>
    %28 = math.rsqrt %27 : vector<1x64xf32>
    %29 = arith.mulf %9, %28 : vector<1x64xf32>
    %30 = vector.broadcast %29 : vector<1x64xf32> to vector<16x64xf32>
    %31 = arith.mulf %18, %30 : vector<16x64xf32>
    %32 = vector.broadcast %10 : vector<1x64xf32> to vector<16x64xf32>
    %33 = arith.addf %31, %32 : vector<16x64xf32>
    %cst_14 = arith.constant 0.00999999977 : f32
    %34 = vector.broadcast %cst_14 : f32 to vector<16x64xf32>
    %35 = arith.mulf %34, %33 : vector<16x64xf32>
    %36 = arith.maximumf %33, %35 : vector<16x64xf32>
    %c0_15 = arith.constant 0 : index
    %c0_16 = arith.constant 0 : index
    %37 = vector.load %arg3[%c0_15, %c0_16] : memref<64x64xbf16, #tpu.memory_space<vmem>>, vector<64x64xbf16>
    %38 = arith.truncf %36 : vector<16x64xf32> to vector<16x64xbf16>
    %cst_17 = arith.constant dense<0.000000e+00> : vector<16x64xf32>
    %39 = tpu.matmul %38, %37, %cst_17 {dimension_numbers = #tpu.dot_dimension_numbers<[1], [0], [0], [1], [0, 0, 1, 1], [], []>} : vector<16x64xbf16>, vector<64x64xbf16>, vector<16x64xf32> -> vector<16x64xf32>
    %c0_18 = arith.constant 0 : index
    %c128 = arith.constant 128 : index
    %40 = vector.load %arg12[%c0_18, %c128] : memref<2x2560xf32, #tpu.memory_space<vmem>>, vector<1x64xf32>
    %c1_19 = arith.constant 1 : index
    %c128_20 = arith.constant 128 : index
    %41 = vector.load %arg12[%c1_19, %c128_20] : memref<2x2560xf32, #tpu.memory_space<vmem>>, vector<1x64xf32>
    %42 = vector.broadcast %4 : vector<16x1xf32> to vector<16x64xf32>
    %43 = arith.mulf %39, %42 : vector<16x64xf32>
    %cst_21 = arith.constant dense<0.000000e+00> : vector<64xf32>
    %44 = vector.multi_reduction <add>, %43, %cst_21 [0] : vector<16x64xf32> to vector<64xf32>
    %45 = vector.shape_cast %44 : vector<64xf32> to vector<1x64xf32>
    %cst_22 = arith.constant 0.0714285746 : f32
    %46 = vector.broadcast %cst_22 : f32 to vector<1x64xf32>
    %47 = arith.mulf %45, %46 : vector<1x64xf32>
    %48 = vector.broadcast %47 : vector<1x64xf32> to vector<16x64xf32>
    %49 = arith.subf %39, %48 : vector<16x64xf32>
    %50 = arith.mulf %49, %43 : vector<16x64xf32>
    %cst_23 = arith.constant dense<0.000000e+00> : vector<64xf32>
    %51 = vector.multi_reduction <add>, %50, %cst_23 [0] : vector<16x64xf32> to vector<64xf32>
    %52 = vector.shape_cast %51 : vector<64xf32> to vector<1x64xf32>
    %cst_24 = arith.constant 0.0714285746 : f32
    %53 = vector.broadcast %cst_24 : f32 to vector<1x64xf32>
    %54 = arith.mulf %52, %53 : vector<1x64xf32>
    %cst_25 = arith.constant 0.000000e+00 : f32
    %55 = vector.broadcast %cst_25 : f32 to vector<1x64xf32>
    %56 = arith.maximumf %54, %55 : vector<1x64xf32>
    %cst_26 = arith.constant 9.99999974E-6 : f32
    %57 = vector.broadcast %cst_26 : f32 to vector<1x64xf32>
    %58 = arith.addf %56, %57 : vector<1x64xf32>
    %59 = math.rsqrt %58 : vector<1x64xf32>
    %60 = arith.mulf %40, %59 : vector<1x64xf32>
    %61 = vector.broadcast %60 : vector<1x64xf32> to vector<16x64xf32>
    %62 = arith.mulf %49, %61 : vector<16x64xf32>
    %63 = vector.broadcast %41 : vector<1x64xf32> to vector<16x64xf32>
    %64 = arith.addf %62, %63 : vector<16x64xf32>
    %cst_27 = arith.constant 0.00999999977 : f32
    %65 = vector.broadcast %cst_27 : f32 to vector<16x64xf32>
    %66 = arith.mulf %65, %64 : vector<16x64xf32>
    %67 = arith.maximumf %64, %66 : vector<16x64xf32>
    %c0_28 = arith.constant 0 : index
    %c0_29 = arith.constant 0 : index
    %68 = vector.load %arg4[%c0_28, %c0_29] : memref<64x64xbf16, #tpu.memory_space<vmem>>, vector<64x64xbf16>
    %69 = arith.truncf %67 : vector<16x64xf32> to vector<16x64xbf16>
    %cst_30 = arith.constant dense<0.000000e+00> : vector<16x64xf32>
    %70 = tpu.matmul %69, %68, %cst_30 {dimension_numbers = #tpu.dot_dimension_numbers<[1], [0], [0], [1], [0, 0, 1, 1], [], []>} : vector<16x64xbf16>, vector<64x64xbf16>, vector<16x64xf32> -> vector<16x64xf32>
    %c0_31 = arith.constant 0 : index
    %c256 = arith.constant 256 : index
    %71 = vector.load %arg12[%c0_31, %c256] : memref<2x2560xf32, #tpu.memory_space<vmem>>, vector<1x64xf32>
    %c1_32 = arith.constant 1 : index
    %c256_33 = arith.constant 256 : index
    %72 = vector.load %arg12[%c1_32, %c256_33] : memref<2x2560xf32, #tpu.memory_space<vmem>>, vector<1x64xf32>
    %73 = vector.broadcast %4 : vector<16x1xf32> to vector<16x64xf32>
    %74 = arith.mulf %70, %73 : vector<16x64xf32>
    %cst_34 = arith.constant dense<0.000000e+00> : vector<64xf32>
    %75 = vector.multi_reduction <add>, %74, %cst_34 [0] : vector<16x64xf32> to vector<64xf32>
    %76 = vector.shape_cast %75 : vector<64xf32> to vector<1x64xf32>
    %cst_35 = arith.constant 0.0714285746 : f32
    %77 = vector.broadcast %cst_35 : f32 to vector<1x64xf32>
    %78 = arith.mulf %76, %77 : vector<1x64xf32>
    %79 = vector.broadcast %78 : vector<1x64xf32> to vector<16x64xf32>
    %80 = arith.subf %70, %79 : vector<16x64xf32>
    %81 = arith.mulf %80, %74 : vector<16x64xf32>
    %cst_36 = arith.constant dense<0.000000e+00> : vector<64xf32>
    %82 = vector.multi_reduction <add>, %81, %cst_36 [0] : vector<16x64xf32> to vector<64xf32>
    %83 = vector.shape_cast %82 : vector<64xf32> to vector<1x64xf32>
    %cst_37 = arith.constant 0.0714285746 : f32
    %84 = vector.broadcast %cst_37 : f32 to vector<1x64xf32>
    %85 = arith.mulf %83, %84 : vector<1x64xf32>
    %cst_38 = arith.constant 0.000000e+00 : f32
    %86 = vector.broadcast %cst_38 : f32 to vector<1x64xf32>
    %87 = arith.maximumf %85, %86 : vector<1x64xf32>
    %cst_39 = arith.constant 9.99999974E-6 : f32
    %88 = vector.broadcast %cst_39 : f32 to vector<1x64xf32>
    %89 = arith.addf %87, %88 : vector<1x64xf32>
    %90 = math.rsqrt %89 : vector<1x64xf32>
    %91 = arith.mulf %71, %90 : vector<1x64xf32>
    %92 = vector.broadcast %91 : vector<1x64xf32> to vector<16x64xf32>
    %93 = arith.mulf %80, %92 : vector<16x64xf32>
    %94 = vector.broadcast %72 : vector<1x64xf32> to vector<16x64xf32>
    %95 = arith.addf %93, %94 : vector<16x64xf32>
    %cst_40 = arith.constant 0.00999999977 : f32
    %96 = vector.broadcast %cst_40 : f32 to vector<16x64xf32>
    %97 = arith.mulf %96, %95 : vector<16x64xf32>
    %98 = arith.maximumf %95, %97 : vector<16x64xf32>
    %c0_41 = arith.constant 0 : index
    %c0_42 = arith.constant 0 : index
    %99 = vector.load %arg5[%c0_41, %c0_42] : memref<64x128xbf16, #tpu.memory_space<vmem>>, vector<64x128xbf16>
    %100 = arith.truncf %98 : vector<16x64xf32> to vector<16x64xbf16>
    %cst_43 = arith.constant dense<0.000000e+00> : vector<16x128xf32>
    %101 = tpu.matmul %100, %99, %cst_43 {dimension_numbers = #tpu.dot_dimension_numbers<[1], [0], [0], [1], [0, 0, 1, 1], [], []>} : vector<16x64xbf16>, vector<64x128xbf16>, vector<16x128xf32> -> vector<16x128xf32>
    %c0_44 = arith.constant 0 : index
    %c384 = arith.constant 384 : index
    %102 = vector.load %arg12[%c0_44, %c384] : memref<2x2560xf32, #tpu.memory_space<vmem>>, vector<1x128xf32>
    %c1_45 = arith.constant 1 : index
    %c384_46 = arith.constant 384 : index
    %103 = vector.load %arg12[%c1_45, %c384_46] : memref<2x2560xf32, #tpu.memory_space<vmem>>, vector<1x128xf32>
    %104 = vector.broadcast %4 : vector<16x1xf32> to vector<16x128xf32>
    %105 = arith.mulf %101, %104 : vector<16x128xf32>
    %cst_47 = arith.constant dense<0.000000e+00> : vector<128xf32>
    %106 = vector.multi_reduction <add>, %105, %cst_47 [0] : vector<16x128xf32> to vector<128xf32>
    %107 = vector.shape_cast %106 : vector<128xf32> to vector<1x128xf32>
    %cst_48 = arith.constant 0.0714285746 : f32
    %108 = vector.broadcast %cst_48 : f32 to vector<1x128xf32>
    %109 = arith.mulf %107, %108 : vector<1x128xf32>
    %110 = vector.broadcast %109 : vector<1x128xf32> to vector<16x128xf32>
    %111 = arith.subf %101, %110 : vector<16x128xf32>
    %112 = arith.mulf %111, %105 : vector<16x128xf32>
    %cst_49 = arith.constant dense<0.000000e+00> : vector<128xf32>
    %113 = vector.multi_reduction <add>, %112, %cst_49 [0] : vector<16x128xf32> to vector<128xf32>
    %114 = vector.shape_cast %113 : vector<128xf32> to vector<1x128xf32>
    %cst_50 = arith.constant 0.0714285746 : f32
    %115 = vector.broadcast %cst_50 : f32 to vector<1x128xf32>
    %116 = arith.mulf %114, %115 : vector<1x128xf32>
    %cst_51 = arith.constant 0.000000e+00 : f32
    %117 = vector.broadcast %cst_51 : f32 to vector<1x128xf32>
    %118 = arith.maximumf %116, %117 : vector<1x128xf32>
    %cst_52 = arith.constant 9.99999974E-6 : f32
    %119 = vector.broadcast %cst_52 : f32 to vector<1x128xf32>
    %120 = arith.addf %118, %119 : vector<1x128xf32>
    %121 = math.rsqrt %120 : vector<1x128xf32>
    %122 = arith.mulf %102, %121 : vector<1x128xf32>
    %123 = vector.broadcast %122 : vector<1x128xf32> to vector<16x128xf32>
    %124 = arith.mulf %111, %123 : vector<16x128xf32>
    %125 = vector.broadcast %103 : vector<1x128xf32> to vector<16x128xf32>
    %126 = arith.addf %124, %125 : vector<16x128xf32>
    %cst_53 = arith.constant 0.00999999977 : f32
    %127 = vector.broadcast %cst_53 : f32 to vector<16x128xf32>
    %128 = arith.mulf %127, %126 : vector<16x128xf32>
    %129 = arith.maximumf %126, %128 : vector<16x128xf32>
    %c0_i32_54 = arith.constant 0 : i32
    %130 = tpu.memref_slice %arg16[%c0_i32_54] : memref<2x!tpu.dma_semaphore, #tpu.memory_space<semaphore_mem>> -> memref<1x!tpu.dma_semaphore, #tpu.memory_space<semaphore_mem>>
    %131 = tpu.memref_squeeze %130 : memref<1x!tpu.dma_semaphore, #tpu.memory_space<semaphore_mem>> -> memref<!tpu.dma_semaphore, #tpu.memory_space<semaphore_mem>>
    tpu.wait_dma2 semaphore(%131 : memref<!tpu.dma_semaphore, #tpu.memory_space<semaphore_mem>>) src(%arg6 : memref<128x1024xbf16, #tpu.memory_space<any>>) dst(%arg14 : memref<128x1024xbf16, #tpu.memory_space<vmem>>)
    %c0_55 = arith.constant 0 : index
    %c0_56 = arith.constant 0 : index
    %132 = vector.load %arg14[%c0_55, %c0_56] : memref<128x1024xbf16, #tpu.memory_space<vmem>>, vector<128x1024xbf16>
    %133 = arith.truncf %129 : vector<16x128xf32> to vector<16x128xbf16>
    %cst_57 = arith.constant dense<0.000000e+00> : vector<16x1024xf32>
    %134 = tpu.matmul %133, %132, %cst_57 {dimension_numbers = #tpu.dot_dimension_numbers<[1], [0], [0], [1], [0, 0, 1, 1], [], []>} : vector<16x128xbf16>, vector<128x1024xbf16>, vector<16x1024xf32> -> vector<16x1024xf32>
    %c0_58 = arith.constant 0 : index
    %c512 = arith.constant 512 : index
    %135 = vector.load %arg12[%c0_58, %c512] : memref<2x2560xf32, #tpu.memory_space<vmem>>, vector<1x1024xf32>
    %c1_59 = arith.constant 1 : index
    %c512_60 = arith.constant 512 : index
    %136 = vector.load %arg12[%c1_59, %c512_60] : memref<2x2560xf32, #tpu.memory_space<vmem>>, vector<1x1024xf32>
    %137 = vector.broadcast %4 : vector<16x1xf32> to vector<16x1024xf32>
    %138 = arith.mulf %134, %137 : vector<16x1024xf32>
    %cst_61 = arith.constant dense<0.000000e+00> : vector<1024xf32>
    %139 = vector.multi_reduction <add>, %138, %cst_61 [0] : vector<16x1024xf32> to vector<1024xf32>
    %140 = vector.shape_cast %139 : vector<1024xf32> to vector<1x1024xf32>
    %cst_62 = arith.constant 0.0714285746 : f32
    %141 = vector.broadcast %cst_62 : f32 to vector<1x1024xf32>
    %142 = arith.mulf %140, %141 : vector<1x1024xf32>
    %143 = vector.broadcast %142 : vector<1x1024xf32> to vector<16x1024xf32>
    %144 = arith.subf %134, %143 : vector<16x1024xf32>
    %145 = arith.mulf %144, %138 : vector<16x1024xf32>
    %cst_63 = arith.constant dense<0.000000e+00> : vector<1024xf32>
    %146 = vector.multi_reduction <add>, %145, %cst_63 [0] : vector<16x1024xf32> to vector<1024xf32>
    %147 = vector.shape_cast %146 : vector<1024xf32> to vector<1x1024xf32>
    %cst_64 = arith.constant 0.0714285746 : f32
    %148 = vector.broadcast %cst_64 : f32 to vector<1x1024xf32>
    %149 = arith.mulf %147, %148 : vector<1x1024xf32>
    %cst_65 = arith.constant 0.000000e+00 : f32
    %150 = vector.broadcast %cst_65 : f32 to vector<1x1024xf32>
    %151 = arith.maximumf %149, %150 : vector<1x1024xf32>
    %cst_66 = arith.constant 9.99999974E-6 : f32
    %152 = vector.broadcast %cst_66 : f32 to vector<1x1024xf32>
    %153 = arith.addf %151, %152 : vector<1x1024xf32>
    %154 = math.rsqrt %153 : vector<1x1024xf32>
    %155 = arith.mulf %135, %154 : vector<1x1024xf32>
    %156 = vector.broadcast %155 : vector<1x1024xf32> to vector<16x1024xf32>
    %157 = arith.mulf %144, %156 : vector<16x1024xf32>
    %158 = vector.broadcast %136 : vector<1x1024xf32> to vector<16x1024xf32>
    %159 = arith.addf %157, %158 : vector<16x1024xf32>
    %cst_67 = arith.constant 0.00999999977 : f32
    %160 = vector.broadcast %cst_67 : f32 to vector<16x1024xf32>
    %161 = arith.mulf %160, %159 : vector<16x1024xf32>
    %162 = arith.maximumf %159, %161 : vector<16x1024xf32>
    %cst_68 = arith.constant 0.000000e+00 : f32
    %163 = vector.broadcast %cst_68 : f32 to vector<16x1xf32>
    %164 = arith.cmpf ogt, %4, %163 : vector<16x1xf32>
    %cst_69 = arith.constant 0xFF800000 : f32
    %165 = vector.shape_cast %164 : vector<16x1xi1> to vector<16x1xi1>
    %166 = vector.broadcast %165 : vector<16x1xi1> to vector<16x1024xi1>
    %167 = vector.broadcast %cst_69 : f32 to vector<16x1024xf32>
    %168 = arith.select %166, %162, %167 : vector<16x1024xi1>, vector<16x1024xf32>
    %169 = vector.shape_cast %168 : vector<16x1024xf32> to vector<2x8x1024xf32>
    %cst_70 = arith.constant dense<0xFF800000> : vector<2x1024xf32>
    %170 = vector.multi_reduction <maximumf>, %169, %cst_70 [1] : vector<2x8x1024xf32> to vector<2x1024xf32>
    %c1_i32_71 = arith.constant 1 : i32
    %171 = tpu.memref_slice %arg16[%c1_i32_71] : memref<2x!tpu.dma_semaphore, #tpu.memory_space<semaphore_mem>> -> memref<1x!tpu.dma_semaphore, #tpu.memory_space<semaphore_mem>>
    %172 = tpu.memref_squeeze %171 : memref<1x!tpu.dma_semaphore, #tpu.memory_space<semaphore_mem>> -> memref<!tpu.dma_semaphore, #tpu.memory_space<semaphore_mem>>
    tpu.wait_dma2 semaphore(%172 : memref<!tpu.dma_semaphore, #tpu.memory_space<semaphore_mem>>) src(%arg7 : memref<1024x512xbf16, #tpu.memory_space<any>>) dst(%arg15 : memref<1024x512xbf16, #tpu.memory_space<vmem>>)
    %173 = arith.truncf %170 : vector<2x1024xf32> to vector<2x1024xbf16>
    %c0_72 = arith.constant 0 : index
    %c0_73 = arith.constant 0 : index
    %174 = vector.load %arg15[%c0_72, %c0_73] : memref<1024x512xbf16, #tpu.memory_space<vmem>>, vector<1024x512xbf16>
    %cst_74 = arith.constant dense<0.000000e+00> : vector<2x512xf32>
    %175 = tpu.matmul %173, %174, %cst_74 {dimension_numbers = #tpu.dot_dimension_numbers<[1], [0], [0], [1], [0, 0, 1, 1], [], []>} : vector<2x1024xbf16>, vector<1024x512xbf16>, vector<2x512xf32> -> vector<2x512xf32>
    %176 = vector.shape_cast %175 : vector<2x512xf32> to vector<2x1x512xf32>
    %177 = vector.shape_cast %176 : vector<2x1x512xf32> to vector<2x1x512xf32>
    %178 = vector.broadcast %177 : vector<2x1x512xf32> to vector<2x8x512xf32>
    %179 = vector.shape_cast %178 : vector<2x8x512xf32> to vector<16x512xf32>
    %c0_75 = arith.constant 0 : index
    %c0_76 = arith.constant 0 : index
    %180 = vector.load %arg8[%c0_75, %c0_76] : memref<64x512xbf16, #tpu.memory_space<vmem>>, vector<64x512xbf16>
    %181 = arith.truncf %67 : vector<16x64xf32> to vector<16x64xbf16>
    %cst_77 = arith.constant dense<0.000000e+00> : vector<16x512xf32>
    %182 = tpu.matmul %181, %180, %cst_77 {dimension_numbers = #tpu.dot_dimension_numbers<[1], [0], [0], [1], [0, 0, 1, 1], [], []>} : vector<16x64xbf16>, vector<64x512xbf16>, vector<16x512xf32> -> vector<16x512xf32>
    %183 = arith.addf %179, %182 : vector<16x512xf32>
    %c0_78 = arith.constant 0 : index
    %c1536 = arith.constant 1536 : index
    %184 = vector.load %arg12[%c0_78, %c1536] : memref<2x2560xf32, #tpu.memory_space<vmem>>, vector<1x512xf32>
    %c1_79 = arith.constant 1 : index
    %c1536_80 = arith.constant 1536 : index
    %185 = vector.load %arg12[%c1_79, %c1536_80] : memref<2x2560xf32, #tpu.memory_space<vmem>>, vector<1x512xf32>
    %186 = vector.broadcast %4 : vector<16x1xf32> to vector<16x512xf32>
    %187 = arith.mulf %183, %186 : vector<16x512xf32>
    %cst_81 = arith.constant dense<0.000000e+00> : vector<512xf32>
    %188 = vector.multi_reduction <add>, %187, %cst_81 [0] : vector<16x512xf32> to vector<512xf32>
    %189 = vector.shape_cast %188 : vector<512xf32> to vector<1x512xf32>
    %cst_82 = arith.constant 0.0714285746 : f32
    %190 = vector.broadcast %cst_82 : f32 to vector<1x512xf32>
    %191 = arith.mulf %189, %190 : vector<1x512xf32>
    %192 = vector.broadcast %191 : vector<1x512xf32> to vector<16x512xf32>
    %193 = arith.subf %183, %192 : vector<16x512xf32>
    %194 = arith.mulf %193, %187 : vector<16x512xf32>
    %cst_83 = arith.constant dense<0.000000e+00> : vector<512xf32>
    %195 = vector.multi_reduction <add>, %194, %cst_83 [0] : vector<16x512xf32> to vector<512xf32>
    %196 = vector.shape_cast %195 : vector<512xf32> to vector<1x512xf32>
    %cst_84 = arith.constant 0.0714285746 : f32
    %197 = vector.broadcast %cst_84 : f32 to vector<1x512xf32>
    %198 = arith.mulf %196, %197 : vector<1x512xf32>
    %cst_85 = arith.constant 0.000000e+00 : f32
    %199 = vector.broadcast %cst_85 : f32 to vector<1x512xf32>
    %200 = arith.maximumf %198, %199 : vector<1x512xf32>
    %cst_86 = arith.constant 9.99999974E-6 : f32
    %201 = vector.broadcast %cst_86 : f32 to vector<1x512xf32>
    %202 = arith.addf %200, %201 : vector<1x512xf32>
    %203 = math.rsqrt %202 : vector<1x512xf32>
    %204 = arith.mulf %184, %203 : vector<1x512xf32>
    %205 = vector.broadcast %204 : vector<1x512xf32> to vector<16x512xf32>
    %206 = arith.mulf %193, %205 : vector<16x512xf32>
    %207 = vector.broadcast %185 : vector<1x512xf32> to vector<16x512xf32>
    %208 = arith.addf %206, %207 : vector<16x512xf32>
    %cst_87 = arith.constant 0.00999999977 : f32
    %209 = vector.broadcast %cst_87 : f32 to vector<16x512xf32>
    %210 = arith.mulf %209, %208 : vector<16x512xf32>
    %211 = arith.maximumf %208, %210 : vector<16x512xf32>
    %c0_88 = arith.constant 0 : index
    %c0_89 = arith.constant 0 : index
    %212 = vector.load %arg9[%c0_88, %c0_89] : memref<512x256xbf16, #tpu.memory_space<vmem>>, vector<512x256xbf16>
    %213 = arith.truncf %211 : vector<16x512xf32> to vector<16x512xbf16>
    %cst_90 = arith.constant dense<0.000000e+00> : vector<16x256xf32>
    %214 = tpu.matmul %213, %212, %cst_90 {dimension_numbers = #tpu.dot_dimension_numbers<[1], [0], [0], [1], [0, 0, 1, 1], [], []>} : vector<16x512xbf16>, vector<512x256xbf16>, vector<16x256xf32> -> vector<16x256xf32>
    %c0_91 = arith.constant 0 : index
    %c2048 = arith.constant 2048 : index
    %215 = vector.load %arg12[%c0_91, %c2048] : memref<2x2560xf32, #tpu.memory_space<vmem>>, vector<1x256xf32>
    %c1_92 = arith.constant 1 : index
    %c2048_93 = arith.constant 2048 : index
    %216 = vector.load %arg12[%c1_92, %c2048_93] : memref<2x2560xf32, #tpu.memory_space<vmem>>, vector<1x256xf32>
    %217 = vector.broadcast %4 : vector<16x1xf32> to vector<16x256xf32>
    %218 = arith.mulf %214, %217 : vector<16x256xf32>
    %cst_94 = arith.constant dense<0.000000e+00> : vector<256xf32>
    %219 = vector.multi_reduction <add>, %218, %cst_94 [0] : vector<16x256xf32> to vector<256xf32>
    %220 = vector.shape_cast %219 : vector<256xf32> to vector<1x256xf32>
    %cst_95 = arith.constant 0.0714285746 : f32
    %221 = vector.broadcast %cst_95 : f32 to vector<1x256xf32>
    %222 = arith.mulf %220, %221 : vector<1x256xf32>
    %223 = vector.broadcast %222 : vector<1x256xf32> to vector<16x256xf32>
    %224 = arith.subf %214, %223 : vector<16x256xf32>
    %225 = arith.mulf %224, %218 : vector<16x256xf32>
    %cst_96 = arith.constant dense<0.000000e+00> : vector<256xf32>
    %226 = vector.multi_reduction <add>, %225, %cst_96 [0] : vector<16x256xf32> to vector<256xf32>
    %227 = vector.shape_cast %226 : vector<256xf32> to vector<1x256xf32>
    %cst_97 = arith.constant 0.0714285746 : f32
    %228 = vector.broadcast %cst_97 : f32 to vector<1x256xf32>
    %229 = arith.mulf %227, %228 : vector<1x256xf32>
    %cst_98 = arith.constant 0.000000e+00 : f32
    %230 = vector.broadcast %cst_98 : f32 to vector<1x256xf32>
    %231 = arith.maximumf %229, %230 : vector<1x256xf32>
    %cst_99 = arith.constant 9.99999974E-6 : f32
    %232 = vector.broadcast %cst_99 : f32 to vector<1x256xf32>
    %233 = arith.addf %231, %232 : vector<1x256xf32>
    %234 = math.rsqrt %233 : vector<1x256xf32>
    %235 = arith.mulf %215, %234 : vector<1x256xf32>
    %236 = vector.broadcast %235 : vector<1x256xf32> to vector<16x256xf32>
    %237 = arith.mulf %224, %236 : vector<16x256xf32>
    %238 = vector.broadcast %216 : vector<1x256xf32> to vector<16x256xf32>
    %239 = arith.addf %237, %238 : vector<16x256xf32>
    %cst_100 = arith.constant 0.00999999977 : f32
    %240 = vector.broadcast %cst_100 : f32 to vector<16x256xf32>
    %241 = arith.mulf %240, %239 : vector<16x256xf32>
    %242 = arith.maximumf %239, %241 : vector<16x256xf32>
    %c0_101 = arith.constant 0 : index
    %c0_102 = arith.constant 0 : index
    %243 = vector.load %arg10[%c0_101, %c0_102] : memref<256x64xbf16, #tpu.memory_space<vmem>>, vector<256x64xbf16>
    %244 = arith.truncf %242 : vector<16x256xf32> to vector<16x256xbf16>
    %cst_103 = arith.constant dense<0.000000e+00> : vector<16x64xf32>
    %245 = tpu.matmul %244, %243, %cst_103 {dimension_numbers = #tpu.dot_dimension_numbers<[1], [0], [0], [1], [0, 0, 1, 1], [], []>} : vector<16x256xbf16>, vector<256x64xbf16>, vector<16x64xf32> -> vector<16x64xf32>
    %c0_104 = arith.constant 0 : index
    %c2304 = arith.constant 2304 : index
    %246 = vector.load %arg12[%c0_104, %c2304] : memref<2x2560xf32, #tpu.memory_space<vmem>>, vector<1x64xf32>
    %c1_105 = arith.constant 1 : index
    %c2304_106 = arith.constant 2304 : index
    %247 = vector.load %arg12[%c1_105, %c2304_106] : memref<2x2560xf32, #tpu.memory_space<vmem>>, vector<1x64xf32>
    %248 = vector.broadcast %4 : vector<16x1xf32> to vector<16x64xf32>
    %249 = arith.mulf %245, %248 : vector<16x64xf32>
    %cst_107 = arith.constant dense<0.000000e+00> : vector<64xf32>
    %250 = vector.multi_reduction <add>, %249, %cst_107 [0] : vector<16x64xf32> to vector<64xf32>
    %251 = vector.shape_cast %250 : vector<64xf32> to vector<1x64xf32>
    %cst_108 = arith.constant 0.0714285746 : f32
    %252 = vector.broadcast %cst_108 : f32 to vector<1x64xf32>
    %253 = arith.mulf %251, %252 : vector<1x64xf32>
    %254 = vector.broadcast %253 : vector<1x64xf32> to vector<16x64xf32>
    %255 = arith.subf %245, %254 : vector<16x64xf32>
    %256 = arith.mulf %255, %249 : vector<16x64xf32>
    %cst_109 = arith.constant dense<0.000000e+00> : vector<64xf32>
    %257 = vector.multi_reduction <add>, %256, %cst_109 [0] : vector<16x64xf32> to vector<64xf32>
    %258 = vector.shape_cast %257 : vector<64xf32> to vector<1x64xf32>
    %cst_110 = arith.constant 0.0714285746 : f32
    %259 = vector.broadcast %cst_110 : f32 to vector<1x64xf32>
    %260 = arith.mulf %258, %259 : vector<1x64xf32>
    %cst_111 = arith.constant 0.000000e+00 : f32
    %261 = vector.broadcast %cst_111 : f32 to vector<1x64xf32>
    %262 = arith.maximumf %260, %261 : vector<1x64xf32>
    %cst_112 = arith.constant 9.99999974E-6 : f32
    %263 = vector.broadcast %cst_112 : f32 to vector<1x64xf32>
    %264 = arith.addf %262, %263 : vector<1x64xf32>
    %265 = math.rsqrt %264 : vector<1x64xf32>
    %266 = arith.mulf %246, %265 : vector<1x64xf32>
    %267 = vector.broadcast %266 : vector<1x64xf32> to vector<16x64xf32>
    %268 = arith.mulf %255, %267 : vector<16x64xf32>
    %269 = vector.broadcast %247 : vector<1x64xf32> to vector<16x64xf32>
    %270 = arith.addf %268, %269 : vector<16x64xf32>
    %cst_113 = arith.constant 0.00999999977 : f32
    %271 = vector.broadcast %cst_113 : f32 to vector<16x64xf32>
    %272 = arith.mulf %271, %270 : vector<16x64xf32>
    %273 = arith.maximumf %270, %272 : vector<16x64xf32>
    %c0_114 = arith.constant 0 : index
    %c0_115 = arith.constant 0 : index
    %274 = vector.load %arg11[%c0_114, %c0_115] : memref<64x128xbf16, #tpu.memory_space<vmem>>, vector<64x128xbf16>
    %275 = arith.truncf %273 : vector<16x64xf32> to vector<16x64xbf16>
    %cst_116 = arith.constant dense<0.000000e+00> : vector<16x128xf32>
    %276 = tpu.matmul %275, %274, %cst_116 {dimension_numbers = #tpu.dot_dimension_numbers<[1], [0], [0], [1], [0, 0, 1, 1], [], []>} : vector<16x64xbf16>, vector<64x128xbf16>, vector<16x128xf32> -> vector<16x128xf32>
    %c0_117 = arith.constant 0 : index
    %c2432 = arith.constant 2432 : index
    %277 = vector.load %arg12[%c0_117, %c2432] : memref<2x2560xf32, #tpu.memory_space<vmem>>, vector<1x128xf32>
    %278 = vector.broadcast %277 : vector<1x128xf32> to vector<16x128xf32>
    %279 = arith.addf %276, %278 : vector<16x128xf32>
    %c0_118 = arith.constant 0 : index
    %c0_119 = arith.constant 0 : index
    %280 = vector.load %arg13[%c0_118, %c0_119] : memref<16x128xf32, #tpu.memory_space<vmem>>, vector<16x128xf32>
    tpu.vector_store %arg13[%c0_118, %c0_119], %279 {strides = array<i32>} : memref<16x128xf32, #tpu.memory_space<vmem>>, vector<16x128xf32>,
    return
  }
}

</mosaic_0001>

<bundles_post_ra>
// kernel: tpu_custom_call.1
= control target key start
LH: loop header
LB: loop body
LE: loop exit
PB: predicated region body
PF: predicated region fallthrough
CT: control target
= control target key end

     0   :  { %18 = vsyncpa [#allocation6], 0  ;;  %s7267_s0 = inlined_call_operand.vmem [shape: f32[16,128], index: 0, kind: input, shape index: {}]   ;;  %s7268_s1 = inlined_call_operand.vmem [shape: f32[16,1], index: 1, kind: input, shape index: {}]   ;;  %s7269_s2 = inlined_call_operand.vmem [shape: bf16[128,64], index: 2, kind: input, shape index: {}]   ;;  %s7270_s3 = inlined_call_operand.vmem [shape: bf16[64,64], index: 3, kind: input, shape index: {}]   ;;  %s7271_s4 = inlined_call_operand.vmem [shape: bf16[64,64], index: 4, kind: input, shape index: {}]   ;;  %s7272_s5 = inlined_call_operand.hbm [shape: bf16[64,128], index: 5, kind: input, shape index: {}]   ;;  %s7273_s6 = inlined_call_operand.hbm [shape: bf16[128,1024], index: 6, kind: input, shape index: {}]   ;;  %s7274_s7 = inlined_call_operand.hbm [shape: bf16[1024,512], index: 7, kind: input, shape index: {}]   ;;  %s7275_s8 = inlined_call_operand.vmem [shape: bf16[64,512], index: 8, kind: input, shape index: {}]   ;;  %s7276_s9 = inlined_call_operand.hbm [shape: bf16[512,256], index: 9, kind: input, shape index: {}]   ;;  %s7277_s10 = inlined_call_operand.vmem [shape: bf16[256,64], index: 10, kind: input, shape index: {}]   ;;  %s7278_s11 = inlined_call_operand.hbm [shape: bf16[64,128], index: 11, kind: input, shape index: {}]   ;;  %s7279_s12 = inlined_call_operand.vmem [shape: f32[2,2560], index: 12, kind: input, shape index: {}]   ;;  %s7280_s13 = inlined_call_operand.hbm [shape: f32[16,128], index: 13, kind: output, shape index: {}]  }
   0x1   :  { %19 = vsyncpa [#allocation9], 0 }
   0x2   :  { %20 = vsyncpa [#allocation7], 0  ;;  %s6381_s25 = smov [#allocation8]  }
   0x3   :  { %s50_s26 = sshll.u32 %s6381_s25, 4  ;;  %s51_s26 = int_to_ptr.vmem [resolvable:$true] %s50_s26 }
   0x4   :  { %s6259_s27 = scalar_lea.vmem %s51_s26, 8192  ;;  %p6264_p1 = scmp.lt.s32.totalorder %s51_s26, %s51_s26 }
   0x5   :  { %p6260_p0 = scmp.ne.s32.totalorder %s51_s26, %s6259_s27  ;;  %p6265_p2 = scmp.lt.s32.totalorder %s6259_s27, %s6259_s27 }
   0x7   :  { %p6266_p3 = por %p6265_p2, %p6264_p1 }
   0x9   :  { %p6267_p4 = pnand %p6266_p3, %p6260_p0 }
   0xb   :  { %6270 = shalt.err (!%p6267_p4)
}
   0xc   :  { %s6382_s28 = smov 128   ;;  %s6383_s29 = smov 8  }
   0xd   :  { %56 = dma.hbm_to_vmem [thread:$0]  %s7276_s9, 8192, %s51_s26, [#allocation9], %s6382_s28, %s6382_s28, %s6383_s29  }
   0xe   :  { %s6384_s15 = smov [#allocation5]  }
   0xf   :  { %s36_s16 = sshll.u32 %s6384_s15, 4  ;;  %s37_s16 = int_to_ptr.vmem [resolvable:$true] %s36_s16 }
  0x10   :  { %s6279_s17 = scalar_lea.vmem %s37_s16, 512  ;;  %p6284_p6 = scmp.lt.s32.totalorder %s37_s16, %s37_s16 }
  0x11   :  { %p6280_p5 = scmp.ne.s32.totalorder %s37_s16, %s6279_s17  ;;  %p6285_p7 = scmp.lt.s32.totalorder %s6279_s17, %s6279_s17 }
  0x13   :  { %p6286_p8 = por %p6285_p7, %p6284_p6 }
  0x15   :  { %p6287_p9 = pnand %p6286_p8, %p6280_p5 }
  0x17   :  { %6290 = shalt.err (!%p6287_p9)
}
  0x18   :  { %s6385_s18 = smov 64   ;;  %s6386_s19 = smov 4  }
  0x19   :  { %42 = dma.hbm_to_vmem [thread:$0]  %s7272_s5, 512, %s37_s16, [#allocation6], %s6385_s18, %s6385_s18, %s6386_s19  }
  0x1a   :  { %s6387_s22 = smov [#allocation10]  }
  0x1b   :  { %s64_s23 = sshll.u32 %s6387_s22, 4  ;;  %s65_s23 = int_to_ptr.vmem [resolvable:$true] %s64_s23 }
  0x1c   :  { %s6299_s9 = scalar_lea.vmem %s65_s23, 512  ;;  %p6304_p11 = scmp.lt.s32.totalorder %s65_s23, %s65_s23 }
  0x1d   :  { %p6300_p10 = scmp.ne.s32.totalorder %s65_s23, %s6299_s9  ;;  %p6305_p12 = scmp.lt.s32.totalorder %s6299_s9, %s6299_s9 }
  0x1f   :  { %p6306_p13 = por %p6305_p12, %p6304_p11 }
  0x21   :  { %p6307_p0 = pnand %p6306_p13, %p6300_p10 }
  0x23   :  { %6310 = shalt.err (!%p6307_p0)
}
  0x24   :  { %70 = dma.hbm_to_vmem [thread:$0]  %s7278_s11, 512, %s65_s23, [#allocation9], %s6385_s18, %s6385_s18, %s6386_s19  }
  0x25   :  { %6371 = dma.done.wait [#allocation6], 512  }
  0x26   :  { %6372 = vsyncadd [#allocation6], 4294966784 }
  0x27   :  { %6373 = dma.done.wait [#allocation9], 8704  }
  0x28   :  { %6374 = vsyncadd [#allocation9], 4294958592  ;;  %v7281_v0 = vmov 0.0   ;;  %vm6389_vm0 = vmmov 0   ;;  %v7283_v1 = vmov 0   ;;  %v5668_v2 = vld [vmem:[%s7269_s2 + $0x38] sm:$0xff]   ;;  %v259_v53 = vlaneseq }
  0x29   :  { %5585 = vmatprep.subr.bf16.mxu0 %v7281_v0  ;;  %5601 = vmatprep.mubr.msk.bf16.mxu0 %vm6389_vm0, %v7281_v0  ;;  %v5669_v3 = vld [vmem:[%s7269_s2 + $0x30] sm:$0xff]   ;;  %v5670_v4 = vld [vmem:[%s7269_s2 + $0x28] sm:$0xff]   ;;  %v5671_v5 = vld [vmem:[%s7269_s2 + $0x20] sm:$0xff]   ;;  %vm230_vm1 = vcmask 523264   ;;  %s6391_s17 = smov [#allocation2]   ;;  %s6392_s19 = smov [#allocation3]  }
  0x2a   :  { %5667 = vset.pattern.permute.xlu0 %v7283_v1  ;;  %5605 = vmatprep.subr.bf16.mxu1 %v7281_v0  ;;  %v6501_v6 = vld [vmem:[%s7268_s1] sm:$0xff]  ;;  %v6507_v7 = vld [vmem:[%s7268_s1 + $0x8] sm:$0xff]  ;;  %v5672_v8 = vld [vmem:[%s7269_s2 + $0x18] sm:$0xff]   ;;  %v6562_v54 = vshrl.u32 %v259_v53, 7  ;;  %s90_s18 = sshll.u32 %s6391_s17, 4  ;;  %s91_s18 = int_to_ptr.vmem [resolvable:$true] %s90_s18 }
  0x2b   :  { %5613 = vmatprep.mubr.msk.bf16.mxu1 %vm6389_vm0, %v7281_v0  ;;  %5586 = vmatpush3.bf16.msra.mxu0 %v5668_v2  ;;  %v5673_v9 = vld [vmem:[%s7269_s2 + $0x10] sm:$0xff]   ;;  %v5674_v10 = vld [vmem:[%s7269_s2 + $0x8] sm:$0xff]   ;;  %v5675_v11 = vld [vmem:[%s7269_s2] sm:$0xff]   ;;  %s6319_s20 = scalar_lea.vmem %s91_s18, 8192  ;;  %p6324_p2 = scmp.lt.s32.totalorder %s91_s18, %s91_s18 }
  0x2c   :  { %5587 = vmatprep.subr.bf16.mxu0 %v7281_v0  ;;  %220 = vperm.xlu0 %5667, %v6501_v6   ;;  %v108_v12 = vld [vmem:[%s7267_s0] sm:$0xff]  ;;  %v109_v13 = vld [vmem:[%s7267_s0 + $0x8] sm:$0xff]  ;;  %v5676_v15 = vld [vmem:[%s7270_s3 + $0x18] sm:$0xff]   ;;  %v6568_v56 = vsub.s32 0, %v6562_v54  ;;  %p6320_p1 = scmp.ne.s32.totalorder %s91_s18, %s6319_s20  ;;  %p6325_p3 = scmp.lt.s32.totalorder %s6319_s20, %s6319_s20 }
  0x2d   :  { %v126_v14 = vpack.c.bf16 %v109_v13, %v108_v12  ;;  %5606 = vmatpush3.bf16.msra.mxu1 %v5676_v15  ;;  %v5677_v16 = vld [vmem:[%s7270_s3 + $0x10] sm:$0xff]   ;;  %v5678_v17 = vld [vmem:[%s7270_s3 + $0x8] sm:$0xff]   ;;  %v5679_v18 = vld [vmem:[%s7270_s3] sm:$0xff]   ;;  %s102_s3 = sshll.u32 %s6392_s19, 4  ;;  %s103_s3 = int_to_ptr.vmem [resolvable:$true] %s102_s3 }
  0x2e   :  { %5607 = vmatprep.subr.bf16.mxu1 %v7281_v0  ;;  %v216_v55 = vld [vmem:[%s7279_s12] sm:$0x1]  ;;  %v5082_v60 = vld [vmem:[%s7279_s12 + $0x1] ss:$0 sm:$0xff]  ;;  %v5682_v12 = vld [vmem:[%s7271_s4 + $0x8] sm:$0xff]   ;;  %p6326_p4 = por %p6325_p3, %p6324_p2 }
  0x2f   :  { %5588 = vmatpush3.bf16.msra.mxu0 %v5669_v3  ;;  %v5683_v13 = vld [vmem:[%s7271_s4] sm:$0xff]  }
  0x30   :  { %5589 = vmatprep.subr.bf16.mxu0 %v7281_v0  ;;  %225 = vperm.xlu0 %5667, %v6507_v7   ;;  %p6327_p5 = pnand %p6326_p4, %p6320_p1 }
  0x31   :  { %5608 = vmatpush3.bf16.msra.mxu1 %v5677_v16 }
  0x32   :  { %5609 = vmatprep.subr.bf16.mxu1 %v7281_v0 }
  0x33   :  { %5590 = vmatpush3.bf16.msra.mxu0 %v5670_v4 }
  0x34   :  { %5591 = vmatprep.subr.bf16.mxu0 %v7281_v0 }
  0x35   :  { %5610 = vmatpush3.bf16.msra.mxu1 %v5678_v17 }
  0x36   :  { %5611 = vmatprep.subr.bf16.mxu1 %v7281_v0 }
  0x37   :  { %5592 = vmatpush3.bf16.msra.mxu0 %v5671_v5 }
  0x38   :  { %5593 = vmatprep.subr.bf16.mxu0 %v7281_v0 }
  0x39   :  { %5612 = vmatpush3.bf16.msra.mxu1 %v5679_v18 }
  0x3a   :  { %5617 = vmatprep.subr.bf16.mxu1 %v7281_v0 }
  0x3b   :  { %5594 = vmatpush3.bf16.msra.mxu0 %v5672_v8 }
  0x3c   :  { %5595 = vmatprep.subr.bf16.mxu0 %v7281_v0 }
  0x3f   :  { %5596 = vmatpush3.bf16.msra.mxu0 %v5673_v9 }
  0x40   :  { %5597 = vmatprep.subr.bf16.mxu0 %v7281_v0 }
  0x43   :  { %5598 = vmatpush3.bf16.msra.mxu0 %v5674_v10  ;;  %v5680_v10 = vld [vmem:[%s7271_s4 + $0x18] sm:$0xff]  }
  0x44   :  { %5599 = vmatprep.subr.bf16.mxu0 %v7281_v0 }
  0x47   :  { %5600 = vmatpush3.bf16.msra.mxu0 %v5675_v11  ;;  %v5681_v11 = vld [vmem:[%s7271_s4 + $0x10] sm:$0xff]  }
  0x48   :  { %5629 = vmatprep.subr.bf16.mxu0 %v7281_v0 }
  0x4a   :  { %5602 = vmatmul.mubr.bf16.vlgmr.msra.gmra.mxu0 %v126_v14 }
  0x4b   :  { %5637 = vmatprep.mubr.msk.bf16.mxu0 %vm6389_vm0, %v7281_v0 }
  0xa7   :  { %v6552_v19 = vpop.permute.xlu0 %220 }
  0xab   :  { %v6555_v23 = vpop.permute.xlu0 %225 }
 0x10a   :  { %v209_v20 = vpop.f32.mrf.mxu0 }
 0x10b   :  { %v228_v22 = vmul.f32 %v6552_v19, %v209_v20 }
 0x10c   :  { %v5603_v21 = vpop.f32.mrf.mxu0 }
 0x10d   :  { %v231_v27 = vsel %vm230_vm1, %v228_v22, 0.0 }
 0x10e   :  { %v212_v24 = vpop.f32.mrf.mxu0 }
 0x10f   :  { %v229_v25 = vmul.f32 %v6555_v23, %v212_v24 }
 0x110   :  { %v5604_v26 = vpop.f32.mrf.mxu0 }
 0x111   :  { %v232_v28 = vsel %vm230_vm1, %v229_v25, 0.0 }
 0x112   :  { %v233_v29 = vadd.f32 %v232_v28, %v231_v27 }
 0x114   :  { %v234_v30 = vrot.slane %v233_v29, 4 }
 0x116   :  { %v235_v31 = vadd.f32 %v234_v30, %v233_v29 }
 0x118   :  { %v236_v32 = vrot.slane %v235_v31, 2 }
 0x11a   :  { %v237_v33 = vadd.f32 %v236_v32, %v235_v31 }
 0x11c   :  { %v238_v34 = vrot.slane %v237_v33, 1 }
 0x11e   :  { %v239_v35 = vadd.f32 %v238_v34, %v237_v33 }
 0x120   :  { %v240_v36 = vmul.f32 0.071428575, %v239_v35 }
 0x122   :  { %v241_v37 = vsub.f32 %v209_v20, %v240_v36  ;;  %v242_v38 = vsub.f32 %v212_v24, %v240_v36 }
 0x124   :  { %v243_v39 = vmul.f32 %v241_v37, %v228_v22  ;;  %v244_v40 = vmul.f32 %v242_v38, %v229_v25 }
 0x126   :  { %v245_v41 = vsel %vm230_vm1, %v243_v39, 0.0  ;;  %v246_v42 = vsel %vm230_vm1, %v244_v40, 0.0 }
 0x127   :  { %v247_v43 = vadd.f32 %v246_v42, %v245_v41 }
 0x129   :  { %v248_v44 = vrot.slane %v247_v43, 4 }
 0x12b   :  { %v249_v45 = vadd.f32 %v248_v44, %v247_v43 }
 0x12d   :  { %v250_v46 = vrot.slane %v249_v45, 2 }
 0x12f   :  { %v251_v47 = vadd.f32 %v250_v46, %v249_v45 }
 0x131   :  { %v252_v48 = vrot.slane %v251_v47, 1 }
 0x133   :  { %v253_v49 = vadd.f32 %v252_v48, %v251_v47  ;;  %v352_v48 = vld [vmem:[%s7279_s12 + $0x2] sm:$0x1] }
 0x135   :  { %v254_v50 = vmul.f32 0.071428575, %v253_v49 }
 0x137   :  { %v255_v51 = vmax.f32 %v254_v50, 0.0 }
 0x139   :  { %v256_v52 = vadd.f32 1e-05, %v255_v51 }
 0x13b   :  { %5688 = vrsqrt.f32 %v256_v52  ;;  %v5088_v52 = vld [vmem:[%s7279_s12 + $0x3] ss:$0 sm:$0xff] }
 0x148   :  { %v5689_v57 = vpop.eup %5688 }
 0x149   :  { %v258_v58 = vmul.f32 %v5689_v57, %v216_v55 }
 0x14b   :  { %v262_v59 = vrot.slane %v258_v58, %v6568_v56 }
 0x14d   :  { %v263_v61 = vmul.f32 %v262_v59, %v241_v37  ;;  %v264_v62 = vmul.f32 %v262_v59, %v242_v38 }
 0x14f   :  { %v269_v63 = vadd.f32 %v5082_v60, %v263_v61  ;;  %v270_v2 = vadd.f32 %v5082_v60, %v264_v62 }
 0x151   :  { %v271_v3 = vmul.f32 0.01, %v269_v63  ;;  %v272_v4 = vmul.f32 0.01, %v270_v2 }
 0x153   :  { %v274_v5 = vmax.f32 %v270_v2, %v272_v4  ;;  %v273_v8 = vmax.f32 %v269_v63, %v271_v3  ;;  %v5684_v2 = vld [vmem:[#allocation5 + $0x18] sm:$0xff]   ;;  %v5685_v3 = vld [vmem:[#allocation5 + $0x10] sm:$0xff]   ;;  %v5686_v4 = vld [vmem:[#allocation5 + $0x8] sm:$0xff]  }
 0x154   :  { %5630 = vmatpush3.bf16.msra.mxu0 %v5684_v2 }
 0x155   :  { %v283_v9 = vpack.c.bf16 %v274_v5, %v273_v8  ;;  %5631 = vmatprep.subr.bf16.mxu0 %v7281_v0  ;;  %v5687_v5 = vld [vmem:[#allocation5] sm:$0xff]  }
 0x157   :  { %5614 = vmatmul.mubr.msk.bf16.vlgmr.msra.gmra.mxu1 %vm230_vm1, %v283_v9 }
 0x158   :  { %5625 = vmatprep.mubr.msk.bf16.mxu1 %vm6389_vm0, %v7281_v0  ;;  %5618 = vmatpush3.bf16.msra.mxu1 %v5680_v10 }
 0x159   :  { %5619 = vmatprep.subr.bf16.mxu1 %v7281_v0  ;;  %5632 = vmatpush3.bf16.msra.mxu0 %v5685_v3 }
 0x15a   :  { %5633 = vmatprep.subr.bf16.mxu0 %v7281_v0 }
 0x15c   :  { %5620 = vmatpush3.bf16.msra.mxu1 %v5681_v11 }
 0x15d   :  { %5621 = vmatprep.subr.bf16.mxu1 %v7281_v0  ;;  %5634 = vmatpush3.bf16.msra.mxu0 %v5686_v4 }
 0x15e   :  { %5635 = vmatprep.subr.bf16.mxu0 %v7281_v0 }
 0x160   :  { %5622 = vmatpush3.bf16.msra.mxu1 %v5682_v12 }
 0x161   :  { %5623 = vmatprep.subr.bf16.mxu1 %v7281_v0  ;;  %5636 = vmatpush3.bf16.msra.mxu0 %v5687_v5 }
 0x164   :  { %5624 = vmatpush3.bf16.msra.mxu1 %v5683_v13 }
 0x217   :  { %v345_v14 = vpop.f32.mrf.mxu1 }
 0x218   :  { %v354_v16 = vmul.f32 %v345_v14, %v6552_v19 }
 0x219   :  { %v5615_v15 = vpop.f32.mrf.mxu1 }
 0x21a   :  { %v356_v21 = vsel %vm230_vm1, %v354_v16, 0.0 }
 0x21b   :  { %v348_v17 = vpop.f32.mrf.mxu1 }
 0x21c   :  { %v355_v18 = vmul.f32 %v348_v17, %v6555_v23 }
 0x21d   :  { %v5616_v20 = vpop.f32.mrf.mxu1 }
 0x21e   :  { %v357_v22 = vsel %vm230_vm1, %v355_v18, 0.0 }
 0x21f   :  { %v358_v24 = vadd.f32 %v357_v22, %v356_v21 }
 0x221   :  { %v359_v25 = vrot.slane %v358_v24, 4 }
 0x223   :  { %v360_v26 = vadd.f32 %v359_v25, %v358_v24 }
 0x225   :  { %v361_v27 = vrot.slane %v360_v26, 2 }
 0x227   :  { %v362_v28 = vadd.f32 %v361_v27, %v360_v26 }
 0x229   :  { %v363_v29 = vrot.slane %v362_v28, 1 }
 0x22b   :  { %v364_v30 = vadd.f32 %v363_v29, %v362_v28 }
 0x22d   :  { %v365_v31 = vmul.f32 0.071428575, %v364_v30 }
 0x22f   :  { %v366_v32 = vsub.f32 %v345_v14, %v365_v31  ;;  %v367_v33 = vsub.f32 %v348_v17, %v365_v31 }
 0x231   :  { %v368_v34 = vmul.f32 %v366_v32, %v354_v16  ;;  %v369_v35 = vmul.f32 %v367_v33, %v355_v18 }
 0x233   :  { %v370_v36 = vsel %vm230_vm1, %v368_v34, 0.0  ;;  %v371_v37 = vsel %vm230_vm1, %v369_v35, 0.0 }
 0x234   :  { %v372_v38 = vadd.f32 %v371_v37, %v370_v36 }
 0x236   :  { %v373_v39 = vrot.slane %v372_v38, 4 }
 0x238   :  { %v374_v40 = vadd.f32 %v373_v39, %v372_v38 }
 0x23a   :  { %v375_v41 = vrot.slane %v374_v40, 2 }
 0x23c   :  { %v376_v42 = vadd.f32 %v375_v41, %v374_v40 }
 0x23e   :  { %v377_v43 = vrot.slane %v376_v42, 1 }
 0x240   :  { %v378_v44 = vadd.f32 %v377_v43, %v376_v42  ;;  %v477_v42 = vld [vmem:[%s7279_s12 + $0x4] sm:$0x1] }
 0x242   :  { %v379_v45 = vmul.f32 0.071428575, %v378_v44 }
 0x244   :  { %v380_v46 = vmax.f32 %v379_v45, 0.0 }
 0x246   :  { %v381_v47 = vadd.f32 1e-05, %v380_v46  ;;  %v5094_v46 = vld [vmem:[%s7279_s12 + $0x5] ss:$0 sm:$0xff] }
 0x248   :  { %5690 = vrsqrt.f32 %v381_v47 }
 0x255   :  { %v5691_v49 = vpop.eup %5690 }
 0x256   :  { %v383_v50 = vmul.f32 %v5691_v49, %v352_v48 }
 0x258   :  { %v387_v51 = vrot.slane %v383_v50, %v6568_v56 }
 0x25a   :  { %v388_v53 = vmul.f32 %v387_v51, %v366_v32  ;;  %v389_v55 = vmul.f32 %v387_v51, %v367_v33 }
 0x25c   :  { %v394_v57 = vadd.f32 %v5088_v52, %v388_v53  ;;  %v395_v58 = vadd.f32 %v5088_v52, %v389_v55 }
 0x25e   :  { %v396_v59 = vmul.f32 0.01, %v394_v57  ;;  %v397_v60 = vmul.f32 0.01, %v395_v58 }
 0x260   :  { %v398_v61 = vmax.f32 %v394_v57, %v396_v59  ;;  %v399_v62 = vmax.f32 %v395_v58, %v397_v60 }
 0x262   :  { %v6605_v63 = vpack.c.bf16 %v399_v62, %v398_v61 }
 0x264   :  { %5626 = vmatmul.mubr.msk.bf16.vlgmr.msra.gmra.mxu1 %vm230_vm1, %v6605_v63 }
 0x324   :  { %v470_v8 = vpop.f32.mrf.mxu1 }
 0x325   :  { %v479_v10 = vmul.f32 %v470_v8, %v6552_v19 }
 0x326   :  { %v5627_v9 = vpop.f32.mrf.mxu1 }
 0x327   :  { %v481_v14 = vsel %vm230_vm1, %v479_v10, 0.0 }
 0x328   :  { %v473_v11 = vpop.f32.mrf.mxu1 }
 0x329   :  { %v480_v12 = vmul.f32 %v473_v11, %v6555_v23 }
 0x32a   :  { %v5628_v13 = vpop.f32.mrf.mxu1 }
 0x32b   :  { %v482_v15 = vsel %vm230_vm1, %v480_v12, 0.0 }
 0x32c   :  { %v483_v16 = vadd.f32 %v482_v15, %v481_v14 }
 0x32e   :  { %v484_v17 = vrot.slane %v483_v16, 4 }
 0x330   :  { %v485_v18 = vadd.f32 %v484_v17, %v483_v16 }
 0x332   :  { %v486_v20 = vrot.slane %v485_v18, 2 }
 0x334   :  { %v487_v21 = vadd.f32 %v486_v20, %v485_v18 }
 0x336   :  { %v488_v22 = vrot.slane %v487_v21, 1 }
 0x338   :  { %v489_v24 = vadd.f32 %v488_v22, %v487_v21 }
 0x33a   :  { %v490_v25 = vmul.f32 0.071428575, %v489_v24 }
 0x33c   :  { %v491_v26 = vsub.f32 %v470_v8, %v490_v25  ;;  %v492_v27 = vsub.f32 %v473_v11, %v490_v25 }
 0x33e   :  { %v493_v28 = vmul.f32 %v491_v26, %v479_v10  ;;  %v494_v29 = vmul.f32 %v492_v27, %v480_v12 }
 0x340   :  { %v495_v30 = vsel %vm230_vm1, %v493_v28, 0.0  ;;  %v496_v31 = vsel %vm230_vm1, %v494_v29, 0.0 }
 0x341   :  { %v497_v32 = vadd.f32 %v496_v31, %v495_v30 }
 0x343   :  { %v498_v33 = vrot.slane %v497_v32, 4 }
 0x345   :  { %v499_v34 = vadd.f32 %v498_v33, %v497_v32 }
 0x347   :  { %v500_v35 = vrot.slane %v499_v34, 2 }
 0x349   :  { %v501_v36 = vadd.f32 %v500_v35, %v499_v34 }
 0x34b   :  { %v502_v37 = vrot.slane %v501_v36, 1 }
 0x34d   :  { %v503_v38 = vadd.f32 %v502_v37, %v501_v36 }
 0x34f   :  { %v504_v39 = vmul.f32 0.071428575, %v503_v38 }
 0x351   :  { %v505_v40 = vmax.f32 %v504_v39, 0.0 }
 0x353   :  { %v506_v41 = vadd.f32 1e-05, %v505_v40 }
 0x355   :  { %5692 = vrsqrt.f32 %v506_v41 }
 0x362   :  { %v5693_v43 = vpop.eup %5692 }
 0x363   :  { %v508_v44 = vmul.f32 %v5693_v43, %v477_v42 }
 0x365   :  { %v512_v45 = vrot.slane %v508_v44, %v6568_v56 }
 0x367   :  { %v513_v47 = vmul.f32 %v512_v45, %v491_v26  ;;  %v514_v48 = vmul.f32 %v512_v45, %v492_v27 }
 0x369   :  { %v519_v49 = vadd.f32 %v5094_v46, %v513_v47  ;;  %v520_v50 = vadd.f32 %v5094_v46, %v514_v48 }
 0x36b   :  { %v521_v51 = vmul.f32 0.01, %v519_v49  ;;  %v522_v52 = vmul.f32 0.01, %v520_v50 }
 0x36d   :  { %v523_v53 = vmax.f32 %v519_v49, %v521_v51  ;;  %v524_v55 = vmax.f32 %v520_v50, %v522_v52 }
 0x36f   :  { %v533_v57 = vpack.c.bf16 %v524_v55, %v523_v53 }
 0x371   :  { %5638 = vmatmul.mubr.msk.bf16.vlgmr.msra.gmra.mxu0 %vm230_vm1, %v533_v57 }
 0x372   :  { %6330 = shalt.err (!%p6327_p5)  }
 0x373   :  { %93 = dma.hbm_to_vmem [thread:$0]  %s7273_s6, 8192, %s91_s18, [#allocation4] }
 0x374   :  { %s6339_s23 = scalar_lea.vmem %s103_s3, 32768  ;;  %p6344_p7 = scmp.lt.s32.totalorder %s103_s3, %s103_s3 }
 0x375   :  { %p6340_p6 = scmp.ne.s32.totalorder %s103_s3, %s6339_s23  ;;  %p6345_p8 = scmp.lt.s32.totalorder %s6339_s23, %s6339_s23 }
 0x377   :  { %p6346_p9 = por %p6345_p8, %p6344_p7 }
 0x379   :  { %p6347_p10 = pnand %p6346_p9, %p6340_p6 }
 0x37b   :  { %6350 = shalt.err (!%p6347_p10)  }
 0x37c   :  { %105 = dma.hbm_to_vmem [thread:$0]  %s7274_s7, 32768, %s103_s3, [#allocation4 + $0x1]  ;;  %v602_v29 = vld [vmem:[%s7279_s12 + $0x6] sm:$0x1]  ;;  %v5100_v33 = vld [vmem:[%s7279_s12 + $0x7] ss:$0 sm:$0xff] }
 0x431   :  { %v595_v58 = vpop.f32.mrf.mxu0 }
 0x432   :  { %v604_v61 = vmul.f32 %v595_v58, %v6552_v19 }
 0x433   :  { %v5639_v59 = vpop.f32.mrf.mxu0 }
 0x435   :  { %v598_v60 = vpop.f32.mrf.mxu0 }
 0x436   :  { %v605_v62 = vmul.f32 %v598_v60, %v6555_v23 }
 0x437   :  { %v5640_v2 = vpop.f32.mrf.mxu0 }
 0x438   :  { %v606_v3 = vadd.f32 %v605_v62, %v604_v61 }
 0x43a   :  { %v607_v4 = vrot.slane %v606_v3, 4 }
 0x43c   :  { %v608_v5 = vadd.f32 %v607_v4, %v606_v3 }
 0x43e   :  { %v609_v8 = vrot.slane %v608_v5, 2 }
 0x440   :  { %v610_v9 = vadd.f32 %v609_v8, %v608_v5 }
 0x442   :  { %v611_v10 = vrot.slane %v610_v9, 1 }
 0x444   :  { %v612_v11 = vadd.f32 %v611_v10, %v610_v9 }
 0x446   :  { %v613_v12 = vmul.f32 0.071428575, %v612_v11 }
 0x448   :  { %v614_v13 = vsub.f32 %v595_v58, %v613_v12  ;;  %v615_v14 = vsub.f32 %v598_v60, %v613_v12 }
 0x44a   :  { %v616_v15 = vmul.f32 %v614_v13, %v604_v61  ;;  %v617_v16 = vmul.f32 %v615_v14, %v605_v62 }
 0x44c   :  { %v618_v17 = vadd.f32 %v617_v16, %v616_v15 }
 0x44e   :  { %v619_v18 = vrot.slane %v618_v17, 4 }
 0x450   :  { %v620_v20 = vadd.f32 %v619_v18, %v618_v17 }
 0x452   :  { %v621_v21 = vrot.slane %v620_v20, 2 }
 0x454   :  { %v622_v22 = vadd.f32 %v621_v21, %v620_v20 }
 0x456   :  { %v623_v24 = vrot.slane %v622_v22, 1 }
 0x458   :  { %v624_v25 = vadd.f32 %v623_v24, %v622_v22 }
 0x45a   :  { %v625_v26 = vmul.f32 0.071428575, %v624_v25 }
 0x45c   :  { %v626_v27 = vmax.f32 %v625_v26, 0.0 }
 0x45e   :  { %v627_v28 = vadd.f32 1e-05, %v626_v27 }
 0x460   :  { %5694 = vrsqrt.f32 %v627_v28 }
 0x46d   :  { %v5695_v30 = vpop.eup %5694 }
 0x46e   :  { %v629_v31 = vmul.f32 %v5695_v30, %v602_v29 }
 0x470   :  { %v633_v32 = vrot.slane %v629_v31, %v6568_v56 }
 0x472   :  { %v634_v34 = vmul.f32 %v633_v32, %v614_v13  ;;  %v635_v35 = vmul.f32 %v633_v32, %v615_v14 }
 0x474   :  { %v6641_v36 = vadd.f32 %v5100_v33, %v634_v34  ;;  %v6643_v37 = vadd.f32 %v5100_v33, %v635_v35 }
 0x476   :  { %v6646_v38 = vmul.f32 0.01, %v6641_v36  ;;  %v6649_v39 = vmul.f32 0.01, %v6643_v37 }
 0x478   :  { %v644_v40 = vmax.f32 %v6641_v36, %v6646_v38  ;;  %v645_v41 = vmax.f32 %v6643_v37, %v6649_v39 }
 0x479   :  { %6375 = dma.done.wait [#allocation4], 8192 }
 0x47a   :  { %6376 = vsyncadd [#allocation4], 4294959104  ;;  %1067 = vmatprep.mubr.bf16.mxu1 %v7283_v1  ;;  %1110 = vmatprep.mubr.bf16.mxu0 %v7283_v1  ;;  %vm1616_vm2 = vcmp.gt.f32.partialorder %v6501_v6, 0.0  ;;  %vm1617_vm3 = vcmp.gt.f32.partialorder %v6507_v7, 0.0  ;;  %v706_v44 = vld [vmem:[#allocation2 + $0x1c0] sm:$0xff]  ;;  %v707_v46 = vld [vmem:[#allocation2 + $0x1c8] sm:$0xff] }
 0x47b   :  { %5696 = vset.pattern.permute.xlu0 %v7283_v1  ;;  %v1618_v42 = vsel %vm1616_vm2, 1, %v7283_v1  ;;  %v1619_v43 = vsel %vm1617_vm3, 1, %v7283_v1  ;;  %v710_v45 = vld [vmem:[#allocation2 + $0x1e0] sm:$0xff]  ;;  %v711_v48 = vld [vmem:[#allocation2 + $0x1e8] sm:$0xff]  ;;  %v693_v36 = vld [vmem:[#allocation2 + $0x158] sm:$0xff] }
 0x47c   :  { %1621 = vperm.xlu0 %5696, %v1618_v42   ;;  %v5158_v47 = vcombine.high %v706_v44, %v710_v45  ;;  %v5157_v49 = vcombine.low %v706_v44, %v710_v45  ;;  %v698_v50 = vld [vmem:[#allocation2 + $0x180] sm:$0xff]  ;;  %v5160_v52 = vcombine.high %v707_v46, %v711_v48  ;;  %v5159_v6 = vcombine.low %v707_v46, %v711_v48  ;;  %v699_v7 = vld [vmem:[#allocation2 + $0x188] sm:$0xff]  ;;  %v697_v38 = vld [vmem:[#allocation2 + $0x178] sm:$0xff] }
 0x47d   :  { %v702_v51 = vld [vmem:[#allocation2 + $0x1a0] sm:$0xff]  ;;  %v703_v55 = vld [vmem:[#allocation2 + $0x1a8] sm:$0xff] }
 0x47e   :  { %v5150_v53 = vcombine.high %v698_v50, %v702_v51  ;;  %v690_v57 = vld [vmem:[#allocation2 + $0x140] sm:$0xff]  ;;  %1035 = vmatprep.subr.bf16.mxu1 %v5158_v47  ;;  %v5152_v58 = vcombine.high %v699_v7, %v703_v55  ;;  %v691_v60 = vld [vmem:[#allocation2 + $0x148] sm:$0xff]  ;;  %1078 = vmatprep.subr.bf16.mxu0 %v5160_v52  ;;  %v5149_v62 = vcombine.low %v698_v50, %v702_v51 }
 0x47f   :  { %v694_v59 = vld [vmem:[#allocation2 + $0x160] sm:$0xff]  ;;  %v695_v61 = vld [vmem:[#allocation2 + $0x168] sm:$0xff]  ;;  %1036 = vmatpush1.bf16.msra.mxu1 %v5157_v49  ;;  %1079 = vmatpush1.bf16.msra.mxu0 %v5159_v6  ;;  %v5151_v2 = vcombine.low %v699_v7, %v703_v55  ;;  %v708_v7 = vld [vmem:[#allocation2 + $0x1d0] sm:$0xff] }
 0x480   :  { %1624 = vperm.xlu0 %5696, %v1619_v43   ;;  %1037 = vmatprep.subr.bf16.mxu1 %v5150_v53  ;;  %v5142_v3 = vcombine.high %v690_v57, %v694_v59  ;;  %v5144_v4 = vcombine.high %v691_v60, %v695_v61  ;;  %v682_v5 = vld [vmem:[#allocation2 + $0x100] sm:$0xff]  ;;  %v683_v9 = vld [vmem:[#allocation2 + $0x108] sm:$0xff]  ;;  %v5141_v11 = vcombine.low %v690_v57, %v694_v59  ;;  %v712_v55 = vld [vmem:[#allocation2 + $0x1f0] sm:$0xff] }
 0x481   :  { %1080 = vmatprep.subr.bf16.mxu0 %v5152_v58  ;;  %v686_v8 = vld [vmem:[#allocation2 + $0x120] sm:$0xff]  ;;  %v687_v10 = vld [vmem:[#allocation2 + $0x128] sm:$0xff]  ;;  %v5143_v12 = vcombine.low %v691_v60, %v695_v61  ;;  %v709_v57 = vld [vmem:[#allocation2 + $0x1d8] sm:$0xff]  ;;  %v5162_v61 = vcombine.high %v708_v7, %v712_v55 }
 0x482   :  { %v5134_v13 = vcombine.high %v682_v5, %v686_v8  ;;  %v5136_v14 = vcombine.high %v683_v9, %v687_v10  ;;  %v674_v15 = vld [vmem:[#allocation2 + $0xc0] sm:$0xff]  ;;  %v675_v17 = vld [vmem:[#allocation2 + $0xc8] sm:$0xff]  ;;  %v5133_v20 = vcombine.low %v682_v5, %v686_v8  ;;  %v5135_v21 = vcombine.low %v683_v9, %v687_v10  ;;  %v713_v58 = vld [vmem:[#allocation2 + $0x1f8] sm:$0xff] }
 0x483   :  { %1038 = vmatpush1.bf16.msra.mxu1 %v5149_v62  ;;  %1081 = vmatpush1.bf16.msra.mxu0 %v5151_v2  ;;  %v678_v16 = vld [vmem:[#allocation2 + $0xe0] sm:$0xff]  ;;  %v679_v18 = vld [vmem:[#allocation2 + $0xe8] sm:$0xff]  ;;  %v5164_v62 = vcombine.high %v709_v57, %v713_v58  ;;  %v700_v2 = vld [vmem:[#allocation2 + $0x190] sm:$0xff]  ;;  %v5161_v9 = vcombine.low %v708_v7, %v712_v55  ;;  %v5163_v10 = vcombine.low %v709_v57, %v713_v58 }
 0x484   :  { %1039 = vmatprep.subr.bf16.mxu1 %v5142_v3  ;;  %1082 = vmatprep.subr.bf16.mxu0 %v5144_v4  ;;  %v5126_v22 = vcombine.high %v674_v15, %v678_v16  ;;  %v5128_v24 = vcombine.high %v675_v17, %v679_v18  ;;  %v666_v25 = vld [vmem:[#allocation2 + $0x80] sm:$0xff]  ;;  %v667_v27 = vld [vmem:[#allocation2 + $0x88] sm:$0xff]  ;;  %v5125_v29 = vcombine.low %v674_v15, %v678_v16  ;;  %v704_v3 = vld [vmem:[#allocation2 + $0x1b0] sm:$0xff] }
 0x485   :  { %v670_v26 = vld [vmem:[#allocation2 + $0xa0] sm:$0xff]  ;;  %v671_v28 = vld [vmem:[#allocation2 + $0xa8] sm:$0xff]  ;;  %v5127_v30 = vcombine.low %v675_v17, %v679_v18  ;;  %v6668_v4 = vpack.c.bf16 %v645_v41, %v644_v40  ;;  %v701_v5 = vld [vmem:[#allocation2 + $0x198] sm:$0xff]  ;;  %v5153_v37 = vcombine.low %v700_v2, %v704_v3  ;;  %v5148_v41 = vcombine.high %v693_v36, %v697_v38 }
 0x486   :  { %v5118_v31 = vcombine.high %v666_v25, %v670_v26  ;;  %v5120_v32 = vcombine.high %v667_v27, %v671_v28  ;;  %v658_v33 = vld [vmem:[#allocation2 + $0x40] sm:$0xff]  ;;  %v659_v35 = vld [vmem:[#allocation2 + $0x48] sm:$0xff]  ;;  %v5117_v43 = vcombine.low %v666_v25, %v670_v26  ;;  %v5119_v44 = vcombine.low %v667_v27, %v671_v28  ;;  %v705_v8 = vld [vmem:[#allocation2 + $0x1b8] sm:$0xff] }
 0x487   :  { %1040 = vmatpush1.bf16.msra.mxu1 %v5141_v11  ;;  %1083 = vmatpush1.bf16.msra.mxu0 %v5143_v12  ;;  %v662_v34 = vld [vmem:[#allocation2 + $0x60] sm:$0xff]  ;;  %v663_v42 = vld [vmem:[#allocation2 + $0x68] sm:$0xff]  ;;  %v5154_v11 = vcombine.high %v700_v2, %v704_v3  ;;  %v5156_v12 = vcombine.high %v701_v5, %v705_v8  ;;  %v5155_v39 = vcombine.low %v701_v5, %v705_v8  ;;  %v684_v15 = vld [vmem:[#allocation2 + $0x110] sm:$0xff] }
 0x488   :  { %1041 = vmatprep.subr.bf16.mxu1 %v5134_v13  ;;  %1084 = vmatprep.subr.bf16.mxu0 %v5136_v14  ;;  %v5110_v45 = vcombine.high %v658_v33, %v662_v34  ;;  %v5112_v46 = vcombine.high %v659_v35, %v663_v42  ;;  %v650_v47 = vld [vmem:[#allocation2] sm:$0xff]  ;;  %v651_v49 = vld [vmem:[#allocation2 + $0x8] sm:$0xff]  ;;  %v5109_v51 = vcombine.low %v658_v33, %v662_v34  ;;  %v692_v13 = vld [vmem:[#allocation2 + $0x150] sm:$0xff] }
 0x489   :  { %v654_v48 = vld [vmem:[#allocation2 + $0x20] sm:$0xff]  ;;  %v655_v50 = vld [vmem:[#allocation2 + $0x28] sm:$0xff]  ;;  %v5111_v52 = vcombine.low %v659_v35, %v663_v42  ;;  %v696_v14 = vld [vmem:[#allocation2 + $0x170] sm:$0xff] }
 0x48a   :  { %v5102_v6 = vcombine.high %v650_v47, %v654_v48  ;;  %v5104_v53 = vcombine.high %v651_v49, %v655_v50  ;;  %v5101_v59 = vcombine.low %v650_v47, %v654_v48  ;;  %v5103_v60 = vcombine.low %v651_v49, %v655_v50  ;;  %v688_v16 = vld [vmem:[#allocation2 + $0x130] sm:$0xff]  ;;  %v685_v17 = vld [vmem:[#allocation2 + $0x118] sm:$0xff] }
 0x48b   :  { %1042 = vmatpush1.bf16.msra.mxu1 %v5133_v20  ;;  %1085 = vmatpush1.bf16.msra.mxu0 %v5135_v21  ;;  %v5146_v40 = vcombine.high %v692_v13, %v696_v14  ;;  %v689_v18 = vld [vmem:[#allocation2 + $0x138] sm:$0xff]  ;;  %v5145_v20 = vcombine.low %v692_v13, %v696_v14  ;;  %v5147_v21 = vcombine.low %v693_v36, %v697_v38  ;;  %v676_v25 = vld [vmem:[#allocation2 + $0xd0] sm:$0xff] }
 0x48c   :  { %1043 = vmatprep.subr.bf16.mxu1 %v5126_v22  ;;  %1086 = vmatprep.subr.bf16.mxu0 %v5128_v24  ;;  %v5138_v22 = vcombine.high %v684_v15, %v688_v16  ;;  %v5140_v24 = vcombine.high %v685_v17, %v689_v18  ;;  %v680_v26 = vld [vmem:[#allocation2 + $0xf0] sm:$0xff]  ;;  %v677_v27 = vld [vmem:[#allocation2 + $0xd8] sm:$0xff] }
 0x48d   :  { %v681_v28 = vld [vmem:[#allocation2 + $0xf8] sm:$0xff]  ;;  %v668_v33 = vld [vmem:[#allocation2 + $0x90] sm:$0xff] }
 0x48e   :  { %v672_v34 = vld [vmem:[#allocation2 + $0xb0] sm:$0xff]  ;;  %v669_v35 = vld [vmem:[#allocation2 + $0x98] sm:$0xff] }
 0x48f   :  { %1044 = vmatpush1.bf16.msra.mxu1 %v5125_v29  ;;  %1087 = vmatpush1.bf16.msra.mxu0 %v5127_v30  ;;  %v5137_v29 = vcombine.low %v684_v15, %v688_v16  ;;  %v5139_v30 = vcombine.low %v685_v17, %v689_v18  ;;  %v673_v42 = vld [vmem:[#allocation2 + $0xb8] sm:$0xff]  ;;  %v660_v47 = vld [vmem:[#allocation2 + $0x50] sm:$0xff] }
 0x490   :  { %1045 = vmatprep.subr.bf16.mxu1 %v5118_v31  ;;  %1088 = vmatprep.subr.bf16.mxu0 %v5120_v32  ;;  %v5130_v31 = vcombine.high %v676_v25, %v680_v26  ;;  %v5132_v32 = vcombine.high %v677_v27, %v681_v28  ;;  %v664_v48 = vld [vmem:[#allocation2 + $0x70] sm:$0xff]  ;;  %v661_v49 = vld [vmem:[#allocation2 + $0x58] sm:$0xff] }
 0x491   :  { %v665_v50 = vld [vmem:[#allocation2 + $0x78] sm:$0xff]  ;;  %v652_v7 = vld [vmem:[#allocation2 + $0x10] sm:$0xff] }
 0x492   :  { %v656_v55 = vld [vmem:[#allocation2 + $0x30] sm:$0xff]  ;;  %v653_v57 = vld [vmem:[#allocation2 + $0x18] sm:$0xff] }
 0x493   :  { %1046 = vmatpush1.bf16.msra.mxu1 %v5117_v43  ;;  %1089 = vmatpush1.bf16.msra.mxu0 %v5119_v44  ;;  %v5129_v43 = vcombine.low %v676_v25, %v680_v26  ;;  %v5131_v44 = vcombine.low %v677_v27, %v681_v28  ;;  %v657_v58 = vld [vmem:[#allocation2 + $0x38] sm:$0xff]  ;;  %v5105_v2 = vcombine.low %v652_v7, %v656_v55 }
 0x494   :  { %1047 = vmatprep.subr.bf16.mxu1 %v5110_v45  ;;  %1090 = vmatprep.subr.bf16.mxu0 %v5112_v46  ;;  %v5122_v45 = vcombine.high %v668_v33, %v672_v34  ;;  %v5124_v46 = vcombine.high %v669_v35, %v673_v42  ;;  %v5107_v3 = vcombine.low %v653_v57, %v657_v58 }
 0x497   :  { %1048 = vmatpush1.bf16.msra.mxu1 %v5109_v51  ;;  %1091 = vmatpush1.bf16.msra.mxu0 %v5111_v52  ;;  %v5121_v51 = vcombine.low %v668_v33, %v672_v34  ;;  %v5123_v52 = vcombine.low %v669_v35, %v673_v42 }
 0x498   :  { %1049 = vmatprep.subr.bf16.mxu1 %v5102_v6  ;;  %1092 = vmatprep.subr.bf16.mxu0 %v5104_v53  ;;  %v5114_v6 = vcombine.high %v660_v47, %v664_v48  ;;  %v5116_v53 = vcombine.high %v661_v49, %v665_v50 }
 0x49b   :  { %1050 = vmatpush1.bf16.msra.mxu1 %v5101_v59  ;;  %1093 = vmatpush1.bf16.msra.mxu0 %v5103_v60  ;;  %v5113_v59 = vcombine.low %v660_v47, %v664_v48  ;;  %v5115_v60 = vcombine.low %v661_v49, %v665_v50 }
 0x49c   :  { %1121 = vmatprep.subr.bf16.mxu1 %v5162_v61  ;;  %1164 = vmatprep.subr.bf16.mxu0 %v5164_v62  ;;  %v5106_v61 = vcombine.high %v652_v7, %v656_v55  ;;  %v5108_v62 = vcombine.high %v653_v57, %v657_v58 }
 0x49e   :  { %1068 = vmatmul.mubr.bf16.vlgmr.msra.gmra.mxu1 %v6668_v4  ;;  %1111 = vmatmul.mubr.bf16.vlgmr.msra.gmra.mxu0 %v6668_v4 }
 0x49f   :  { %1122 = vmatpush1.bf16.msra.mxu1 %v5161_v9  ;;  %1165 = vmatpush1.bf16.msra.mxu0 %v5163_v10 }
 0x4a0   :  { %1123 = vmatprep.subr.bf16.mxu1 %v5154_v11  ;;  %1166 = vmatprep.subr.bf16.mxu0 %v5156_v12 }
 0x4a1   :  { %1153 = vmatprep.mubr.bf16.mxu1 %v7283_v1  ;;  %1196 = vmatprep.mubr.bf16.mxu0 %v7283_v1 }
 0x4a3   :  { %1124 = vmatpush1.bf16.msra.mxu1 %v5153_v37  ;;  %1167 = vmatpush1.bf16.msra.mxu0 %v5155_v39 }
 0x4a4   :  { %1125 = vmatprep.subr.bf16.mxu1 %v5146_v40  ;;  %1168 = vmatprep.subr.bf16.mxu0 %v5148_v41 }
 0x4a7   :  { %1126 = vmatpush1.bf16.msra.mxu1 %v5145_v20  ;;  %1169 = vmatpush1.bf16.msra.mxu0 %v5147_v21 }
 0x4a8   :  { %1127 = vmatprep.subr.bf16.mxu1 %v5138_v22  ;;  %1170 = vmatprep.subr.bf16.mxu0 %v5140_v24 }
 0x4ab   :  { %1128 = vmatpush1.bf16.msra.mxu1 %v5137_v29  ;;  %1171 = vmatpush1.bf16.msra.mxu0 %v5139_v30 }
 0x4ac   :  { %1129 = vmatprep.subr.bf16.mxu1 %v5130_v31  ;;  %1172 = vmatprep.subr.bf16.mxu0 %v5132_v32 }
 0x4af   :  { %1130 = vmatpush1.bf16.msra.mxu1 %v5129_v43  ;;  %1173 = vmatpush1.bf16.msra.mxu0 %v5131_v44 }
 0x4b0   :  { %1131 = vmatprep.subr.bf16.mxu1 %v5122_v45  ;;  %1174 = vmatprep.subr.bf16.mxu0 %v5124_v46 }
 0x4b3   :  { %1132 = vmatpush1.bf16.msra.mxu1 %v5121_v51  ;;  %1175 = vmatpush1.bf16.msra.mxu0 %v5123_v52 }
 0x4b4   :  { %1133 = vmatprep.subr.bf16.mxu1 %v5114_v6  ;;  %1176 = vmatprep.subr.bf16.mxu0 %v5116_v53 }
 0x4b7   :  { %1134 = vmatpush1.bf16.msra.mxu1 %v5113_v59  ;;  %1177 = vmatpush1.bf16.msra.mxu0 %v5115_v60 }
 0x4b8   :  { %1135 = vmatprep.subr.bf16.mxu1 %v5106_v61  ;;  %1178 = vmatprep.subr.bf16.mxu0 %v5108_v62 }
 0x4bb   :  { %1136 = vmatpush1.bf16.msra.mxu1 %v5105_v2  ;;  %1179 = vmatpush1.bf16.msra.mxu0 %v5107_v3 }
 0x4be   :  { %1154 = vmatmul.mubr.bf16.vlgmr.msra.gmra.mxu1 %v6668_v4  ;;  %1197 = vmatmul.mubr.bf16.vlgmr.msra.gmra.mxu0 %v6668_v4 }
 0x55e   :  { %v1069_v5 = vpop.f32.mrf.mxu1  ;;  %v1112_v8 = vpop.f32.mrf.mxu0 }
 0x55f   :  { %v1211_v12 = vmul.f32 %v1069_v5, %v6552_v19  ;;  %v1213_v36 = vmul.f32 %v1112_v8, %v6552_v19 }
 0x560   :  { %v1071_v9 = vpop.f32.mrf.mxu1  ;;  %v1114_v10 = vpop.f32.mrf.mxu0 }
 0x561   :  { %v1212_v39 = vmul.f32 %v1071_v9, %v6552_v19  ;;  %v1214_v15 = vmul.f32 %v1114_v10, %v6552_v19 }
 0x562   :  { %v1073_v11 = vpop.f32.mrf.mxu1  ;;  %v1116_v14 = vpop.f32.mrf.mxu0 }
 0x563   :  { %v1219_v13 = vmul.f32 %v1073_v11, %v6555_v23  ;;  %v1221_v38 = vmul.f32 %v1116_v14, %v6555_v23 }
 0x564   :  { %v1075_v37 = vpop.f32.mrf.mxu1  ;;  %v1118_v41 = vpop.f32.mrf.mxu0 }
 0x565   :  { %v1227_v40 = vadd.f32 %v1219_v13, %v1211_v12  ;;  %v1220_v4 = vmul.f32 %v1075_v37, %v6555_v23  ;;  %v1241_v16 = vadd.f32 %v1221_v38, %v1213_v36  ;;  %v1222_v17 = vmul.f32 %v1118_v41, %v6555_v23 }
 0x567   :  { %v1228_v18 = vrot.slane %v1227_v40, 4  ;;  %v1234_v20 = vadd.f32 %v1220_v4, %v1212_v39  ;;  %v1242_v21 = vrot.slane %v1241_v16, 4  ;;  %v1248_v22 = vadd.f32 %v1222_v17, %v1214_v15 }
 0x569   :  { %v1229_v24 = vadd.f32 %v1228_v18, %v1227_v40  ;;  %v1235_v25 = vrot.slane %v1234_v20, 4  ;;  %v1243_v26 = vadd.f32 %v1242_v21, %v1241_v16  ;;  %v1249_v27 = vrot.slane %v1248_v22, 4 }
 0x56b   :  { %v1230_v28 = vrot.slane %v1229_v24, 2  ;;  %v1236_v29 = vadd.f32 %v1235_v25, %v1234_v20  ;;  %v1244_v30 = vrot.slane %v1243_v26, 2  ;;  %v1250_v31 = vadd.f32 %v1249_v27, %v1248_v22 }
 0x56d   :  { %v1231_v32 = vadd.f32 %v1230_v28, %v1229_v24  ;;  %v1237_v33 = vrot.slane %v1236_v29, 2  ;;  %v1245_v34 = vadd.f32 %v1244_v30, %v1243_v26  ;;  %v1251_v35 = vrot.slane %v1250_v31, 2 }
 0x56f   :  { %v1232_v42 = vrot.slane %v1231_v32, 1  ;;  %v1238_v43 = vadd.f32 %v1237_v33, %v1236_v29  ;;  %v1246_v44 = vrot.slane %v1245_v34, 1  ;;  %v1252_v45 = vadd.f32 %v1251_v35, %v1250_v31 }
 0x571   :  { %v1233_v46 = vadd.f32 %v1232_v42, %v1231_v32  ;;  %v1239_v47 = vrot.slane %v1238_v43, 1  ;;  %v1247_v48 = vadd.f32 %v1246_v44, %v1245_v34  ;;  %v1253_v49 = vrot.slane %v1252_v45, 1 }
 0x573   :  { %v1283_v50 = vmul.f32 0.071428575, %v1233_v46  ;;  %v1240_v51 = vadd.f32 %v1239_v47, %v1238_v43  ;;  %v1285_v52 = vmul.f32 0.071428575, %v1247_v48  ;;  %v1254_v6 = vadd.f32 %v1253_v49, %v1252_v45 }
 0x575   :  { %v1284_v53 = vmul.f32 0.071428575, %v1240_v51  ;;  %v1286_v7 = vmul.f32 0.071428575, %v1254_v6  ;;  %v6684_v55 = vsub.f32 %v1069_v5, %v1283_v50  ;;  %v6686_v57 = vsub.f32 %v1073_v11, %v1283_v50 }
 0x576   :  { %v6692_v60 = vsub.f32 %v1112_v8, %v1285_v52  ;;  %v6694_v61 = vsub.f32 %v1116_v14, %v1285_v52 }
 0x577   :  { %v6688_v58 = vsub.f32 %v1071_v9, %v1284_v53  ;;  %v6690_v59 = vsub.f32 %v1075_v37, %v1284_v53  ;;  %v6696_v62 = vsub.f32 %v1114_v10, %v1286_v7  ;;  %v6698_v2 = vsub.f32 %v1118_v41, %v1286_v7 }
 0x578   :  { %v1307_v9 = vmul.f32 %v6684_v55, %v1211_v12  ;;  %v1315_v37 = vmul.f32 %v6686_v57, %v1219_v13  ;;  %v1309_v8 = vmul.f32 %v6692_v60, %v1213_v36  ;;  %v1317_v14 = vmul.f32 %v6694_v61, %v1221_v38 }
 0x579   :  { %v1308_v3 = vmul.f32 %v6688_v58, %v1212_v39  ;;  %v1316_v40 = vmul.f32 %v6690_v59, %v1220_v4  ;;  %v1310_v5 = vmul.f32 %v6696_v62, %v1214_v15  ;;  %v1318_v11 = vmul.f32 %v6698_v2, %v1222_v17 }
 0x57a   :  { %v1323_v39 = vadd.f32 %v1315_v37, %v1307_v9  ;;  %v1337_v4 = vadd.f32 %v1317_v14, %v1309_v8 }
 0x57b   :  { %v1330_v10 = vadd.f32 %v1316_v40, %v1308_v3  ;;  %v1344_v16 = vadd.f32 %v1318_v11, %v1310_v5 }
 0x57c   :  { %v1324_v22 = vrot.slane %v1323_v39, 4  ;;  %v1338_v24 = vrot.slane %v1337_v4, 4 }
 0x57d   :  { %v1331_v15 = vrot.slane %v1330_v10, 4  ;;  %v1345_v12 = vrot.slane %v1344_v16, 4 }
 0x57e   :  { %v6708_v41 = vpop.f32.mrf.mxu1  ;;  %v6710_v18 = vpop.f32.mrf.mxu0  ;;  %v1325_v45 = vadd.f32 %v1324_v22, %v1323_v39  ;;  %v1339_v46 = vadd.f32 %v1338_v24, %v1337_v4 }
 0x57f   :  { %v6718_v13 = vmul.f32 %v6708_v41, %v6552_v19  ;;  %v6727_v25 = vmul.f32 %v6710_v18, %v6552_v19  ;;  %v1332_v28 = vadd.f32 %v1331_v15, %v1330_v10  ;;  %v1346_v33 = vadd.f32 %v1345_v12, %v1344_v16 }
 0x580   :  { %v6712_v20 = vpop.f32.mrf.mxu1  ;;  %v6714_v17 = vpop.f32.mrf.mxu0  ;;  %v1326_v40 = vrot.slane %v1325_v45, 2  ;;  %v1340_v5 = vrot.slane %v1339_v46, 2 }
 0x581   :  { %v6737_v29 = vmul.f32 %v6712_v20, %v6552_v19  ;;  %v6747_v34 = vmul.f32 %v6714_v17, %v6552_v19  ;;  %v1333_v49 = vrot.slane %v1332_v28, 2  ;;  %v1347_v52 = vrot.slane %v1346_v33, 2 }
 0x582   :  { %v1159_v21 = vpop.f32.mrf.mxu1  ;;  %v6723_v38 = vpop.f32.mrf.mxu0  ;;  %v1327_v12 = vadd.f32 %v1326_v40, %v1325_v45  ;;  %v1341_v22 = vadd.f32 %v1340_v5, %v1339_v46 }
 0x583   :  { %v6721_v36 = vmul.f32 %v1159_v21, %v6555_v23  ;;  %v6731_v26 = vmul.f32 %v6723_v38, %v6555_v23  ;;  %v1334_v37 = vadd.f32 %v1333_v49, %v1332_v28  ;;  %v1348_v10 = vadd.f32 %v1347_v52, %v1346_v33 }
 0x584   :  { %v6733_v27 = vpop.f32.mrf.mxu1  ;;  %v1204_v32 = vpop.f32.mrf.mxu0  ;;  %v1328_v28 = vrot.slane %v1327_v12, 1  ;;  %v1342_v49 = vrot.slane %v1341_v22, 1 }
 0x585   :  { %v1255_v30 = vadd.f32 %v6721_v36, %v6718_v13  ;;  %v6743_v31 = vmul.f32 %v6733_v27, %v6555_v23  ;;  %v1269_v35 = vadd.f32 %v6731_v26, %v6727_v25  ;;  %v6752_v42 = vmul.f32 %v1204_v32, %v6555_v23 }
 0x587   :  { %v1256_v43 = vrot.slane %v1255_v30, 4  ;;  %v1262_v44 = vadd.f32 %v6743_v31, %v6737_v29  ;;  %v1270_v47 = vrot.slane %v1269_v35, 4  ;;  %v1276_v48 = vadd.f32 %v6752_v42, %v6747_v34 }
 0x589   :  { %v1257_v50 = vadd.f32 %v1256_v43, %v1255_v30  ;;  %v1263_v51 = vrot.slane %v1262_v44, 4  ;;  %v1271_v6 = vadd.f32 %v1270_v47, %v1269_v35  ;;  %v1277_v53 = vrot.slane %v1276_v48, 4 }
 0x58a   :  { %v1335_v35 = vrot.slane %v1334_v37, 1 }
 0x58b   :  { %v1258_v7 = vrot.slane %v1257_v50, 2  ;;  %v1264_v3 = vadd.f32 %v1263_v51, %v1262_v44  ;;  %v1272_v11 = vrot.slane %v1271_v6, 2  ;;  %v1278_v9 = vadd.f32 %v1277_v53, %v1276_v48 }
 0x58c   :  { %v1349_v44 = vrot.slane %v1348_v10, 1  ;;  %v1336_v52 = vadd.f32 %v1335_v35, %v1334_v37 }
 0x58d   :  { %v1259_v8 = vadd.f32 %v1258_v7, %v1257_v50  ;;  %v1265_v14 = vrot.slane %v1264_v3, 2  ;;  %v1273_v16 = vadd.f32 %v1272_v11, %v1271_v6  ;;  %v1279_v39 = vrot.slane %v1278_v9, 2 }
 0x58e   :  { %v1350_v53 = vadd.f32 %v1349_v44, %v1348_v10 }
 0x58f   :  { %v1260_v4 = vrot.slane %v1259_v8, 1  ;;  %v1266_v15 = vadd.f32 %v1265_v14, %v1264_v3  ;;  %v1274_v24 = vrot.slane %v1273_v16, 1  ;;  %v1280_v30 = vadd.f32 %v1279_v39, %v1278_v9 }
 0x590   :  { %v1382_v14 = vmul.f32 0.071428575, %v1350_v53 }
 0x591   :  { %v1261_v43 = vadd.f32 %v1260_v4, %v1259_v8  ;;  %v1267_v47 = vrot.slane %v1266_v15, 1  ;;  %v1275_v51 = vadd.f32 %v1274_v24, %v1273_v16  ;;  %v1281_v0 = vrot.slane %v1280_v30, 1 }
 0x592   :  { %v1390_v35 = vmax.f32 %v1382_v14, 0.0 }
 0x593   :  { %v1287_v1 = vmul.f32 0.071428575, %v1261_v43  ;;  %v1268_v48 = vadd.f32 %v1267_v47, %v1266_v15  ;;  %v1289_v50 = vmul.f32 0.071428575, %v1275_v51  ;;  %v1282_v33 = vadd.f32 %v1281_v0, %v1280_v30 }
 0x595   :  { %v6759_v6 = vsub.f32 %v6708_v41, %v1287_v1  ;;  %v6761_v45 = vsub.f32 %v1159_v21, %v1287_v1  ;;  %v1288_v46 = vmul.f32 0.071428575, %v1268_v48  ;;  %v6764_v7 = vsub.f32 %v6710_v18, %v1289_v50 }
 0x596   :  { %v6767_v3 = vsub.f32 %v6723_v38, %v1289_v50  ;;  %v1290_v40 = vmul.f32 0.071428575, %v1282_v33 }
 0x597   :  { %v1311_v5 = vmul.f32 %v6759_v6, %v6718_v13  ;;  %v1319_v0 = vmul.f32 %v6761_v45, %v6721_v36  ;;  %v6774_v41 = vsub.f32 %v6712_v20, %v1288_v46  ;;  %v6777_v1 = vsub.f32 %v6733_v27, %v1288_v46 }
 0x598   :  { %v1313_v18 = vmul.f32 %v6764_v7, %v6727_v25  ;;  %v1321_v21 = vmul.f32 %v6767_v3, %v6731_v26  ;;  %v6784_v38 = vsub.f32 %v6714_v17, %v1290_v40  ;;  %v6786_v11 = vsub.f32 %v1204_v32, %v1290_v40 }
 0x599   :  { %v1329_v13 = vadd.f32 %v1328_v28, %v1327_v12  ;;  %v1351_v9 = vadd.f32 %v1319_v0, %v1311_v5  ;;  %v1312_v20 = vmul.f32 %v6774_v41, %v6737_v29  ;;  %v1320_v36 = vmul.f32 %v6777_v1, %v6743_v31 }
 0x59a   :  { %v1343_v27 = vadd.f32 %v1342_v49, %v1341_v22  ;;  %v1365_v37 = vadd.f32 %v1321_v21, %v1313_v18  ;;  %v1314_v25 = vmul.f32 %v6784_v38, %v6747_v34  ;;  %v1322_v26 = vmul.f32 %v6786_v11, %v6752_v42 }
 0x59b   :  { %v1380_v17 = vmul.f32 0.071428575, %v1336_v52  ;;  %v1352_v8 = vrot.slane %v1351_v9, 4  ;;  %v1358_v32 = vadd.f32 %v1320_v36, %v1312_v20  ;;  %v1379_v39 = vmul.f32 0.071428575, %v1329_v13 }
 0x59c   :  { %v1366_v10 = vrot.slane %v1365_v37, 4  ;;  %v1372_v16 = vadd.f32 %v1322_v26, %v1314_v25  ;;  %v1381_v15 = vmul.f32 0.071428575, %v1343_v27  ;;  %v1398_v52 = vadd.f32 1e-05, %v1390_v35 }
 0x59d   :  { %v1353_v4 = vadd.f32 %v1352_v8, %v1351_v9  ;;  %v1359_v29 = vrot.slane %v1358_v32, 4  ;;  %v1388_v22 = vmax.f32 %v1380_v17, 0.0  ;;  %v1387_v47 = vmax.f32 %v1379_v39, 0.0 }
 0x59e   :  { %v1367_v12 = vadd.f32 %v1366_v10, %v1365_v37  ;;  %v1373_v31 = vrot.slane %v1372_v16, 4  ;;  %v1389_v51 = vmax.f32 %v1381_v15, 0.0 }
 0x59f   :  { %v1354_v24 = vrot.slane %v1353_v4, 2  ;;  %v1360_v30 = vadd.f32 %v1359_v29, %v1358_v32  ;;  %v1396_v49 = vadd.f32 1e-05, %v1388_v22  ;;  %v1395_v40 = vadd.f32 1e-05, %v1387_v47 }
 0x5a0   :  { %v1368_v34 = vrot.slane %v1367_v12, 2  ;;  %v1374_v43 = vadd.f32 %v1373_v31, %v1372_v16  ;;  %v1397_v18 = vadd.f32 1e-05, %v1389_v51 }
 0x5a1   :  { %v1355_v42 = vadd.f32 %v1354_v24, %v1353_v4  ;;  %v1361_v44 = vrot.slane %v1360_v30, 2  ;;  %5697 = vrsqrt.f32 %v1396_v49  ;;  %v6393_v4 = vmov 1966171168  }
 0x5a2   :  { %v1369_v48 = vadd.f32 %v1368_v34, %v1367_v12  ;;  %v1375_v28 = vrot.slane %v1374_v43, 2  ;;  %5699 = vrsqrt.f32 %v1398_v52  ;;  %v1424_v29 = vunpack.c.l.s4 %v6393_v4  ;;  %v1622_v4 = vpop.permute.xlu0 %1621 }
 0x5a3   :  { %v1356_v50 = vrot.slane %v1355_v42, 1  ;;  %v1362_v33 = vadd.f32 %v1361_v44, %v1360_v30  ;;  %5701 = vrsqrt.f32 %v1395_v40  ;;  %v5166_v40 = vld [vmem:[%s7279_s12 + $0x9] ss:$2 sm:$0xff]  ;;  %vm1626_vm4 = vcmp.eq.s32.totalorder %v1622_v4, 1 }
 0x5a4   :  { %v1370_v46 = vrot.slane %v1369_v48, 1  ;;  %v1376_v53 = vadd.f32 %v1375_v28, %v1374_v43  ;;  %5703 = vrsqrt.f32 %v1397_v18  ;;  %v1425_v12 = vunpack.c.0.s8 %v1424_v29 }
 0x5a5   :  { %v1357_v5 = vadd.f32 %v1356_v50, %v1355_v42  ;;  %v1363_v0 = vrot.slane %v1362_v33, 1  ;;  %v1501_v18 = vsub.s32 7, %v6562_v54 }
 0x5a6   :  { %v1371_v21 = vadd.f32 %v1370_v46, %v1369_v48  ;;  %v1377_v13 = vrot.slane %v1376_v53, 1  ;;  %v6797_v35 = vsub.s32 %v1425_v12, %v6562_v54 }
 0x5a7   :  { %v1383_v9 = vmul.f32 0.071428575, %v1357_v5  ;;  %v1364_v20 = vadd.f32 %v1363_v0, %v1362_v33  ;;  %v5165_v0 = vld [vmem:[%s7279_s12 + $0x8] ss:$2 sm:$0xff] }
 0x5a8   :  { %v1385_v36 = vmul.f32 0.071428575, %v1371_v21  ;;  %v1378_v27 = vadd.f32 %v1377_v13, %v1376_v53  ;;  %v6813_v13 = vsub.s32 1, %v6562_v54 }
 0x5a9   :  { %v1391_v37 = vmax.f32 %v1383_v9, 0.0  ;;  %v1384_v25 = vmul.f32 0.071428575, %v1364_v20  ;;  %v6816_v9 = vsub.s32 2, %v6562_v54  ;;  %v6819_v20 = vsub.s32 3, %v6562_v54 }
 0x5aa   :  { %v1393_v26 = vmax.f32 %v1385_v36, 0.0  ;;  %v1386_v17 = vmul.f32 0.071428575, %v1378_v27  ;;  %v1559_v36 = vrot.slane %v5166_v40, %v1501_v18  ;;  %v1489_v27 = vsub.s32 4, %v6562_v54 }
 0x5ab   :  { %v1399_v8 = vadd.f32 1e-05, %v1391_v37  ;;  %v1392_v32 = vmax.f32 %v1384_v25, 0.0  ;;  %v1493_v37 = vsub.s32 5, %v6562_v54  ;;  %v1497_v25 = vsub.s32 6, %v6562_v54 }
 0x5ac   :  { %v1401_v14 = vadd.f32 1e-05, %v1393_v26  ;;  %v1394_v10 = vmax.f32 %v1386_v17, 0.0  ;;  %v6825_v17 = vrot.slane %v5166_v40, %v6568_v56 }
 0x5ad   :  { %5705 = vrsqrt.f32 %v1399_v8  ;;  %v1400_v16 = vadd.f32 1e-05, %v1392_v32  ;;  %v6828_v8 = vrot.slane %v5166_v40, %v6813_v13  ;;  %v6831_v32 = vrot.slane %v5166_v40, %v6816_v9 }
 0x5ae   :  { %5707 = vrsqrt.f32 %v1401_v14  ;;  %v1402_v39 = vadd.f32 1e-05, %v1394_v10  ;;  %v5698_v15 = vpop.eup %5697  ;;  %v6834_v14 = vrot.slane %v5166_v40, %v6819_v20  ;;  %v6836_v10 = vrot.slane %v5166_v40, %v1489_v27 }
 0x5af   :  { %5709 = vrsqrt.f32 %v1400_v16  ;;  %v5700_v31 = vpop.eup %5699  ;;  %v6838_v16 = vrot.slane %v5166_v40, %v1493_v37 }
 0x5b0   :  { %5711 = vrsqrt.f32 %v1402_v39  ;;  %v5702_v22 = vpop.eup %5701  ;;  %v6840_v39 = vrot.slane %v5166_v40, %v1497_v25 }
 0x5b1   :  { %v5704_v24 = vpop.eup %5703  ;;  %v1419_v30 = vcombine.low %v5702_v22, %v5698_v15 }
 0x5b2   :  { %v1420_v34 = vcombine.low %v5704_v24, %v5700_v31 }
 0x5b3   :  { %v1429_v44 = vrot.slane %v1419_v30, %v6797_v35 }
 0x5b4   :  { %v1436_v51 = vrot.slane %v1420_v34, %v6797_v35 }
 0x5b6   :  { %v1451_v33 = vcombine.low %v1429_v44, %v1436_v51 }
 0x5b8   :  { %v1459_v53 = vrot.slane %v1451_v33, %v6797_v35 }
 0x5ba   :  { %v5706_v43 = vpop.eup %5705 }
 0x5bb   :  { %v5708_v47 = vpop.eup %5707 }
 0x5bc   :  { %v5710_v42 = vpop.eup %5709 }
 0x5bd   :  { %v5712_v48 = vpop.eup %5711  ;;  %v1421_v28 = vcombine.low %v5706_v43, %v5710_v42 }
 0x5be   :  { %v1422_v49 = vcombine.low %v5708_v47, %v5712_v48 }
 0x5bf   :  { %v1443_v50 = vrot.slane %v1421_v28, %v6797_v35 }
 0x5c0   :  { %v1450_v52 = vrot.slane %v1422_v49, %v6797_v35 }
 0x5c2   :  { %v1452_v46 = vcombine.low %v1443_v50, %v1450_v52 }
 0x5c4   :  { %v1466_v5 = vrot.slane %v1452_v46, %v6797_v35 }
 0x5c6   :  { %v1467_v21 = vcombine.low %v1459_v53, %v1466_v5 }
 0x5c8   :  { %v1469_v26 = vmul.f32 %v5165_v0, %v1467_v21 }
 0x5ca   :  { %v1502_v54 = vrot.slane %v1469_v26, %v1501_v18  ;;  %v1474_v29 = vrot.slane %v1469_v26, %v6568_v56  ;;  %v6844_v15 = vrot.slane %v1469_v26, %v6813_v13  ;;  %v6847_v12 = vrot.slane %v1469_v26, %v6816_v9 }
 0x5cb   :  { %v6850_v31 = vrot.slane %v1469_v26, %v6819_v20  ;;  %v6852_v22 = vrot.slane %v1469_v26, %v1489_v27  ;;  %v6854_v24 = vrot.slane %v1469_v26, %v1493_v37  ;;  %v6856_v30 = vrot.slane %v1469_v26, %v1497_v25 }
 0x5cc   :  { %v1518_v34 = vmul.f32 %v1502_v54, %v6784_v38  ;;  %v1526_v43 = vmul.f32 %v1502_v54, %v6786_v11  ;;  %v1511_v47 = vmul.f32 %v1474_v29, %v6684_v55  ;;  %v1512_v42 = vmul.f32 %v6844_v15, %v6688_v58 }
 0x5cd   :  { %v1513_v44 = vmul.f32 %v6847_v12, %v6692_v60  ;;  %v1514_v51 = vmul.f32 %v6850_v31, %v6696_v62  ;;  %v1515_v48 = vmul.f32 %v6852_v22, %v6759_v6  ;;  %v1516_v28 = vmul.f32 %v6854_v24, %v6774_v41 }
 0x5ce   :  { %v1575_v38 = vadd.f32 %v1559_v36, %v1518_v34  ;;  %v6871_v49 = vadd.f32 %v1559_v36, %v1526_v43  ;;  %v1517_v55 = vmul.f32 %v6856_v30, %v6764_v7  ;;  %v1568_v58 = vadd.f32 %v6825_v17, %v1511_v47 }
 0x5cf   :  { %v1569_v11 = vadd.f32 %v6828_v8, %v1512_v42  ;;  %v1570_v60 = vadd.f32 %v6831_v32, %v1513_v44  ;;  %v1571_v62 = vadd.f32 %v6834_v14, %v1514_v51  ;;  %v1572_v50 = vadd.f32 %v6836_v10, %v1515_v48 }
 0x5d0   :  { %v1591_v6 = vmul.f32 0.01, %v1575_v38  ;;  %v6881_v33 = vmul.f32 0.01, %v6871_v49  ;;  %v1573_v41 = vadd.f32 %v6838_v16, %v1516_v28  ;;  %v1574_v52 = vadd.f32 %v6840_v39, %v1517_v55 }
 0x5d1   :  { %v1584_v46 = vmul.f32 0.01, %v1568_v58  ;;  %v1585_v7 = vmul.f32 0.01, %v1569_v11  ;;  %v1586_v53 = vmul.f32 0.01, %v1570_v60  ;;  %v6886_v40 = vmul.f32 %v1474_v29, %v6686_v57 }
 0x5d2   :  { %v1607_v5 = vmax.f32 %v1575_v38, %v1591_v6  ;;  %v1615_v0 = vmax.f32 %v6871_v49, %v6881_v33  ;;  %v1587_v18 = vmul.f32 0.01, %v1571_v62  ;;  %v1588_v21 = vmul.f32 0.01, %v1572_v50 }
 0x5d3   :  { %v1589_v36 = vmul.f32 0.01, %v1573_v41  ;;  %v1590_v27 = vmul.f32 0.01, %v1574_v52  ;;  %v1600_v37 = vmax.f32 %v1568_v58, %v1584_v46  ;;  %v1601_v25 = vmax.f32 %v1569_v11, %v1585_v7 }
 0x5d4   :  { %v1602_v26 = vmax.f32 %v1570_v60, %v1586_v53  ;;  %v1603_v54 = vmax.f32 %v1571_v62, %v1587_v18  ;;  %v1604_v34 = vmax.f32 %v1572_v50, %v1588_v21  ;;  %v1635_v43 = vsel %vm1626_vm4, %v1607_v5, -inf  ;;  %v6898_v53 = vpop.permute.xlu0 %1624 }
 0x5d5   :  { %v1605_v47 = vmax.f32 %v1573_v41, %v1589_v36  ;;  %v1606_v42 = vmax.f32 %v1574_v52, %v1590_v27  ;;  %v1628_v57 = vsel %vm1626_vm4, %v1600_v37, -inf  ;;  %v1629_v29 = vsel %vm1626_vm4, %v1601_v25, -inf }
 0x5d6   :  { %v1630_v44 = vsel %vm1626_vm4, %v1602_v26, -inf  ;;  %v1631_v51 = vsel %vm1626_vm4, %v1603_v54, -inf  ;;  %v1632_v48 = vsel %vm1626_vm4, %v1604_v34, -inf  ;;  %v1644_v28 = vrot.slane %v1628_v57, 4 }
 0x5d7   :  { %v1633_v38 = vsel %vm1626_vm4, %v1605_v47, -inf  ;;  %v1634_v55 = vsel %vm1626_vm4, %v1606_v42, -inf  ;;  %v1650_v58 = vrot.slane %v1629_v29, 4  ;;  %v1656_v11 = vrot.slane %v1630_v44, 4 }
 0x5d8   :  { %v1645_v60 = vmax.f32 %v1628_v57, %v1644_v28  ;;  %v1662_v62 = vrot.slane %v1631_v51, 4  ;;  %v1668_v50 = vrot.slane %v1632_v48, 4  ;;  %v1674_v6 = vrot.slane %v1633_v38, 4 }
 0x5d9   :  { %v1651_v41 = vmax.f32 %v1629_v29, %v1650_v58  ;;  %v1657_v52 = vmax.f32 %v1630_v44, %v1656_v11  ;;  %v1680_v46 = vrot.slane %v1634_v55, 4  ;;  %v1686_v7 = vrot.slane %v1635_v43, 4 }
 0x5da   :  { %v1646_v5 = vrot.slane %v1645_v60, 2  ;;  %v1663_v18 = vmax.f32 %v1631_v51, %v1662_v62  ;;  %v1669_v21 = vmax.f32 %v1632_v48, %v1668_v50  ;;  %v1675_v36 = vmax.f32 %v1633_v38, %v1674_v6 }
 0x5db   :  { %v1652_v27 = vrot.slane %v1651_v41, 2  ;;  %v1658_v37 = vrot.slane %v1657_v52, 2  ;;  %v1681_v4 = vmax.f32 %v1634_v55, %v1680_v46  ;;  %v1687_v25 = vmax.f32 %v1635_v43, %v1686_v7 }
 0x5dc   :  { %v1647_v26 = vmax.f32 %v1645_v60, %v1646_v5  ;;  %v1664_v54 = vrot.slane %v1663_v18, 2  ;;  %v1670_v34 = vrot.slane %v1669_v21, 2  ;;  %v1676_v47 = vrot.slane %v1675_v36, 2 }
 0x5dd   :  { %vm1627_vm5 = vcmp.eq.s32.totalorder %v6898_v53, 1  ;;  %v1653_v42 = vmax.f32 %v1651_v41, %v1652_v27  ;;  %v1659_v57 = vmax.f32 %v1657_v52, %v1658_v37  ;;  %v1682_v29 = vrot.slane %v1681_v4, 2 }
 0x5de   :  { %v1688_v44 = vrot.slane %v1687_v25, 2  ;;  %v1648_v28 = vrot.slane %v1647_v26, 1  ;;  %v1665_v58 = vmax.f32 %v1663_v18, %v1664_v54  ;;  %v1671_v11 = vmax.f32 %v1669_v21, %v1670_v34 }
 0x5df   :  { %v1677_v51 = vmax.f32 %v1675_v36, %v1676_v47  ;;  %v1654_v48 = vrot.slane %v1653_v42, 1  ;;  %v1660_v38 = vrot.slane %v1659_v57, 1  ;;  %v1683_v62 = vmax.f32 %v1681_v4, %v1682_v29 }
 0x5e0   :  { %v1689_v50 = vmax.f32 %v1687_v25, %v1688_v44  ;;  %v6901_v55 = vmax.f32 %v1647_v26, %v1648_v28  ;;  %v1666_v43 = vrot.slane %v1665_v58, 1  ;;  %v1672_v60 = vrot.slane %v1671_v11, 1 }
 0x5e1   :  { %v1678_v6 = vrot.slane %v1677_v51, 1  ;;  %v6903_v46 = vmax.f32 %v1653_v42, %v1654_v48  ;;  %v6905_v7 = vmax.f32 %v1659_v57, %v1660_v38  ;;  %v1684_v41 = vrot.slane %v1683_v62, 1 }
 0x5e2   :  { %v1690_v52 = vrot.slane %v1689_v50, 1  ;;  %v6907_v5 = vmax.f32 %v1665_v58, %v1666_v43  ;;  %v6909_v18 = vmax.f32 %v1671_v11, %v1672_v60  ;;  %v1520_v36 = vmul.f32 %v6844_v15, %v6690_v59 }
 0x5e3   :  { %v6911_v21 = vmax.f32 %v1677_v51, %v1678_v6  ;;  %v6915_v27 = vmax.f32 %v1683_v62, %v1684_v41  ;;  %v1521_v4 = vmul.f32 %v6847_v12, %v6694_v61  ;;  %v1522_v25 = vmul.f32 %v6850_v31, %v6698_v2 }
 0x5e4   :  { %v6917_v37 = vmax.f32 %v1689_v50, %v1690_v52  ;;  %v1523_v26 = vmul.f32 %v6852_v22, %v6761_v45  ;;  %v1524_v54 = vmul.f32 %v6854_v24, %v6777_v1  ;;  %v1525_v34 = vmul.f32 %v6856_v30, %v6767_v3 }
 0x5e5   :  { %v1576_v59 = vadd.f32 %v6825_v17, %v6886_v40  ;;  %v1577_v15 = vadd.f32 %v6828_v8, %v1520_v36  ;;  %v1578_v47 = vadd.f32 %v6831_v32, %v1521_v4  ;;  %v1579_v61 = vadd.f32 %v6834_v14, %v1522_v25 }
 0x5e6   :  { %v1643_v2 = vsel %vm1627_vm5, %v1615_v0, -inf  ;;  %v1580_v45 = vadd.f32 %v6836_v10, %v1523_v26  ;;  %v1581_v1 = vadd.f32 %v6838_v16, %v1524_v54  ;;  %v1582_v3 = vadd.f32 %v6840_v39, %v1525_v34 }
 0x5e7   :  { %v1592_v12 = vmul.f32 0.01, %v1576_v59  ;;  %v1593_v17 = vmul.f32 0.01, %v1577_v15  ;;  %v1594_v31 = vmul.f32 0.01, %v1578_v47 }
 0x5e8   :  { %v1595_v8 = vmul.f32 0.01, %v1579_v61  ;;  %v1596_v22 = vmul.f32 0.01, %v1580_v45  ;;  %v1597_v32 = vmul.f32 0.01, %v1581_v1 }
 0x5e9   :  { %v1598_v24 = vmul.f32 0.01, %v1582_v3  ;;  %v1608_v14 = vmax.f32 %v1576_v59, %v1592_v12  ;;  %v1609_v30 = vmax.f32 %v1577_v15, %v1593_v17  ;;  %v1610_v40 = vmax.f32 %v1578_v47, %v1594_v31 }
 0x5ea   :  { %v1611_v49 = vmax.f32 %v1579_v61, %v1595_v8  ;;  %v1734_v33 = vrot.slane %v1643_v2, 4  ;;  %v1612_v42 = vmax.f32 %v1580_v45, %v1596_v22  ;;  %v1613_v0 = vmax.f32 %v1581_v1, %v1597_v32 }
 0x5eb   :  { %v1614_v57 = vmax.f32 %v1582_v3, %v1598_v24  ;;  %v1636_v10 = vsel %vm1627_vm5, %v1608_v14, -inf  ;;  %v1637_v16 = vsel %vm1627_vm5, %v1609_v30, -inf  ;;  %v1638_v39 = vsel %vm1627_vm5, %v1610_v40, -inf }
 0x5ec   :  { %v1639_v29 = vsel %vm1627_vm5, %v1611_v49, -inf  ;;  %v1692_v44 = vrot.slane %v1636_v10, 4  ;;  %v1640_v28 = vsel %vm1627_vm5, %v1612_v42, -inf  ;;  %v1641_v58 = vsel %vm1627_vm5, %v1613_v0, -inf }
 0x5ed   :  { %v1642_v11 = vsel %vm1627_vm5, %v1614_v57, -inf  ;;  %v1698_v51 = vrot.slane %v1637_v16, 4  ;;  %v1704_v38 = vrot.slane %v1638_v39, 4  ;;  %v1710_v62 = vrot.slane %v1639_v29, 4 }
 0x5ee   :  { %v1693_v48 = vmax.f32 %v1636_v10, %v1692_v44  ;;  %v1716_v50 = vrot.slane %v1640_v28, 4  ;;  %v1722_v60 = vrot.slane %v1641_v58, 4  ;;  %v1728_v6 = vrot.slane %v1642_v11, 4 }
 0x5ef   :  { %v1699_v43 = vmax.f32 %v1637_v16, %v1698_v51  ;;  %v1735_v41 = vmax.f32 %v1643_v2, %v1734_v33  ;;  %v1705_v36 = vmax.f32 %v1638_v39, %v1704_v38  ;;  %v1711_v4 = vmax.f32 %v1639_v29, %v1710_v62 }
 0x5f0   :  { %v1694_v52 = vrot.slane %v1693_v48, 2  ;;  %v1717_v25 = vmax.f32 %v1640_v28, %v1716_v50  ;;  %v1723_v54 = vmax.f32 %v1641_v58, %v1722_v60  ;;  %v1729_v34 = vmax.f32 %v1642_v11, %v1728_v6 }
 0x5f1   :  { %v1700_v26 = vrot.slane %v1699_v43, 2  ;;  %v1736_v59 = vrot.slane %v1735_v41, 2  ;;  %v1706_v53 = vrot.slane %v1705_v36, 2  ;;  %v1712_v47 = vrot.slane %v1711_v4, 2 }
 0x5f2   :  { %v1695_v15 = vmax.f32 %v1693_v48, %v1694_v52  ;;  %v1718_v61 = vrot.slane %v1717_v25, 2  ;;  %v1724_v1 = vrot.slane %v1723_v54, 2  ;;  %v1730_v3 = vrot.slane %v1729_v34, 2 }
 0x5f3   :  { %v1701_v45 = vmax.f32 %v1699_v43, %v1700_v26  ;;  %v1737_v12 = vmax.f32 %v1735_v41, %v1736_v59  ;;  %v1707_v31 = vmax.f32 %v1705_v36, %v1706_v53  ;;  %v1713_v8 = vmax.f32 %v1711_v4, %v1712_v47 }
 0x5f4   :  { %v1696_v17 = vrot.slane %v1695_v15, 1  ;;  %v1719_v2 = vmax.f32 %v1717_v25, %v1718_v61  ;;  %v1725_v32 = vmax.f32 %v1723_v54, %v1724_v1  ;;  %v1731_v24 = vmax.f32 %v1729_v34, %v1730_v3 }
 0x5f5   :  { %v1702_v22 = vrot.slane %v1701_v45, 1  ;;  %v1738_v14 = vrot.slane %v1737_v12, 1  ;;  %v1708_v40 = vrot.slane %v1707_v31, 1  ;;  %v1714_v49 = vrot.slane %v1713_v8, 1 }
 0x5f6   :  { %v6956_v30 = vmax.f32 %v1695_v15, %v1696_v17  ;;  %v1720_v33 = vrot.slane %v1719_v2, 1  ;;  %v1726_v0 = vrot.slane %v1725_v32, 1  ;;  %v1732_v57 = vrot.slane %v1731_v24, 1 }
 0x5f7   :  { %v1703_v42 = vmax.f32 %v1701_v45, %v1702_v22  ;;  %v6958_v10 = vmax.f32 %v1737_v12, %v1738_v14  ;;  %v6960_v16 = vmax.f32 %v1707_v31, %v1708_v40  ;;  %v1715_v39 = vmax.f32 %v1713_v8, %v1714_v49 }
 0x5f8   :  { %v6962_v29 = vmax.f32 %v1719_v2, %v1720_v33  ;;  %v6964_v44 = vmax.f32 %v1725_v32, %v1726_v0  ;;  %v6966_v28 = vmax.f32 %v1731_v24, %v1732_v57 }
 0x5f9   :  { %6377 = dma.done.wait [#allocation4 + $0x1], 32768 }
 0x5fa   :  { %6378 = vsyncadd [#allocation4 + $0x1], 4294934528  ;;  %v1745_v58 = vpack.c.bf16 %v6903_v46, %v6903_v46  ;;  %v1753_v11 = vpack.c.bf16 %v1703_v42, %v1703_v42  ;;  %v1747_v51 = vpack.c.bf16 %v6907_v5, %v6907_v5  ;;  %vm2048_vm6 = vcmask 1041409   ;;  %v5713_v36 = vld [vmem:[#allocation3 + $0xe4] ss:$16 sps:$4 sm:$0xff]   ;;  %s6394_s27 = smov [#allocation11]  }
 0x5fb   :  { %v1755_v48 = vpack.c.bf16 %v1715_v39, %v1715_v39  ;;  %v5715_v46 = vld [vmem:[#allocation3 + $0x2e4] ss:$16 sps:$4 sm:$0xff]   ;;  %3353 = vmatprep.subr.bf16.mxu1 %v5713_v36  ;;  %v5717_v5 = vld [vmem:[#allocation3 + $0xe0] ss:$16 sps:$4 sm:$0xff]   ;;  %s5048_s30 = sshll.u32 %s6394_s27, 4  ;;  %s5049_s30 = int_to_ptr.vmem [resolvable:$true] %s5048_s30 }
 0x5fc   :  { %v2033_v38 = vunpack.c.l.b16 %v1745_v58  ;;  %v2041_v62 = vunpack.c.l.b16 %v1753_v11  ;;  %v2035_v50 = vunpack.c.l.b16 %v1747_v51  ;;  %v5718_v4 = vld [vmem:[#allocation3 + $0x2e0] ss:$16 sps:$4 sm:$0xff]   ;;  %3394 = vmatprep.subr.bf16.mxu0 %v5715_v46  ;;  %v5719_v25 = vld [vmem:[#allocation3 + $0xc4] ss:$16 sps:$4 sm:$0xff]   ;;  %3354 = vmatpush1.bf16.msra.mxu1 %v5717_v5  ;;  %s6351_s14 = scalar_lea.vmem %s5049_s30, 256  ;;  %p6356_p12 = scmp.lt.s32.totalorder %s5049_s30, %s5049_s30 }
 0x5fd   :  { %v2043_v43 = vunpack.c.l.b16 %v1755_v48  ;;  %3395 = vmatpush1.bf16.msra.mxu0 %v5718_v4  ;;  %v5721_v26 = vld [vmem:[#allocation3 + $0x2c4] ss:$16 sps:$4 sm:$0xff]   ;;  %v5723_v54 = vld [vmem:[#allocation3 + $0xc0] ss:$16 sps:$4 sm:$0xff]   ;;  %3355 = vmatprep.subr.bf16.mxu1 %v5719_v25  ;;  %p6352_p11 = scmp.ne.s32.totalorder %s5049_s30, %s6351_s14  ;;  %p6357_p13 = scmp.lt.s32.totalorder %s6351_s14, %s6351_s14 }
 0x5fe   :  { %v2050_v60 = vsel %vm2048_vm6, %v2041_v62, %v2033_v38  ;;  %v5724_v34 = vld [vmem:[#allocation3 + $0x2c0] ss:$16 sps:$4 sm:$0xff]   ;;  %3396 = vmatprep.subr.bf16.mxu0 %v5721_v26  ;;  %v5725_v59 = vld [vmem:[#allocation3 + $0xa4] ss:$16 sps:$4 sm:$0xff]  }
 0x5ff   :  { %v6973_v6 = vpack.c.b16 %v2050_v60, %v2050_v60  ;;  %v2052_v41 = vsel %vm2048_vm6, %v2043_v43, %v2035_v50  ;;  %v5727_v15 = vld [vmem:[#allocation3 + $0x2a4] ss:$16 sps:$4 sm:$0xff]   ;;  %v5729_v53 = vld [vmem:[#allocation3 + $0xa0] ss:$16 sps:$4 sm:$0xff]   ;;  %p6358_p0 = por %p6357_p13, %p6356_p12 }
 0x600   :  { %v6976_v52 = vpack.c.b16 %v2052_v41, %v2052_v41  ;;  %v5730_v47 = vld [vmem:[#allocation3 + $0x2a0] ss:$16 sps:$4 sm:$0xff]   ;;  %3356 = vmatpush1.bf16.msra.mxu1 %v5723_v54  ;;  %v5731_v61 = vld [vmem:[#allocation3 + $0x84] ss:$16 sps:$4 sm:$0xff]  }
 0x601   :  { %3385 = vmatprep.mubr.bf16.mxu1 %v6973_v6  ;;  %3397 = vmatpush1.bf16.msra.mxu0 %v5724_v34  ;;  %v5733_v45 = vld [vmem:[#allocation3 + $0x284] ss:$16 sps:$4 sm:$0xff]   ;;  %v5735_v1 = vld [vmem:[#allocation3 + $0x80] ss:$16 sps:$4 sm:$0xff]   ;;  %p6359_p1 = pnand %p6358_p0, %p6352_p11 }
 0x602   :  { %3426 = vmatprep.mubr.bf16.mxu0 %v6976_v52  ;;  %3357 = vmatprep.subr.bf16.mxu1 %v5725_v59  ;;  %v5736_v3 = vld [vmem:[#allocation3 + $0x280] ss:$16 sps:$4 sm:$0xff]   ;;  %v5737_v12 = vld [vmem:[#allocation3 + $0x64] ss:$16 sps:$4 sm:$0xff]  }
 0x603   :  { %3398 = vmatprep.subr.bf16.mxu0 %v5727_v15  ;;  %v5739_v17 = vld [vmem:[#allocation3 + $0x264] ss:$16 sps:$4 sm:$0xff]   ;;  %v5741_v31 = vld [vmem:[#allocation3 + $0x60] ss:$16 sps:$4 sm:$0xff]  }
 0x604   :  { %3358 = vmatpush1.bf16.msra.mxu1 %v5729_v53  ;;  %v5742_v8 = vld [vmem:[#allocation3 + $0x260] ss:$16 sps:$4 sm:$0xff]   ;;  %v5743_v2 = vld [vmem:[#allocation3 + $0x44] ss:$16 sps:$4 sm:$0xff]  }
 0x605   :  { %3399 = vmatpush1.bf16.msra.mxu0 %v5730_v47  ;;  %3359 = vmatprep.subr.bf16.mxu1 %v5731_v61  ;;  %v5745_v22 = vld [vmem:[#allocation3 + $0x244] ss:$16 sps:$4 sm:$0xff]   ;;  %v5747_v32 = vld [vmem:[#allocation3 + $0x40] ss:$16 sps:$4 sm:$0xff]  }
 0x606   :  { %3400 = vmatprep.subr.bf16.mxu0 %v5733_v45  ;;  %v5748_v24 = vld [vmem:[#allocation3 + $0x240] ss:$16 sps:$4 sm:$0xff]   ;;  %v5749_v14 = vld [vmem:[#allocation3 + $0x24] ss:$16 sps:$4 sm:$0xff]  }
 0x607   :  { %v5751_v40 = vld [vmem:[#allocation3 + $0x224] ss:$16 sps:$4 sm:$0xff]   ;;  %v5753_v49 = vld [vmem:[#allocation3 + $0x20] ss:$16 sps:$4 sm:$0xff]  }
 0x608   :  { %3360 = vmatpush1.bf16.msra.mxu1 %v5735_v1  ;;  %v5754_v33 = vld [vmem:[#allocation3 + $0x220] ss:$16 sps:$4 sm:$0xff]   ;;  %v5755_v42 = vld [vmem:[#allocation3 + $0x4] ss:$16 sps:$4 sm:$0xff]   ;;  %v1744_v1 = vpack.c.bf16 %v6901_v55, %v6901_v55  ;;  %v1749_v55 = vpack.c.bf16 %v6911_v21, %v6911_v21 }
 0x609   :  { %3401 = vmatpush1.bf16.msra.mxu0 %v5736_v3  ;;  %3361 = vmatprep.subr.bf16.mxu1 %v5737_v12  ;;  %v5757_v0 = vld [vmem:[#allocation3 + $0x204] ss:$16 sps:$4 sm:$0xff]   ;;  %v5759_v57 = vld [vmem:[#allocation3] ss:$16 sps:$4 sm:$0xff]   ;;  %v1752_v12 = vpack.c.bf16 %v6956_v30, %v6956_v30  ;;  %v1751_v30 = vpack.c.bf16 %v6917_v37, %v6917_v37 }
 0x60a   :  { %3402 = vmatprep.subr.bf16.mxu0 %v5739_v17  ;;  %v5760_v39 = vld [vmem:[#allocation3 + $0x200] ss:$16 sps:$4 sm:$0xff]   ;;  %v5761_v58 = vld [vmem:[#allocation3 + $0x1e4] ss:$16 sps:$4 sm:$0xff]   ;;  %v1746_v17 = vpack.c.bf16 %v6905_v7, %v6905_v7  ;;  %v1759_v7 = vpack.c.bf16 %v6958_v10, %v6958_v10 }
 0x60b   :  { %v5763_v11 = vld [vmem:[#allocation3 + $0x3e4] ss:$16 sps:$4 sm:$0xff]   ;;  %v5765_v51 = vld [vmem:[#allocation3 + $0x1e0] ss:$16 sps:$4 sm:$0xff]  }
 0x60c   :  { %3362 = vmatpush1.bf16.msra.mxu1 %v5741_v31  ;;  %v5766_v48 = vld [vmem:[#allocation3 + $0x3e0] ss:$16 sps:$4 sm:$0xff]   ;;  %v5767_v38 = vld [vmem:[#allocation3 + $0x1c4] ss:$16 sps:$4 sm:$0xff]   ;;  %v1754_v31 = vpack.c.bf16 %v6960_v16, %v6960_v16 }
 0x60d   :  { %3403 = vmatpush1.bf16.msra.mxu0 %v5742_v8  ;;  %3363 = vmatprep.subr.bf16.mxu1 %v5743_v2  ;;  %v5769_v62 = vld [vmem:[#allocation3 + $0x3c4] ss:$16 sps:$4 sm:$0xff]   ;;  %v5771_v50 = vld [vmem:[#allocation3 + $0x1c0] ss:$16 sps:$4 sm:$0xff]  }
 0x60e   :  { %3404 = vmatprep.subr.bf16.mxu0 %v5745_v22  ;;  %v5772_v43 = vld [vmem:[#allocation3 + $0x3c0] ss:$16 sps:$4 sm:$0xff]   ;;  %v5773_v60 = vld [vmem:[#allocation3 + $0x1a4] ss:$16 sps:$4 sm:$0xff]  }
 0x60f   :  { %v5775_v41 = vld [vmem:[#allocation3 + $0x3a4] ss:$16 sps:$4 sm:$0xff]   ;;  %v5777_v36 = vld [vmem:[#allocation3 + $0x1a0] ss:$16 sps:$4 sm:$0xff]  }
 0x610   :  { %3364 = vmatpush1.bf16.msra.mxu1 %v5747_v32  ;;  %v5778_v46 = vld [vmem:[#allocation3 + $0x3a0] ss:$16 sps:$4 sm:$0xff]   ;;  %v5779_v5 = vld [vmem:[#allocation3 + $0x184] ss:$16 sps:$4 sm:$0xff]   ;;  %v1757_v32 = vpack.c.bf16 %v6964_v44, %v6964_v44 }
 0x611   :  { %3405 = vmatpush1.bf16.msra.mxu0 %v5748_v24  ;;  %3365 = vmatprep.subr.bf16.mxu1 %v5749_v14  ;;  %v5781_v4 = vld [vmem:[#allocation3 + $0x384] ss:$16 sps:$4 sm:$0xff]   ;;  %v5783_v25 = vld [vmem:[#allocation3 + $0x180] ss:$16 sps:$4 sm:$0xff]   ;;  %v2032_v24 = vunpack.c.l.b16 %v1744_v1  ;;  %v2040_v14 = vunpack.c.l.b16 %v1752_v12 }
 0x612   :  { %3406 = vmatprep.subr.bf16.mxu0 %v5751_v40  ;;  %v5784_v26 = vld [vmem:[#allocation3 + $0x380] ss:$16 sps:$4 sm:$0xff]   ;;  %v5785_v54 = vld [vmem:[#allocation3 + $0x164] ss:$16 sps:$4 sm:$0xff]   ;;  %v2034_v40 = vunpack.c.l.b16 %v1746_v17  ;;  %v2045_v44 = vunpack.c.l.b16 %v1757_v32 }
 0x613   :  { %v5787_v34 = vld [vmem:[#allocation3 + $0x364] ss:$16 sps:$4 sm:$0xff]   ;;  %v5789_v59 = vld [vmem:[#allocation3 + $0x160] ss:$16 sps:$4 sm:$0xff]   ;;  %v2049_v37 = vsel %vm2048_vm6, %v2040_v14, %v2032_v24 }
 0x614   :  { %3366 = vmatpush1.bf16.msra.mxu1 %v5753_v49  ;;  %v5790_v15 = vld [vmem:[#allocation3 + $0x360] ss:$16 sps:$4 sm:$0xff]   ;;  %v5791_v53 = vld [vmem:[#allocation3 + $0x144] ss:$16 sps:$4 sm:$0xff]   ;;  %v2042_v49 = vunpack.c.l.b16 %v1754_v31 }
 0x615   :  { %3407 = vmatpush1.bf16.msra.mxu0 %v5754_v33  ;;  %3367 = vmatprep.subr.bf16.mxu1 %v5755_v42  ;;  %v5793_v47 = vld [vmem:[#allocation3 + $0x344] ss:$16 sps:$4 sm:$0xff]   ;;  %v5795_v61 = vld [vmem:[#allocation3 + $0x140] ss:$16 sps:$4 sm:$0xff]  }
 0x616   :  { %3408 = vmatprep.subr.bf16.mxu0 %v5757_v0  ;;  %v5796_v45 = vld [vmem:[#allocation3 + $0x340] ss:$16 sps:$4 sm:$0xff]   ;;  %v5797_v3 = vld [vmem:[#allocation3 + $0x124] ss:$16 sps:$4 sm:$0xff]   ;;  %v2037_v0 = vunpack.c.l.b16 %v1749_v55  ;;  %v2051_v10 = vsel %vm2048_vm6, %v2042_v49, %v2034_v40 }
 0x617   :  { %v5799_v8 = vld [vmem:[#allocation3 + $0x324] ss:$16 sps:$4 sm:$0xff]   ;;  %v5801_v2 = vld [vmem:[#allocation3 + $0x120] ss:$16 sps:$4 sm:$0xff]  }
 0x618   :  { %3368 = vmatpush1.bf16.msra.mxu1 %v5759_v57  ;;  %v5802_v22 = vld [vmem:[#allocation3 + $0x320] ss:$16 sps:$4 sm:$0xff]   ;;  %v5803_v16 = vld [vmem:[#allocation3 + $0x104] ss:$16 sps:$4 sm:$0xff]   ;;  %v2039_v57 = vunpack.c.l.b16 %v1751_v30 }
 0x619   :  { %3409 = vmatpush1.bf16.msra.mxu0 %v5760_v39  ;;  %3369 = vmatprep.subr.bf16.mxu1 %v5761_v58  ;;  %v5805_v33 = vld [vmem:[#allocation3 + $0x304] ss:$16 sps:$4 sm:$0xff]   ;;  %v5807_v21 = vld [vmem:[#allocation3 + $0x100] ss:$16 sps:$4 sm:$0xff]   ;;  %v2047_v39 = vunpack.c.l.b16 %v1759_v7 }
 0x61a   :  { %3410 = vmatprep.subr.bf16.mxu0 %v5763_v11  ;;  %v5808_v42 = vld [vmem:[#allocation3 + $0x300] ss:$16 sps:$4 sm:$0xff]   ;;  %v5811_v58 = vld [vmem:[#allocation3 + $0x4e4] ss:$16 sps:$4 sm:$0xff]  }
 0x61b   :  { %v5814_v11 = vld [vmem:[#allocation3 + $0x6e4] ss:$16 sps:$4 sm:$0xff]   ;;  %v5833_v1 = vld [vmem:[#allocation3 + $0x460] ss:$16 sps:$4 sm:$0xff]  }
 0x61c   :  { %3370 = vmatpush2.bf16.msra.mxu1 %v5765_v51  ;;  %v6998_v51 = vpack.c.b16 %v2049_v37, %v2049_v37  ;;  %v5841_v12 = vld [vmem:[#allocation3 + $0x444] ss:$16 sps:$4 sm:$0xff]   ;;  %v5839_v31 = vld [vmem:[#allocation3 + $0x440] ss:$16 sps:$4 sm:$0xff]  }
 0x61d   :  { %3411 = vmatpush2.bf16.msra.mxu0 %v5766_v48  ;;  %3371 = vmatprep.subr.bf16.mxu1 %v5767_v38  ;;  %v7000_v48 = vpack.c.b16 %v2051_v10, %v2051_v10  ;;  %v5809_v38 = vld [vmem:[#allocation3 + $0x4e0] ss:$16 sps:$4 sm:$0xff]   ;;  %v5844_v17 = vld [vmem:[#allocation3 + $0x644] ss:$16 sps:$4 sm:$0xff]  }
 0x61e   :  { %3412 = vmatprep.subr.bf16.mxu0 %v5769_v62  ;;  %v5812_v62 = vld [vmem:[#allocation3 + $0x6e0] ss:$16 sps:$4 sm:$0xff]   ;;  %v5853_v30 = vld [vmem:[#allocation3 + $0x404] ss:$16 sps:$4 sm:$0xff]  }
 0x61f   :  { %v5845_v55 = vld [vmem:[#allocation3 + $0x420] ss:$16 sps:$4 sm:$0xff]   ;;  %v5856_v7 = vld [vmem:[#allocation3 + $0x604] ss:$16 sps:$4 sm:$0xff]  }
 0x620   :  { %3372 = vmatpush2.bf16.msra.mxu1 %v5771_v50  ;;  %v2054_v50 = vsel %vm2048_vm6, %v2045_v44, %v2037_v0  ;;  %v5848_v32 = vld [vmem:[#allocation3 + $0x620] ss:$16 sps:$4 sm:$0xff]   ;;  %v5859_v14 = vld [vmem:[#allocation3 + $0x5e4] ss:$16 sps:$4 sm:$0xff]  }
 0x621   :  { %3413 = vmatpush2.bf16.msra.mxu0 %v5772_v43  ;;  %3373 = vmatprep.subr.bf16.mxu1 %v5773_v60  ;;  %v2056_v43 = vsel %vm2048_vm6, %v2047_v39, %v2039_v57  ;;  %v5817_v60 = vld [vmem:[#allocation3 + $0x4c4] ss:$16 sps:$4 sm:$0xff]   ;;  %v5854_v24 = vld [vmem:[#allocation3 + $0x600] ss:$16 sps:$4 sm:$0xff]  }
 0x622   :  { %3414 = vmatprep.subr.bf16.mxu0 %v5775_v41  ;;  %v5820_v41 = vld [vmem:[#allocation3 + $0x6c4] ss:$16 sps:$4 sm:$0xff]   ;;  %v5857_v49 = vld [vmem:[#allocation3 + $0x5e0] ss:$16 sps:$4 sm:$0xff]  }
 0x623   :  { %v5862_v40 = vld [vmem:[#allocation3 + $0x7e4] ss:$16 sps:$4 sm:$0xff]   ;;  %v5863_v0 = vld [vmem:[#allocation3 + $0x5c0] ss:$16 sps:$4 sm:$0xff]  }
 0x624   :  { %3374 = vmatpush2.bf16.msra.mxu1 %v5777_v36  ;;  %v7004_v36 = vpack.c.b16 %v2054_v50, %v2054_v50  ;;  %v5866_v44 = vld [vmem:[#allocation3 + $0x7c0] ss:$16 sps:$4 sm:$0xff]   ;;  %v5871_v57 = vld [vmem:[#allocation3 + $0x5a4] ss:$16 sps:$4 sm:$0xff]  }
 0x625   :  { %3415 = vmatpush2.bf16.msra.mxu0 %v5778_v46  ;;  %3375 = vmatprep.subr.bf16.mxu1 %v5779_v5  ;;  %v7006_v46 = vpack.c.b16 %v2056_v43, %v2056_v43  ;;  %v5815_v5 = vld [vmem:[#allocation3 + $0x4c0] ss:$16 sps:$4 sm:$0xff]   ;;  %v5874_v39 = vld [vmem:[#allocation3 + $0x7a4] ss:$16 sps:$4 sm:$0xff]  }
 0x626   :  { %3416 = vmatprep.subr.bf16.mxu0 %v5781_v4  ;;  %v5818_v4 = vld [vmem:[#allocation3 + $0x6c0] ss:$16 sps:$4 sm:$0xff]   ;;  %v5883_v50 = vld [vmem:[#allocation3 + $0x564] ss:$16 sps:$4 sm:$0xff]  }
 0x627   :  { %v5869_v37 = vld [vmem:[#allocation3 + $0x5a0] ss:$16 sps:$4 sm:$0xff]   ;;  %v5886_v43 = vld [vmem:[#allocation3 + $0x764] ss:$16 sps:$4 sm:$0xff]  }
 0x628   :  { %3376 = vmatpush2.bf16.msra.mxu1 %v5783_v25  ;;  %v5823_v25 = vld [vmem:[#allocation3 + $0x4a4] ss:$16 sps:$4 sm:$0xff]   ;;  %v5872_v10 = vld [vmem:[#allocation3 + $0x7a0] ss:$16 sps:$4 sm:$0xff]  }
 0x629   :  { %3417 = vmatpush2.bf16.msra.mxu0 %v5784_v26  ;;  %3377 = vmatprep.subr.bf16.mxu1 %v5785_v54  ;;  %v5826_v26 = vld [vmem:[#allocation3 + $0x6a4] ss:$16 sps:$4 sm:$0xff]   ;;  %v5821_v54 = vld [vmem:[#allocation3 + $0x4a0] ss:$16 sps:$4 sm:$0xff]  }
 0x62a   :  { %3418 = vmatprep.subr.bf16.mxu0 %v5787_v34  ;;  %v5824_v34 = vld [vmem:[#allocation3 + $0x6a0] ss:$16 sps:$4 sm:$0xff]  }
 0x62c   :  { %3378 = vmatpush2.bf16.msra.mxu1 %v5789_v59  ;;  %v5829_v59 = vld [vmem:[#allocation3 + $0x484] ss:$16 sps:$4 sm:$0xff]  }
 0x62d   :  { %3419 = vmatpush2.bf16.msra.mxu0 %v5790_v15  ;;  %3379 = vmatprep.subr.bf16.mxu1 %v5791_v53  ;;  %v5832_v15 = vld [vmem:[#allocation3 + $0x684] ss:$16 sps:$4 sm:$0xff]   ;;  %v5827_v53 = vld [vmem:[#allocation3 + $0x480] ss:$16 sps:$4 sm:$0xff]  }
 0x62e   :  { %3420 = vmatprep.subr.bf16.mxu0 %v5793_v47  ;;  %v5830_v47 = vld [vmem:[#allocation3 + $0x680] ss:$16 sps:$4 sm:$0xff]  }
 0x630   :  { %3380 = vmatpush2.bf16.msra.mxu1 %v5795_v61  ;;  %v5835_v61 = vld [vmem:[#allocation3 + $0x464] ss:$16 sps:$4 sm:$0xff]  }
 0x631   :  { %3421 = vmatpush2.bf16.msra.mxu0 %v5796_v45  ;;  %3381 = vmatprep.subr.bf16.mxu1 %v5797_v3  ;;  %v5838_v45 = vld [vmem:[#allocation3 + $0x664] ss:$16 sps:$4 sm:$0xff]   ;;  %v5836_v3 = vld [vmem:[#allocation3 + $0x660] ss:$16 sps:$4 sm:$0xff]  }
 0x632   :  { %3422 = vmatprep.subr.bf16.mxu0 %v5799_v8  ;;  %v5842_v8 = vld [vmem:[#allocation3 + $0x640] ss:$16 sps:$4 sm:$0xff]  }
 0x634   :  { %3382 = vmatpush2.bf16.msra.mxu1 %v5801_v2  ;;  %v5847_v2 = vld [vmem:[#allocation3 + $0x424] ss:$16 sps:$4 sm:$0xff]  }
 0x635   :  { %3423 = vmatpush2.bf16.msra.mxu0 %v5802_v22  ;;  %3383 = vmatprep.subr.bf16.mxu1 %v5803_v16  ;;  %v5850_v22 = vld [vmem:[#allocation3 + $0x624] ss:$16 sps:$4 sm:$0xff]   ;;  %v5851_v16 = vld [vmem:[#allocation3 + $0x400] ss:$16 sps:$4 sm:$0xff]  }
 0x636   :  { %3424 = vmatprep.subr.bf16.mxu0 %v5805_v33  ;;  %v5860_v33 = vld [vmem:[#allocation3 + $0x7e0] ss:$16 sps:$4 sm:$0xff]  }
 0x638   :  { %3384 = vmatpush2.bf16.msra.mxu1 %v5807_v21  ;;  %v5865_v21 = vld [vmem:[#allocation3 + $0x5c4] ss:$16 sps:$4 sm:$0xff]  }
 0x639   :  { %3425 = vmatpush2.bf16.msra.mxu0 %v5808_v42  ;;  %3435 = vmatprep.subr.bf16.mxu1 %v5811_v58  ;;  %v5868_v42 = vld [vmem:[#allocation3 + $0x7c4] ss:$16 sps:$4 sm:$0xff]  }
 0x63a   :  { %3476 = vmatprep.subr.bf16.mxu0 %v5814_v11  ;;  %v5877_v58 = vld [vmem:[#allocation3 + $0x584] ss:$16 sps:$4 sm:$0xff]  }
 0x63b   :  { %3386 = vmatmul.mubr.bf16.vlgmr.msra.gmra.mxu1 %v6998_v51  ;;  %v5880_v11 = vld [vmem:[#allocation3 + $0x784] ss:$16 sps:$4 sm:$0xff]  }
 0x63c   :  { %3427 = vmatmul.mubr.bf16.vlgmr.msra.gmra.mxu0 %v7000_v48  ;;  %3436 = vmatpush1.bf16.msra.mxu1 %v5809_v38  ;;  %v5875_v38 = vld [vmem:[#allocation3 + $0x580] ss:$16 sps:$4 sm:$0xff]  }
 0x63d   :  { %3477 = vmatpush1.bf16.msra.mxu0 %v5812_v62  ;;  %3437 = vmatprep.subr.bf16.mxu1 %v5817_v60  ;;  %v5878_v62 = vld [vmem:[#allocation3 + $0x780] ss:$16 sps:$4 sm:$0xff]  }
 0x63e   :  { %3478 = vmatprep.subr.bf16.mxu0 %v5820_v41  ;;  %3467 = vmatprep.mubr.bf16.mxu1 %v7004_v36  ;;  %v5881_v60 = vld [vmem:[#allocation3 + $0x560] ss:$16 sps:$4 sm:$0xff]  }
 0x63f   :  { %3508 = vmatprep.mubr.bf16.mxu0 %v7006_v46  ;;  %v5884_v41 = vld [vmem:[#allocation3 + $0x760] ss:$16 sps:$4 sm:$0xff]  }
 0x640   :  { %3438 = vmatpush1.bf16.msra.mxu1 %v5815_v5  ;;  %v5889_v5 = vld [vmem:[#allocation3 + $0x544] ss:$16 sps:$4 sm:$0xff]  }
 0x641   :  { %3479 = vmatpush1.bf16.msra.mxu0 %v5818_v4  ;;  %3439 = vmatprep.subr.bf16.mxu1 %v5823_v25  ;;  %v5892_v4 = vld [vmem:[#allocation3 + $0x744] ss:$16 sps:$4 sm:$0xff]   ;;  %v5887_v25 = vld [vmem:[#allocation3 + $0x540] ss:$16 sps:$4 sm:$0xff]  }
 0x642   :  { %3480 = vmatprep.subr.bf16.mxu0 %v5826_v26  ;;  %v5890_v26 = vld [vmem:[#allocation3 + $0x740] ss:$16 sps:$4 sm:$0xff]  }
 0x644   :  { %3440 = vmatpush1.bf16.msra.mxu1 %v5821_v54  ;;  %v1748_v54 = vpack.c.bf16 %v6909_v18, %v6909_v18  ;;  %v5901_v18 = vld [vmem:[#allocation3 + $0x504] ss:$16 sps:$4 sm:$0xff]  }
 0x645   :  { %3481 = vmatpush1.bf16.msra.mxu0 %v5824_v34  ;;  %3441 = vmatprep.subr.bf16.mxu1 %v5829_v59  ;;  %v5895_v34 = vld [vmem:[#allocation3 + $0x524] ss:$16 sps:$4 sm:$0xff]   ;;  %v1756_v59 = vpack.c.bf16 %v6962_v29, %v6962_v29 }
 0x646   :  { %3482 = vmatprep.subr.bf16.mxu0 %v5832_v15  ;;  %v1750_v15 = vpack.c.bf16 %v6915_v27, %v6915_v27  ;;  %v5904_v29 = vld [vmem:[#allocation3 + $0x704] ss:$16 sps:$4 sm:$0xff]   ;;  %v5902_v27 = vld [vmem:[#allocation3 + $0x700] ss:$16 sps:$4 sm:$0xff]  }
 0x648   :  { %3442 = vmatpush1.bf16.msra.mxu1 %v5827_v53  ;;  %v1758_v53 = vpack.c.bf16 %v6966_v28, %v6966_v28 }
 0x649   :  { %3483 = vmatpush1.bf16.msra.mxu0 %v5830_v47  ;;  %3443 = vmatprep.subr.bf16.mxu1 %v5835_v61  ;;  %v5898_v47 = vld [vmem:[#allocation3 + $0x724] ss:$16 sps:$4 sm:$0xff]   ;;  %v5893_v61 = vld [vmem:[#allocation3 + $0x520] ss:$16 sps:$4 sm:$0xff]  }
 0x64a   :  { %3484 = vmatprep.subr.bf16.mxu0 %v5838_v45  ;;  %v5896_v45 = vld [vmem:[#allocation3 + $0x720] ss:$16 sps:$4 sm:$0xff]  }
 0x64c   :  { %3444 = vmatpush1.bf16.msra.mxu1 %v5833_v1  ;;  %v2036_v1 = vunpack.c.l.b16 %v1748_v54  ;;  %v5955_v54 = vld [vmem:[#allocation3 + $0x1ec] ss:$16 sps:$4 sm:$0xff]  }
 0x64d   :  { %3485 = vmatpush1.bf16.msra.mxu0 %v5836_v3  ;;  %3445 = vmatprep.subr.bf16.mxu1 %v5841_v12  ;;  %v2044_v3 = vunpack.c.l.b16 %v1756_v59  ;;  %v2038_v12 = vunpack.c.l.b16 %v1750_v15  ;;  %v5953_v59 = vld [vmem:[#allocation3 + $0x1e8] ss:$16 sps:$4 sm:$0xff]  }
 0x64e   :  { %3486 = vmatprep.subr.bf16.mxu0 %v5844_v17  ;;  %v2046_v17 = vunpack.c.l.b16 %v1758_v53  ;;  %v5956_v15 = vld [vmem:[#allocation3 + $0x3e8] ss:$16 sps:$4 sm:$0xff]   ;;  %v5961_v53 = vld [vmem:[#allocation3 + $0x1cc] ss:$16 sps:$4 sm:$0xff]  }
 0x64f   :  { %v2053_v28 = vsel %vm2048_vm6, %v2044_v3, %v2036_v1  ;;  %v5970_v1 = vld [vmem:[#allocation3 + $0x3ac] ss:$16 sps:$4 sm:$0xff]   ;;  %v5965_v3 = vld [vmem:[#allocation3 + $0x1a8] ss:$16 sps:$4 sm:$0xff]  }
 0x650   :  { %3446 = vmatpush1.bf16.msra.mxu1 %v5839_v31  ;;  %v5899_v31 = vld [vmem:[#allocation3 + $0x500] ss:$16 sps:$4 sm:$0xff]  }
 0x651   :  { %3487 = vmatpush1.bf16.msra.mxu0 %v5842_v8  ;;  %3447 = vmatprep.subr.bf16.mxu1 %v5847_v2  ;;  %v2055_v8 = vsel %vm2048_vm6, %v2046_v17, %v2038_v12  ;;  %v5907_v2 = vld [vmem:[#allocation3 + $0xec] ss:$16 sps:$4 sm:$0xff]   ;;  %v5968_v12 = vld [vmem:[#allocation3 + $0x3a8] ss:$16 sps:$4 sm:$0xff]  }
 0x652   :  { %3488 = vmatprep.subr.bf16.mxu0 %v5850_v22  ;;  %v5910_v22 = vld [vmem:[#allocation3 + $0x2ec] ss:$16 sps:$4 sm:$0xff]  }
 0x653   :  { %v5973_v17 = vld [vmem:[#allocation3 + $0x18c] ss:$16 sps:$4 sm:$0xff]  }
 0x654   :  { %3448 = vmatpush1.bf16.msra.mxu1 %v5845_v55  ;;  %v7022_v55 = vpack.c.b16 %v2053_v28, %v2053_v28  ;;  %v5979_v28 = vld [vmem:[#allocation3 + $0x16c] ss:$16 sps:$4 sm:$0xff]  }
 0x655   :  { %3489 = vmatpush1.bf16.msra.mxu0 %v5848_v32  ;;  %3449 = vmatprep.subr.bf16.mxu1 %v5853_v30  ;;  %v7024_v32 = vpack.c.b16 %v2055_v8, %v2055_v8  ;;  %v5905_v30 = vld [vmem:[#allocation3 + $0xe8] ss:$16 sps:$4 sm:$0xff]   ;;  %v5982_v8 = vld [vmem:[#allocation3 + $0x36c] ss:$16 sps:$4 sm:$0xff]  }
 0x656   :  { %3490 = vmatprep.subr.bf16.mxu0 %v5856_v7  ;;  %v5908_v7 = vld [vmem:[#allocation3 + $0x2e8] ss:$16 sps:$4 sm:$0xff]  }
 0x658   :  { %3450 = vmatpush1.bf16.msra.mxu1 %v5851_v16  ;;  %v5913_v16 = vld [vmem:[#allocation3 + $0xcc] ss:$16 sps:$4 sm:$0xff]  }
 0x659   :  { %3491 = vmatpush1.bf16.msra.mxu0 %v5854_v24  ;;  %3451 = vmatprep.subr.bf16.mxu1 %v5859_v14  ;;  %v5916_v24 = vld [vmem:[#allocation3 + $0x2cc] ss:$16 sps:$4 sm:$0xff]   ;;  %v5911_v14 = vld [vmem:[#allocation3 + $0xc8] ss:$16 sps:$4 sm:$0xff]  }
 0x65a   :  { %3492 = vmatprep.subr.bf16.mxu0 %v5862_v40  ;;  %v5914_v40 = vld [vmem:[#allocation3 + $0x2c8] ss:$16 sps:$4 sm:$0xff]  }
 0x65c   :  { %3452 = vmatpush2.bf16.msra.mxu1 %v5857_v49  ;;  %v5919_v49 = vld [vmem:[#allocation3 + $0xac] ss:$16 sps:$4 sm:$0xff]  }
 0x65d   :  { %3493 = vmatpush2.bf16.msra.mxu0 %v5860_v33  ;;  %3453 = vmatprep.subr.bf16.mxu1 %v5865_v21  ;;  %v5922_v33 = vld [vmem:[#allocation3 + $0x2ac] ss:$16 sps:$4 sm:$0xff]   ;;  %v5917_v21 = vld [vmem:[#allocation3 + $0xa8] ss:$16 sps:$4 sm:$0xff]  }
 0x65e   :  { %3494 = vmatprep.subr.bf16.mxu0 %v5868_v42  ;;  %v5920_v42 = vld [vmem:[#allocation3 + $0x2a8] ss:$16 sps:$4 sm:$0xff]  }
 0x660   :  { %3454 = vmatpush2.bf16.msra.mxu1 %v5863_v0  ;;  %v5925_v0 = vld [vmem:[#allocation3 + $0x8c] ss:$16 sps:$4 sm:$0xff]  }
 0x661   :  { %3495 = vmatpush2.bf16.msra.mxu0 %v5866_v44  ;;  %3455 = vmatprep.subr.bf16.mxu1 %v5871_v57  ;;  %v5928_v44 = vld [vmem:[#allocation3 + $0x28c] ss:$16 sps:$4 sm:$0xff]   ;;  %v5923_v57 = vld [vmem:[#allocation3 + $0x88] ss:$16 sps:$4 sm:$0xff]  }
 0x662   :  { %3496 = vmatprep.subr.bf16.mxu0 %v5874_v39  ;;  %v5926_v39 = vld [vmem:[#allocation3 + $0x288] ss:$16 sps:$4 sm:$0xff]  }
 0x664   :  { %3456 = vmatpush2.bf16.msra.mxu1 %v5869_v37  ;;  %v5931_v37 = vld [vmem:[#allocation3 + $0x6c] ss:$16 sps:$4 sm:$0xff]  }
 0x665   :  { %3497 = vmatpush2.bf16.msra.mxu0 %v5872_v10  ;;  %3457 = vmatprep.subr.bf16.mxu1 %v5877_v58  ;;  %v5934_v10 = vld [vmem:[#allocation3 + $0x26c] ss:$16 sps:$4 sm:$0xff]   ;;  %v5929_v58 = vld [vmem:[#allocation3 + $0x68] ss:$16 sps:$4 sm:$0xff]  }
 0x666   :  { %3498 = vmatprep.subr.bf16.mxu0 %v5880_v11  ;;  %v5940_v11 = vld [vmem:[#allocation3 + $0x24c] ss:$16 sps:$4 sm:$0xff]  }
 0x668   :  { %3458 = vmatpush2.bf16.msra.mxu1 %v5875_v38  ;;  %v5935_v38 = vld [vmem:[#allocation3 + $0x48] ss:$16 sps:$4 sm:$0xff]  }
 0x669   :  { %3499 = vmatpush2.bf16.msra.mxu0 %v5878_v62  ;;  %3459 = vmatprep.subr.bf16.mxu1 %v5883_v50  ;;  %v5938_v62 = vld [vmem:[#allocation3 + $0x248] ss:$16 sps:$4 sm:$0xff]   ;;  %v5943_v50 = vld [vmem:[#allocation3 + $0x2c] ss:$16 sps:$4 sm:$0xff]  }
 0x66a   :  { %3500 = vmatprep.subr.bf16.mxu0 %v5886_v43  ;;  %v5946_v43 = vld [vmem:[#allocation3 + $0x22c] ss:$16 sps:$4 sm:$0xff]  }
 0x66c   :  { %3460 = vmatpush2.bf16.msra.mxu1 %v5881_v60  ;;  %v5941_v60 = vld [vmem:[#allocation3 + $0x28] ss:$16 sps:$4 sm:$0xff]  }
 0x66d   :  { %3501 = vmatpush2.bf16.msra.mxu0 %v5884_v41  ;;  %3461 = vmatprep.subr.bf16.mxu1 %v5889_v5  ;;  %v5944_v41 = vld [vmem:[#allocation3 + $0x228] ss:$16 sps:$4 sm:$0xff]   ;;  %v5949_v5 = vld [vmem:[#allocation3 + $0xc] ss:$16 sps:$4 sm:$0xff]  }
 0x66e   :  { %3502 = vmatprep.subr.bf16.mxu0 %v5892_v4  ;;  %v5952_v4 = vld [vmem:[#allocation3 + $0x20c] ss:$16 sps:$4 sm:$0xff]  }
 0x670   :  { %3462 = vmatpush2.bf16.msra.mxu1 %v5887_v25  ;;  %v5947_v25 = vld [vmem:[#allocation3 + $0x8] ss:$16 sps:$4 sm:$0xff]  }
 0x671   :  { %3503 = vmatpush2.bf16.msra.mxu0 %v5890_v26  ;;  %3463 = vmatprep.subr.bf16.mxu1 %v5895_v34  ;;  %v5950_v26 = vld [vmem:[#allocation3 + $0x208] ss:$16 sps:$4 sm:$0xff]   ;;  %v5958_v34 = vld [vmem:[#allocation3 + $0x3ec] ss:$16 sps:$4 sm:$0xff]  }
 0x672   :  { %3504 = vmatprep.subr.bf16.mxu0 %v5898_v47  ;;  %v5964_v47 = vld [vmem:[#allocation3 + $0x3cc] ss:$16 sps:$4 sm:$0xff]  }
 0x674   :  { %3464 = vmatpush2.bf16.msra.mxu1 %v5893_v61  ;;  %v5959_v61 = vld [vmem:[#allocation3 + $0x1c8] ss:$16 sps:$4 sm:$0xff]  }
 0x675   :  { %3505 = vmatpush2.bf16.msra.mxu0 %v5896_v45  ;;  %3465 = vmatprep.subr.bf16.mxu1 %v5901_v18  ;;  %v5962_v45 = vld [vmem:[#allocation3 + $0x3c8] ss:$16 sps:$4 sm:$0xff]   ;;  %v5967_v18 = vld [vmem:[#allocation3 + $0x1ac] ss:$16 sps:$4 sm:$0xff]  }
 0x676   :  { %3506 = vmatprep.subr.bf16.mxu0 %v5904_v29  ;;  %v5976_v29 = vld [vmem:[#allocation3 + $0x38c] ss:$16 sps:$4 sm:$0xff]  }
 0x678   :  { %3466 = vmatpush2.bf16.msra.mxu1 %v5899_v31  ;;  %v5971_v31 = vld [vmem:[#allocation3 + $0x188] ss:$16 sps:$4 sm:$0xff]  }
 0x679   :  { %3507 = vmatpush2.bf16.msra.mxu0 %v5902_v27  ;;  %3517 = vmatprep.subr.bf16.mxu1 %v5907_v2  ;;  %v5974_v27 = vld [vmem:[#allocation3 + $0x388] ss:$16 sps:$4 sm:$0xff]  }
 0x67a   :  { %3558 = vmatprep.subr.bf16.mxu0 %v5910_v22  ;;  %v5977_v2 = vld [vmem:[#allocation3 + $0x168] ss:$16 sps:$4 sm:$0xff]  }
 0x67b   :  { %3468 = vmatmul.mubr.bf16.vlgmr.msra.gmra.mxu1 %v7022_v55  ;;  %v5980_v22 = vld [vmem:[#allocation3 + $0x368] ss:$16 sps:$4 sm:$0xff]  }
 0x67c   :  { %3509 = vmatmul.mubr.bf16.vlgmr.msra.gmra.mxu0 %v7024_v32  ;;  %3518 = vmatpush1.bf16.msra.mxu1 %v5905_v30  ;;  %v5985_v30 = vld [vmem:[#allocation3 + $0x14c] ss:$16 sps:$4 sm:$0xff]  }
 0x67d   :  { %3559 = vmatpush1.bf16.msra.mxu0 %v5908_v7  ;;  %3519 = vmatprep.subr.bf16.mxu1 %v5913_v16  ;;  %v5988_v7 = vld [vmem:[#allocation3 + $0x34c] ss:$16 sps:$4 sm:$0xff]   ;;  %v5983_v16 = vld [vmem:[#allocation3 + $0x148] ss:$16 sps:$4 sm:$0xff]  }
 0x67e   :  { %3560 = vmatprep.subr.bf16.mxu0 %v5916_v24  ;;  %3549 = vmatprep.mubr.bf16.mxu1 %v6973_v6  ;;  %v5932_v6 = vld [vmem:[#allocation3 + $0x268] ss:$16 sps:$4 sm:$0xff]  }
 0x67f   :  { %3590 = vmatprep.mubr.bf16.mxu0 %v6976_v52  ;;  %v5937_v52 = vld [vmem:[#allocation3 + $0x4c] ss:$16 sps:$4 sm:$0xff]   ;;  %v5986_v24 = vld [vmem:[#allocation3 + $0x348] ss:$16 sps:$4 sm:$0xff]  }
 0x680   :  { %3520 = vmatpush1.bf16.msra.mxu1 %v5911_v14  ;;  %v5991_v14 = vld [vmem:[#allocation3 + $0x12c] ss:$16 sps:$4 sm:$0xff]  }
 0x681   :  { %3561 = vmatpush1.bf16.msra.mxu0 %v5914_v40  ;;  %3521 = vmatprep.subr.bf16.mxu1 %v5919_v49  ;;  %v5994_v40 = vld [vmem:[#allocation3 + $0x32c] ss:$16 sps:$4 sm:$0xff]   ;;  %v5989_v49 = vld [vmem:[#allocation3 + $0x128] ss:$16 sps:$4 sm:$0xff]  }
 0x682   :  { %3562 = vmatprep.subr.bf16.mxu0 %v5922_v33  ;;  %v5992_v33 = vld [vmem:[#allocation3 + $0x328] ss:$16 sps:$4 sm:$0xff]  }
 0x684   :  { %3522 = vmatpush1.bf16.msra.mxu1 %v5917_v21  ;;  %v5997_v21 = vld [vmem:[#allocation3 + $0x10c] ss:$16 sps:$4 sm:$0xff]  }
 0x685   :  { %3563 = vmatpush1.bf16.msra.mxu0 %v5920_v42  ;;  %3523 = vmatprep.subr.bf16.mxu1 %v5925_v0  ;;  %v6000_v42 = vld [vmem:[#allocation3 + $0x30c] ss:$16 sps:$4 sm:$0xff]   ;;  %v5995_v0 = vld [vmem:[#allocation3 + $0x108] ss:$16 sps:$4 sm:$0xff]  }
 0x686   :  { %3564 = vmatprep.subr.bf16.mxu0 %v5928_v44  ;;  %v5998_v44 = vld [vmem:[#allocation3 + $0x308] ss:$16 sps:$4 sm:$0xff]  }
 0x688   :  { %3524 = vmatpush1.bf16.msra.mxu1 %v5923_v57  ;;  %v6003_v57 = vld [vmem:[#allocation3 + $0x4ec] ss:$16 sps:$4 sm:$0xff]  }
 0x689   :  { %3565 = vmatpush1.bf16.msra.mxu0 %v5926_v39  ;;  %3525 = vmatprep.subr.bf16.mxu1 %v5931_v37  ;;  %v6006_v39 = vld [vmem:[#allocation3 + $0x6ec] ss:$16 sps:$4 sm:$0xff]   ;;  %v6001_v37 = vld [vmem:[#allocation3 + $0x4e8] ss:$16 sps:$4 sm:$0xff]  }
 0x68a   :  { %3566 = vmatprep.subr.bf16.mxu0 %v5934_v10  ;;  %v6004_v10 = vld [vmem:[#allocation3 + $0x6e8] ss:$16 sps:$4 sm:$0xff]  }
 0x68c   :  { %3526 = vmatpush1.bf16.msra.mxu1 %v5929_v58  ;;  %v6009_v58 = vld [vmem:[#allocation3 + $0x4cc] ss:$16 sps:$4 sm:$0xff]  }
 0x68d   :  { %3567 = vmatpush1.bf16.msra.mxu0 %v5932_v6  ;;  %3527 = vmatprep.subr.bf16.mxu1 %v5937_v52  ;;  %v6012_v6 = vld [vmem:[#allocation3 + $0x6cc] ss:$16 sps:$4 sm:$0xff]   ;;  %v6007_v52 = vld [vmem:[#allocation3 + $0x4c8] ss:$16 sps:$4 sm:$0xff]  }
 0x68e   :  { %3568 = vmatprep.subr.bf16.mxu0 %v5940_v11  ;;  %v6010_v11 = vld [vmem:[#allocation3 + $0x6c8] ss:$16 sps:$4 sm:$0xff]  }
 0x690   :  { %3528 = vmatpush1.bf16.msra.mxu1 %v5935_v38  ;;  %v6015_v38 = vld [vmem:[#allocation3 + $0x4ac] ss:$16 sps:$4 sm:$0xff]  }
 0x691   :  { %3569 = vmatpush1.bf16.msra.mxu0 %v5938_v62  ;;  %3529 = vmatprep.subr.bf16.mxu1 %v5943_v50  ;;  %v6018_v62 = vld [vmem:[#allocation3 + $0x6ac] ss:$16 sps:$4 sm:$0xff]   ;;  %v6013_v50 = vld [vmem:[#allocation3 + $0x4a8] ss:$16 sps:$4 sm:$0xff]  }
 0x692   :  { %3570 = vmatprep.subr.bf16.mxu0 %v5946_v43  ;;  %v6016_v43 = vld [vmem:[#allocation3 + $0x6a8] ss:$16 sps:$4 sm:$0xff]  }
 0x694   :  { %3530 = vmatpush1.bf16.msra.mxu1 %v5941_v60  ;;  %v6021_v60 = vld [vmem:[#allocation3 + $0x48c] ss:$16 sps:$4 sm:$0xff]  }
 0x695   :  { %3571 = vmatpush1.bf16.msra.mxu0 %v5944_v41  ;;  %3531 = vmatprep.subr.bf16.mxu1 %v5949_v5  ;;  %v6024_v41 = vld [vmem:[#allocation3 + $0x68c] ss:$16 sps:$4 sm:$0xff]  }
 0x696   :  { %3572 = vmatprep.subr.bf16.mxu0 %v5952_v4  ;;  %v6027_v5 = vld [vmem:[#allocation3 + $0x46c] ss:$16 sps:$4 sm:$0xff]  }
 0x697   :  { %v6030_v4 = vld [vmem:[#allocation3 + $0x66c] ss:$16 sps:$4 sm:$0xff]  }
 0x698   :  { %3532 = vmatpush1.bf16.msra.mxu1 %v5947_v25  ;;  %v6025_v25 = vld [vmem:[#allocation3 + $0x468] ss:$16 sps:$4 sm:$0xff]  }
 0x699   :  { %3573 = vmatpush1.bf16.msra.mxu0 %v5950_v26  ;;  %3533 = vmatprep.subr.bf16.mxu1 %v5955_v54  ;;  %v6028_v26 = vld [vmem:[#allocation3 + $0x668] ss:$16 sps:$4 sm:$0xff]   ;;  %v6033_v54 = vld [vmem:[#allocation3 + $0x44c] ss:$16 sps:$4 sm:$0xff]  }
 0x69a   :  { %3574 = vmatprep.subr.bf16.mxu0 %v5958_v34  ;;  %v6034_v34 = vld [vmem:[#allocation3 + $0x648] ss:$16 sps:$4 sm:$0xff]  }
 0x69c   :  { %3534 = vmatpush2.bf16.msra.mxu1 %v5953_v59  ;;  %v6039_v59 = vld [vmem:[#allocation3 + $0x42c] ss:$16 sps:$4 sm:$0xff]  }
 0x69d   :  { %3575 = vmatpush2.bf16.msra.mxu0 %v5956_v15  ;;  %3535 = vmatprep.subr.bf16.mxu1 %v5961_v53  ;;  %v6042_v15 = vld [vmem:[#allocation3 + $0x62c] ss:$16 sps:$4 sm:$0xff]   ;;  %v6037_v53 = vld [vmem:[#allocation3 + $0x428] ss:$16 sps:$4 sm:$0xff]  }
 0x69e   :  { %3576 = vmatprep.subr.bf16.mxu0 %v5964_v47  ;;  %v6040_v47 = vld [vmem:[#allocation3 + $0x628] ss:$16 sps:$4 sm:$0xff]  }
 0x6a0   :  { %3536 = vmatpush2.bf16.msra.mxu1 %v5959_v61  ;;  %v6045_v61 = vld [vmem:[#allocation3 + $0x40c] ss:$16 sps:$4 sm:$0xff]  }
 0x6a1   :  { %3577 = vmatpush2.bf16.msra.mxu0 %v5962_v45  ;;  %3537 = vmatprep.subr.bf16.mxu1 %v5967_v18  ;;  %v6048_v45 = vld [vmem:[#allocation3 + $0x60c] ss:$16 sps:$4 sm:$0xff]   ;;  %v6043_v18 = vld [vmem:[#allocation3 + $0x408] ss:$16 sps:$4 sm:$0xff]  }
 0x6a2   :  { %3578 = vmatprep.subr.bf16.mxu0 %v5970_v1  ;;  %v6046_v1 = vld [vmem:[#allocation3 + $0x608] ss:$16 sps:$4 sm:$0xff]  }
 0x6a4   :  { %3538 = vmatpush2.bf16.msra.mxu1 %v5965_v3  ;;  %v6051_v3 = vld [vmem:[#allocation3 + $0x5ec] ss:$16 sps:$4 sm:$0xff]  }
 0x6a5   :  { %3579 = vmatpush2.bf16.msra.mxu0 %v5968_v12  ;;  %3539 = vmatprep.subr.bf16.mxu1 %v5973_v17  ;;  %v6054_v12 = vld [vmem:[#allocation3 + $0x7ec] ss:$16 sps:$4 sm:$0xff]   ;;  %v6049_v17 = vld [vmem:[#allocation3 + $0x5e8] ss:$16 sps:$4 sm:$0xff]  }
 0x6a6   :  { %3580 = vmatprep.subr.bf16.mxu0 %v5976_v29  ;;  %v6052_v29 = vld [vmem:[#allocation3 + $0x7e8] ss:$16 sps:$4 sm:$0xff]  }
 0x6a8   :  { %3540 = vmatpush2.bf16.msra.mxu1 %v5971_v31  ;;  %v6057_v31 = vld [vmem:[#allocation3 + $0x5cc] ss:$16 sps:$4 sm:$0xff]  }
 0x6a9   :  { %3581 = vmatpush2.bf16.msra.mxu0 %v5974_v27  ;;  %3541 = vmatprep.subr.bf16.mxu1 %v5979_v28  ;;  %v6060_v27 = vld [vmem:[#allocation3 + $0x7cc] ss:$16 sps:$4 sm:$0xff]   ;;  %v6055_v28 = vld [vmem:[#allocation3 + $0x5c8] ss:$16 sps:$4 sm:$0xff]  }
 0x6aa   :  { %3582 = vmatprep.subr.bf16.mxu0 %v5982_v8  ;;  %v6058_v8 = vld [vmem:[#allocation3 + $0x7c8] ss:$16 sps:$4 sm:$0xff]  }
 0x6ac   :  { %3542 = vmatpush2.bf16.msra.mxu1 %v5977_v2  ;;  %v6063_v2 = vld [vmem:[#allocation3 + $0x5ac] ss:$16 sps:$4 sm:$0xff]  }
 0x6ad   :  { %3583 = vmatpush2.bf16.msra.mxu0 %v5980_v22  ;;  %3543 = vmatprep.subr.bf16.mxu1 %v5985_v30  ;;  %v6066_v22 = vld [vmem:[#allocation3 + $0x7ac] ss:$16 sps:$4 sm:$0xff]   ;;  %v6061_v30 = vld [vmem:[#allocation3 + $0x5a8] ss:$16 sps:$4 sm:$0xff]  }
 0x6ae   :  { %3584 = vmatprep.subr.bf16.mxu0 %v5988_v7  ;;  %v6064_v7 = vld [vmem:[#allocation3 + $0x7a8] ss:$16 sps:$4 sm:$0xff]  }
 0x6b0   :  { %3544 = vmatpush2.bf16.msra.mxu1 %v5983_v16  ;;  %v6069_v16 = vld [vmem:[#allocation3 + $0x58c] ss:$16 sps:$4 sm:$0xff]  }
 0x6b1   :  { %3585 = vmatpush2.bf16.msra.mxu0 %v5986_v24  ;;  %3545 = vmatprep.subr.bf16.mxu1 %v5991_v14  ;;  %v6072_v24 = vld [vmem:[#allocation3 + $0x78c] ss:$16 sps:$4 sm:$0xff]   ;;  %v6067_v14 = vld [vmem:[#allocation3 + $0x588] ss:$16 sps:$4 sm:$0xff]  }
 0x6b2   :  { %3586 = vmatprep.subr.bf16.mxu0 %v5994_v40  ;;  %v6070_v40 = vld [vmem:[#allocation3 + $0x788] ss:$16 sps:$4 sm:$0xff]  }
 0x6b4   :  { %3546 = vmatpush2.bf16.msra.mxu1 %v5989_v49  ;;  %v6075_v49 = vld [vmem:[#allocation3 + $0x56c] ss:$16 sps:$4 sm:$0xff]  }
 0x6b5   :  { %3587 = vmatpush2.bf16.msra.mxu0 %v5992_v33  ;;  %3547 = vmatprep.subr.bf16.mxu1 %v5997_v21  ;;  %v6078_v33 = vld [vmem:[#allocation3 + $0x76c] ss:$16 sps:$4 sm:$0xff]   ;;  %v6073_v21 = vld [vmem:[#allocation3 + $0x568] ss:$16 sps:$4 sm:$0xff]  }
 0x6b6   :  { %3588 = vmatprep.subr.bf16.mxu0 %v6000_v42  ;;  %v6076_v42 = vld [vmem:[#allocation3 + $0x768] ss:$16 sps:$4 sm:$0xff]  }
 0x6b8   :  { %3548 = vmatpush2.bf16.msra.mxu1 %v5995_v0  ;;  %v6081_v0 = vld [vmem:[#allocation3 + $0x54c] ss:$16 sps:$4 sm:$0xff]  }
 0x6b9   :  { %3589 = vmatpush2.bf16.msra.mxu0 %v5998_v44  ;;  %3599 = vmatprep.subr.bf16.mxu1 %v6003_v57  ;;  %v6084_v44 = vld [vmem:[#allocation3 + $0x74c] ss:$16 sps:$4 sm:$0xff]   ;;  %v6079_v57 = vld [vmem:[#allocation3 + $0x548] ss:$16 sps:$4 sm:$0xff]  }
 0x6ba   :  { %3640 = vmatprep.subr.bf16.mxu0 %v6006_v39  ;;  %v6082_v39 = vld [vmem:[#allocation3 + $0x748] ss:$16 sps:$4 sm:$0xff]  }
 0x6bb   :  { %3550 = vmatmul.mubr.bf16.vlgmr.msra.gmra.mxu1 %v6998_v51  ;;  %v6019_v51 = vld [vmem:[#allocation3 + $0x488] ss:$16 sps:$4 sm:$0xff]  }
 0x6bc   :  { %3591 = vmatmul.mubr.bf16.vlgmr.msra.gmra.mxu0 %v7000_v48  ;;  %3600 = vmatpush1.bf16.msra.mxu1 %v6001_v37  ;;  %v6022_v48 = vld [vmem:[#allocation3 + $0x688] ss:$16 sps:$4 sm:$0xff]   ;;  %v6087_v37 = vld [vmem:[#allocation3 + $0x52c] ss:$16 sps:$4 sm:$0xff]  }
 0x6bd   :  { %3641 = vmatpush1.bf16.msra.mxu0 %v6004_v10  ;;  %3601 = vmatprep.subr.bf16.mxu1 %v6009_v58  ;;  %v6090_v10 = vld [vmem:[#allocation3 + $0x72c] ss:$16 sps:$4 sm:$0xff]   ;;  %v6085_v58 = vld [vmem:[#allocation3 + $0x528] ss:$16 sps:$4 sm:$0xff]  }
 0x6be   :  { %3642 = vmatprep.subr.bf16.mxu0 %v6012_v6  ;;  %3631 = vmatprep.mubr.bf16.mxu1 %v7004_v36  ;;  %v6036_v36 = vld [vmem:[#allocation3 + $0x64c] ss:$16 sps:$4 sm:$0xff]   ;;  %v6088_v6 = vld [vmem:[#allocation3 + $0x728] ss:$16 sps:$4 sm:$0xff]  }
 0x6bf   :  { %3672 = vmatprep.mubr.bf16.mxu0 %v7006_v46  ;;  %v6031_v46 = vld [vmem:[#allocation3 + $0x448] ss:$16 sps:$4 sm:$0xff]  }
 0x6c0   :  { %3602 = vmatpush1.bf16.msra.mxu1 %v6007_v52  ;;  %v6093_v52 = vld [vmem:[#allocation3 + $0x50c] ss:$16 sps:$4 sm:$0xff]  }
 0x6c1   :  { %3643 = vmatpush1.bf16.msra.mxu0 %v6010_v11  ;;  %3603 = vmatprep.subr.bf16.mxu1 %v6015_v38  ;;  %v6096_v11 = vld [vmem:[#allocation3 + $0x70c] ss:$16 sps:$4 sm:$0xff]   ;;  %v6091_v38 = vld [vmem:[#allocation3 + $0x508] ss:$16 sps:$4 sm:$0xff]  }
 0x6c2   :  { %3644 = vmatprep.subr.bf16.mxu0 %v6018_v62  ;;  %v6094_v62 = vld [vmem:[#allocation3 + $0x708] ss:$16 sps:$4 sm:$0xff]  }
 0x6c4   :  { %3604 = vmatpush1.bf16.msra.mxu1 %v6013_v50  ;;  %v6099_v50 = vld [vmem:[%s7275_s8 + $0x64] ss:$16 sps:$4 sm:$0xff]  }
 0x6c5   :  { %3645 = vmatpush1.bf16.msra.mxu0 %v6016_v43  ;;  %3605 = vmatprep.subr.bf16.mxu1 %v6021_v60  ;;  %v6102_v43 = vld [vmem:[%s7275_s8 + $0x6c] ss:$16 sps:$4 sm:$0xff]   ;;  %v6097_v60 = vld [vmem:[%s7275_s8 + $0x60] ss:$16 sps:$4 sm:$0xff]  }
 0x6c6   :  { %3646 = vmatprep.subr.bf16.mxu0 %v6024_v41  ;;  %v6100_v41 = vld [vmem:[%s7275_s8 + $0x68] ss:$16 sps:$4 sm:$0xff]  }
 0x6c8   :  { %3606 = vmatpush1.bf16.msra.mxu1 %v6019_v51  ;;  %v6105_v51 = vld [vmem:[%s7275_s8 + $0x44] ss:$16 sps:$4 sm:$0xff]  }
 0x6c9   :  { %3647 = vmatpush1.bf16.msra.mxu0 %v6022_v48  ;;  %3607 = vmatprep.subr.bf16.mxu1 %v6027_v5  ;;  %v6108_v48 = vld [vmem:[%s7275_s8 + $0x4c] ss:$16 sps:$4 sm:$0xff]  }
 0x6ca   :  { %3648 = vmatprep.subr.bf16.mxu0 %v6030_v4 }
 0x6cc   :  { %3608 = vmatpush1.bf16.msra.mxu1 %v6025_v25 }
 0x6cd   :  { %3649 = vmatpush1.bf16.msra.mxu0 %v6028_v26  ;;  %3609 = vmatprep.subr.bf16.mxu1 %v6033_v54  ;;  %v6103_v26 = vld [vmem:[%s7275_s8 + $0x40] ss:$16 sps:$4 sm:$0xff]   ;;  %v6106_v54 = vld [vmem:[%s7275_s8 + $0x48] ss:$16 sps:$4 sm:$0xff]  }
 0x6ce   :  { %3650 = vmatprep.subr.bf16.mxu0 %v6036_v36 }
 0x6d0   :  { %3610 = vmatpush1.bf16.msra.mxu1 %v6031_v46 }
 0x6d1   :  { %3651 = vmatpush1.bf16.msra.mxu0 %v6034_v34  ;;  %3611 = vmatprep.subr.bf16.mxu1 %v6039_v59  ;;  %v7285_v59 = vmov 0  }
 0x6d2   :  { %3652 = vmatprep.subr.bf16.mxu0 %v6042_v15 }
 0x6d4   :  { %3612 = vmatpush1.bf16.msra.mxu1 %v6037_v53 }
 0x6d5   :  { %3653 = vmatpush1.bf16.msra.mxu0 %v6040_v47  ;;  %3613 = vmatprep.subr.bf16.mxu1 %v6045_v61  ;;  %v6109_v47 = vld [vmem:[%s7275_s8 + $0x20] ss:$16 sps:$4 sm:$0xff]   ;;  %v6112_v61 = vld [vmem:[%s7275_s8 + $0x28] ss:$16 sps:$4 sm:$0xff]  }
 0x6d6   :  { %3654 = vmatprep.subr.bf16.mxu0 %v6048_v45 }
 0x6d8   :  { %3614 = vmatpush1.bf16.msra.mxu1 %v6043_v18 }
 0x6d9   :  { %3655 = vmatpush1.bf16.msra.mxu0 %v6046_v1  ;;  %3615 = vmatprep.subr.bf16.mxu1 %v6051_v3  ;;  %v6117_v1 = vld [vmem:[%s7275_s8 + $0x4] ss:$16 sps:$4 sm:$0xff]   ;;  %v6120_v3 = vld [vmem:[%s7275_s8 + $0xc] ss:$16 sps:$4 sm:$0xff]  }
 0x6da   :  { %3656 = vmatprep.subr.bf16.mxu0 %v6054_v12  ;;  %v6115_v12 = vld [vmem:[%s7275_s8] ss:$16 sps:$4 sm:$0xff]  }
 0x6dc   :  { %3616 = vmatpush2.bf16.msra.mxu1 %v6049_v17  ;;  %v6118_v17 = vld [vmem:[%s7275_s8 + $0x8] ss:$16 sps:$4 sm:$0xff]  }
 0x6dd   :  { %3657 = vmatpush2.bf16.msra.mxu0 %v6052_v29  ;;  %3617 = vmatprep.subr.bf16.mxu1 %v6057_v31 }
 0x6de   :  { %3658 = vmatprep.subr.bf16.mxu0 %v6060_v27 }
 0x6e0   :  { %3618 = vmatpush2.bf16.msra.mxu1 %v6055_v28 }
 0x6e1   :  { %3659 = vmatpush2.bf16.msra.mxu0 %v6058_v8  ;;  %3619 = vmatprep.subr.bf16.mxu1 %v6063_v2 }
 0x6e2   :  { %3660 = vmatprep.subr.bf16.mxu0 %v6066_v22 }
 0x6e4   :  { %3620 = vmatpush2.bf16.msra.mxu1 %v6061_v30 }
 0x6e5   :  { %3661 = vmatpush2.bf16.msra.mxu0 %v6064_v7  ;;  %3621 = vmatprep.subr.bf16.mxu1 %v6069_v16 }
 0x6e6   :  { %3662 = vmatprep.subr.bf16.mxu0 %v6072_v24 }
 0x6e8   :  { %3622 = vmatpush2.bf16.msra.mxu1 %v6067_v14 }
 0x6e9   :  { %3663 = vmatpush2.bf16.msra.mxu0 %v6070_v40  ;;  %3623 = vmatprep.subr.bf16.mxu1 %v6075_v49  ;;  %v6123_v49 = vld [vmem:[#allocation8 + $0x74] ss:$8 sps:$4 sm:$0xff]  }
 0x6ea   :  { %3664 = vmatprep.subr.bf16.mxu0 %v6078_v33  ;;  %v6126_v33 = vld [vmem:[#allocation8 + $0x174] ss:$8 sps:$4 sm:$0xff]  }
 0x6ec   :  { %3624 = vmatpush2.bf16.msra.mxu1 %v6073_v21  ;;  %v6124_v21 = vld [vmem:[#allocation8 + $0x170] ss:$8 sps:$4 sm:$0xff]  }
 0x6ed   :  { %3665 = vmatpush2.bf16.msra.mxu0 %v6076_v42  ;;  %3625 = vmatprep.subr.bf16.mxu1 %v6081_v0  ;;  %v6129_v42 = vld [vmem:[#allocation8 + $0x64] ss:$8 sps:$4 sm:$0xff]  }
 0x6ee   :  { %3666 = vmatprep.subr.bf16.mxu0 %v6084_v44  ;;  %v6132_v0 = vld [vmem:[#allocation8 + $0x164] ss:$8 sps:$4 sm:$0xff]   ;;  %v6127_v44 = vld [vmem:[#allocation8 + $0x60] ss:$8 sps:$4 sm:$0xff]  }
 0x6f0   :  { %3626 = vmatpush2.bf16.msra.mxu1 %v6079_v57  ;;  %v6130_v57 = vld [vmem:[#allocation8 + $0x160] ss:$8 sps:$4 sm:$0xff]  }
 0x6f1   :  { %3667 = vmatpush2.bf16.msra.mxu0 %v6082_v39  ;;  %3627 = vmatprep.subr.bf16.mxu1 %v6087_v37  ;;  %v6135_v39 = vld [vmem:[#allocation8 + $0x54] ss:$8 sps:$4 sm:$0xff]  }
 0x6f2   :  { %3668 = vmatprep.subr.bf16.mxu0 %v6090_v10  ;;  %v6138_v37 = vld [vmem:[#allocation8 + $0x154] ss:$8 sps:$4 sm:$0xff]   ;;  %v6133_v10 = vld [vmem:[#allocation8 + $0x50] ss:$8 sps:$4 sm:$0xff]  }
 0x6f4   :  { %3628 = vmatpush2.bf16.msra.mxu1 %v6085_v58  ;;  %v6136_v58 = vld [vmem:[#allocation8 + $0x150] ss:$8 sps:$4 sm:$0xff]  }
 0x6f5   :  { %3669 = vmatpush2.bf16.msra.mxu0 %v6088_v6  ;;  %3629 = vmatprep.subr.bf16.mxu1 %v6093_v52  ;;  %v6141_v6 = vld [vmem:[#allocation8 + $0x44] ss:$8 sps:$4 sm:$0xff]  }
 0x6f6   :  { %3670 = vmatprep.subr.bf16.mxu0 %v6096_v11  ;;  %v6144_v52 = vld [vmem:[#allocation8 + $0x144] ss:$8 sps:$4 sm:$0xff]   ;;  %v6139_v11 = vld [vmem:[#allocation8 + $0x40] ss:$8 sps:$4 sm:$0xff]  }
 0x6f8   :  { %3630 = vmatpush2.bf16.msra.mxu1 %v6091_v38  ;;  %v6142_v38 = vld [vmem:[#allocation8 + $0x140] ss:$8 sps:$4 sm:$0xff]  }
 0x6f9   :  { %3671 = vmatpush2.bf16.msra.mxu0 %v6094_v62  ;;  %3861 = vmatprep.subr.bf16.mxu1 %v6099_v50  ;;  %v6147_v62 = vld [vmem:[#allocation8 + $0x34] ss:$8 sps:$4 sm:$0xff]  }
 0x6fa   :  { %3904 = vmatprep.subr.bf16.mxu0 %v6102_v43  ;;  %v6150_v50 = vld [vmem:[#allocation8 + $0x134] ss:$8 sps:$4 sm:$0xff]   ;;  %v6145_v43 = vld [vmem:[#allocation8 + $0x30] ss:$8 sps:$4 sm:$0xff]  }
 0x6fb   :  { %v3387_v5 = vpop.f32.mrf.mxu1  ;;  %3632 = vmatmul.mubr.bf16.vlgmr.msra.gmra.mxu1 %v7022_v55  ;;  %v6111_v55 = vld [vmem:[%s7275_s8 + $0x24] ss:$16 sps:$4 sm:$0xff]  }
 0x6fc   :  { %v3428_v4 = vpop.f32.mrf.mxu0  ;;  %3673 = vmatmul.mubr.bf16.vlgmr.msra.gmra.mxu0 %v7024_v32  ;;  %3862 = vmatpush1.bf16.msra.mxu1 %v6097_v60  ;;  %v6114_v32 = vld [vmem:[%s7275_s8 + $0x2c] ss:$16 sps:$4 sm:$0xff]   ;;  %v6148_v60 = vld [vmem:[#allocation8 + $0x130] ss:$8 sps:$4 sm:$0xff]  }
 0x6fd   :  { %v3429_v25 = vadd.f32 %v3428_v4, %v3387_v5  ;;  %3905 = vmatpush1.bf16.msra.mxu0 %v6100_v41  ;;  %v3389_v36 = vpop.f32.mrf.mxu1  ;;  %3863 = vmatprep.subr.bf16.mxu1 %v6105_v51  ;;  %v6153_v41 = vld [vmem:[#allocation8 + $0x24] ss:$8 sps:$4 sm:$0xff]   ;;  %v6154_v5 = vld [vmem:[#allocation8 + $0x120] ss:$8 sps:$4 sm:$0xff]  }
 0x6fe   :  { %v3430_v46 = vpop.f32.mrf.mxu0  ;;  %3906 = vmatprep.subr.bf16.mxu0 %v6108_v48  ;;  %3885 = vmatprep.mubr.bf16.mxu1 %v7285_v59  ;;  %v6156_v51 = vld [vmem:[#allocation8 + $0x124] ss:$8 sps:$4 sm:$0xff]   ;;  %v6151_v48 = vld [vmem:[#allocation8 + $0x20] ss:$8 sps:$4 sm:$0xff]  }
 0x6ff   :  { %v3431_v34 = vadd.f32 %v3430_v46, %v3389_v36  ;;  %3928 = vmatprep.mubr.bf16.mxu0 %v7285_v59  ;;  %v3391_v15 = vpop.f32.mrf.mxu1  ;;  %v6157_v46 = vld [vmem:[#allocation8 + $0x10] ss:$8 sps:$4 sm:$0xff]  }
 0x700   :  { %v3432_v53 = vpop.f32.mrf.mxu0  ;;  %3864 = vmatpush1.bf16.msra.mxu1 %v6103_v26  ;;  %v6159_v26 = vld [vmem:[#allocation8 + $0x14] ss:$8 sps:$4 sm:$0xff]  }
 0x701   :  { %3907 = vmatpush1.bf16.msra.mxu0 %v6106_v54  ;;  %v3392_v45 = vpop.f32.mrf.mxu1  ;;  %3865 = vmatprep.subr.bf16.mxu1 %v6111_v55  ;;  %v6162_v54 = vld [vmem:[#allocation8 + $0x114] ss:$8 sps:$4 sm:$0xff]   ;;  %v6160_v55 = vld [vmem:[#allocation8 + $0x110] ss:$8 sps:$4 sm:$0xff]  }
 0x702   :  { %v3433_v18 = vpop.f32.mrf.mxu0  ;;  %3908 = vmatprep.subr.bf16.mxu0 %v6114_v32  ;;  %v6166_v45 = vld [vmem:[#allocation8 + $0x100] ss:$8 sps:$4 sm:$0xff]  }
 0x704   :  { %3866 = vmatpush1.bf16.msra.mxu1 %v6109_v47  ;;  %v6163_v47 = vld [vmem:[#allocation8] ss:$8 sps:$4 sm:$0xff]  }
 0x705   :  { %3909 = vmatpush1.bf16.msra.mxu0 %v6112_v61  ;;  %3867 = vmatprep.subr.bf16.mxu1 %v6117_v1  ;;  %v6165_v61 = vld [vmem:[#allocation8 + $0x4] ss:$8 sps:$4 sm:$0xff]  }
 0x706   :  { %3910 = vmatprep.subr.bf16.mxu0 %v6120_v3  ;;  %v6168_v3 = vld [vmem:[#allocation8 + $0x104] ss:$8 sps:$4 sm:$0xff]  }
 0x708   :  { %3868 = vmatpush1.bf16.msra.mxu1 %v6115_v12  ;;  %v6171_v12 = vld [vmem:[#allocation8 + $0xf4] ss:$8 sps:$4 sm:$0xff]  }
 0x709   :  { %3911 = vmatpush1.bf16.msra.mxu0 %v6118_v17  ;;  %4543 = vmatprep.subr.bf16.mxu1 %v6123_v49  ;;  %v6174_v17 = vld [vmem:[#allocation8 + $0x1f4] ss:$8 sps:$4 sm:$0xff]   ;;  %v6189_v49 = vld [vmem:[#allocation8 + $0xc4] ss:$8 sps:$4 sm:$0xff]  }
 0x70a   :  { %4586 = vmatprep.subr.bf16.mxu0 %v6126_v33  ;;  %v6192_v33 = vld [vmem:[#allocation8 + $0x1c4] ss:$8 sps:$4 sm:$0xff]  }
 0x70b   :  { %5439 = vmatmul.mubr.msk.bf16.vlgmr.msra.gmra.mxu1 %vm230_vm1, %v6605_v63 }
 0x70c   :  { %5440 = vmatmul.mubr.msk.bf16.vlgmr.msra.gmra.mxu0 %vm230_vm1, %v6605_v63  ;;  %v6121_v63 = vld [vmem:[#allocation8 + $0x70] ss:$8 sps:$4 sm:$0xff]  }
 0x70d   :  { %4544 = vmatpush1.bf16.msra.mxu1 %v6121_v63  ;;  %4587 = vmatpush1.bf16.msra.mxu0 %v6124_v21  ;;  %v6187_v63 = vld [vmem:[#allocation8 + $0xc0] ss:$8 sps:$4 sm:$0xff]  }
 0x70e   :  { %4545 = vmatprep.subr.bf16.mxu1 %v6129_v42  ;;  %4588 = vmatprep.subr.bf16.mxu0 %v6132_v0  ;;  %v6190_v21 = vld [vmem:[#allocation8 + $0x1c0] ss:$8 sps:$4 sm:$0xff]   ;;  %v6195_v42 = vld [vmem:[#allocation8 + $0xb4] ss:$8 sps:$4 sm:$0xff]  }
 0x70f   :  { %v6198_v0 = vld [vmem:[#allocation8 + $0x1b4] ss:$8 sps:$4 sm:$0xff]  }
 0x711   :  { %4546 = vmatpush1.bf16.msra.mxu1 %v6127_v44  ;;  %4589 = vmatpush1.bf16.msra.mxu0 %v6130_v57  ;;  %v6193_v44 = vld [vmem:[#allocation8 + $0xb0] ss:$8 sps:$4 sm:$0xff]  }
 0x712   :  { %4547 = vmatprep.subr.bf16.mxu1 %v6135_v39  ;;  %4590 = vmatprep.subr.bf16.mxu0 %v6138_v37  ;;  %v6196_v57 = vld [vmem:[#allocation8 + $0x1b0] ss:$8 sps:$4 sm:$0xff]   ;;  %v6201_v39 = vld [vmem:[#allocation8 + $0xa4] ss:$8 sps:$4 sm:$0xff]  }
 0x713   :  { %v6204_v37 = vld [vmem:[#allocation8 + $0x1a4] ss:$8 sps:$4 sm:$0xff]  }
 0x715   :  { %4548 = vmatpush1.bf16.msra.mxu1 %v6133_v10  ;;  %4591 = vmatpush1.bf16.msra.mxu0 %v6136_v58  ;;  %v6199_v10 = vld [vmem:[#allocation8 + $0xa0] ss:$8 sps:$4 sm:$0xff]  }
 0x716   :  { %4549 = vmatprep.subr.bf16.mxu1 %v6141_v6  ;;  %4592 = vmatprep.subr.bf16.mxu0 %v6144_v52  ;;  %v6202_v58 = vld [vmem:[#allocation8 + $0x1a0] ss:$8 sps:$4 sm:$0xff]   ;;  %v6207_v6 = vld [vmem:[#allocation8 + $0x94] ss:$8 sps:$4 sm:$0xff]  }
 0x717   :  { %v6210_v52 = vld [vmem:[#allocation8 + $0x194] ss:$8 sps:$4 sm:$0xff]  }
 0x719   :  { %4550 = vmatpush1.bf16.msra.mxu1 %v6139_v11  ;;  %4593 = vmatpush1.bf16.msra.mxu0 %v6142_v38  ;;  %v6205_v11 = vld [vmem:[#allocation8 + $0x90] ss:$8 sps:$4 sm:$0xff]  }
 0x71a   :  { %4551 = vmatprep.subr.bf16.mxu1 %v6147_v62  ;;  %4594 = vmatprep.subr.bf16.mxu0 %v6150_v50  ;;  %v6208_v38 = vld [vmem:[#allocation8 + $0x190] ss:$8 sps:$4 sm:$0xff]   ;;  %v6213_v62 = vld [vmem:[#allocation8 + $0x84] ss:$8 sps:$4 sm:$0xff]  }
 0x71b   :  { %v6216_v50 = vld [vmem:[#allocation8 + $0x184] ss:$8 sps:$4 sm:$0xff]  }
 0x71d   :  { %4552 = vmatpush1.bf16.msra.mxu1 %v6145_v43  ;;  %4595 = vmatpush1.bf16.msra.mxu0 %v6148_v60  ;;  %v6211_v43 = vld [vmem:[#allocation8 + $0x80] ss:$8 sps:$4 sm:$0xff]  }
 0x71e   :  { %4553 = vmatprep.subr.bf16.mxu1 %v6153_v41  ;;  %4596 = vmatprep.subr.bf16.mxu0 %v6156_v51  ;;  %v6214_v60 = vld [vmem:[#allocation8 + $0x180] ss:$8 sps:$4 sm:$0xff]   ;;  %v7286_v41 = vmov 0.0  }
 0x721   :  { %4554 = vmatpush1.bf16.msra.mxu1 %v6151_v48  ;;  %4597 = vmatpush1.bf16.msra.mxu0 %v6154_v5 }
 0x722   :  { %4555 = vmatprep.subr.bf16.mxu1 %v6159_v26  ;;  %4598 = vmatprep.subr.bf16.mxu0 %v6162_v54 }
 0x725   :  { %4556 = vmatpush1.bf16.msra.mxu1 %v6157_v46  ;;  %4599 = vmatpush1.bf16.msra.mxu0 %v6160_v55 }
 0x726   :  { %4557 = vmatprep.subr.bf16.mxu1 %v6165_v61  ;;  %4600 = vmatprep.subr.bf16.mxu0 %v6168_v3 }
 0x729   :  { %4558 = vmatpush1.bf16.msra.mxu1 %v6163_v47  ;;  %4601 = vmatpush1.bf16.msra.mxu0 %v6166_v45 }
 0x72a   :  { %4559 = vmatprep.subr.bf16.mxu1 %v6171_v12  ;;  %4602 = vmatprep.subr.bf16.mxu0 %v6174_v17 }
 0x73b   :  { %v3469_v29 = vpop.f32.mrf.mxu1 }
 0x73c   :  { %v3510_v31 = vpop.f32.mrf.mxu0  ;;  %v3470_v27 = vadd.f32 %v3469_v29, %v3429_v25  ;;  %v6169_v29 = vld [vmem:[#allocation8 + $0xf0] ss:$8 sps:$4 sm:$0xff]  }
 0x73d   :  { %v3471_v28 = vpop.f32.mrf.mxu1  ;;  %4560 = vmatpush2.bf16.msra.mxu1 %v6169_v29 }
 0x73e   :  { %v3512_v8 = vpop.f32.mrf.mxu0  ;;  %v7090_v2 = vadd.f32 %v3510_v31, %v3470_v27  ;;  %v3472_v22 = vadd.f32 %v3471_v28, %v3431_v34  ;;  %v6172_v31 = vld [vmem:[#allocation8 + $0x1f0] ss:$8 sps:$4 sm:$0xff]   ;;  %v6177_v27 = vld [vmem:[#allocation8 + $0xe4] ss:$8 sps:$4 sm:$0xff]  }
 0x73f   :  { %v3473_v30 = vpop.f32.mrf.mxu1  ;;  %v6180_v28 = vld [vmem:[#allocation8 + $0x1e4] ss:$8 sps:$4 sm:$0xff]   ;;  %4603 = vmatpush2.bf16.msra.mxu0 %v6172_v31  ;;  %4561 = vmatprep.subr.bf16.mxu1 %v6177_v27 }
 0x740   :  { %v3514_v7 = vpop.f32.mrf.mxu0  ;;  %v7092_v16 = vadd.f32 %v3512_v8, %v3472_v22  ;;  %v6175_v8 = vld [vmem:[#allocation8 + $0xe0] ss:$8 sps:$4 sm:$0xff]   ;;  %4604 = vmatprep.subr.bf16.mxu0 %v6180_v28  ;;  %v6183_v30 = vld [vmem:[#allocation8 + $0xd4] ss:$8 sps:$4 sm:$0xff]  }
 0x741   :  { %v3474_v24 = vpop.f32.mrf.mxu1  ;;  %v6178_v22 = vld [vmem:[#allocation8 + $0x1e0] ss:$8 sps:$4 sm:$0xff]   ;;  %4562 = vmatpush2.bf16.msra.mxu1 %v6175_v8  ;;  %v6186_v7 = vld [vmem:[#allocation8 + $0x1d4] ss:$8 sps:$4 sm:$0xff]  }
 0x742   :  { %v3515_v14 = vpop.f32.mrf.mxu0  ;;  %v3685_v40 = vcombine.low %v7090_v2, %v7092_v16  ;;  %v6181_v24 = vld [vmem:[#allocation8 + $0xd0] ss:$8 sps:$4 sm:$0xff]   ;;  %4563 = vmatprep.subr.bf16.mxu1 %v6183_v30 }
 0x743   :  { %4605 = vmatpush2.bf16.msra.mxu0 %v6178_v22  ;;  %v6184_v14 = vld [vmem:[#allocation8 + $0x1d0] ss:$8 sps:$4 sm:$0xff]  }
 0x744   :  { %4606 = vmatprep.subr.bf16.mxu0 %v6186_v7  ;;  %v3693_v47 = vrot.slane %v3685_v40, %v6797_v35 }
 0x745   :  { %4564 = vmatpush2.bf16.msra.mxu1 %v6181_v24 }
 0x746   :  { %4565 = vmatprep.subr.bf16.mxu1 %v6189_v49 }
 0x747   :  { %4607 = vmatpush2.bf16.msra.mxu0 %v6184_v14 }
 0x748   :  { %4608 = vmatprep.subr.bf16.mxu0 %v6192_v33 }
 0x749   :  { %4566 = vmatpush2.bf16.msra.mxu1 %v6187_v63 }
 0x74a   :  { %4567 = vmatprep.subr.bf16.mxu1 %v6195_v42 }
 0x74b   :  { %4609 = vmatpush2.bf16.msra.mxu0 %v6190_v21 }
 0x74c   :  { %4610 = vmatprep.subr.bf16.mxu0 %v6198_v0 }
 0x74d   :  { %4568 = vmatpush2.bf16.msra.mxu1 %v6193_v44 }
 0x74e   :  { %4569 = vmatprep.subr.bf16.mxu1 %v6201_v39 }
 0x74f   :  { %4611 = vmatpush2.bf16.msra.mxu0 %v6196_v57 }
 0x750   :  { %4612 = vmatprep.subr.bf16.mxu0 %v6204_v37 }
 0x751   :  { %4570 = vmatpush2.bf16.msra.mxu1 %v6199_v10 }
 0x752   :  { %4571 = vmatprep.subr.bf16.mxu1 %v6207_v6 }
 0x753   :  { %4613 = vmatpush2.bf16.msra.mxu0 %v6202_v58 }
 0x754   :  { %4614 = vmatprep.subr.bf16.mxu0 %v6210_v52 }
 0x755   :  { %4572 = vmatpush2.bf16.msra.mxu1 %v6205_v11 }
 0x756   :  { %4573 = vmatprep.subr.bf16.mxu1 %v6213_v62 }
 0x757   :  { %4615 = vmatpush2.bf16.msra.mxu0 %v6208_v38 }
 0x758   :  { %4616 = vmatprep.subr.bf16.mxu0 %v6216_v50 }
 0x759   :  { %4574 = vmatpush2.bf16.msra.mxu1 %v6211_v43 }
 0x75b   :  { %4617 = vmatpush2.bf16.msra.mxu0 %v6214_v60 }
 0x75c   :  { %5641 = vmatprep.subr.bf16.mxu0 %v7286_v41 }
 0x77b   :  { %v3551_v4 = vpop.f32.mrf.mxu1 }
 0x77c   :  { %v3592_v25 = vpop.f32.mrf.mxu0 }
 0x77d   :  { %v7096_v36 = vadd.f32 %v3592_v25, %v3551_v4  ;;  %v3553_v32 = vpop.f32.mrf.mxu1 }
 0x77e   :  { %v3594_v34 = vpop.f32.mrf.mxu0 }
 0x77f   :  { %v7098_v59 = vadd.f32 %v3594_v34, %v3553_v32  ;;  %v3555_v15 = vpop.f32.mrf.mxu1 }
 0x780   :  { %v3596_v53 = vpop.f32.mrf.mxu0 }
 0x781   :  { %v3556_v18 = vpop.f32.mrf.mxu1 }
 0x782   :  { %v3597_v1 = vpop.f32.mrf.mxu0 }
 0x7bb   :  { %v3633_v51 = vpop.f32.mrf.mxu1 }
 0x7bc   :  { %v3674_v48 = vpop.f32.mrf.mxu0  ;;  %v3634_v5 = vadd.f32 %v3633_v51, %v7096_v36 }
 0x7bd   :  { %v3635_v4 = vpop.f32.mrf.mxu1 }
 0x7be   :  { %v3676_v25 = vpop.f32.mrf.mxu0  ;;  %v3636_v26 = vadd.f32 %v3635_v4, %v7098_v59  ;;  %v3675_v55 = vadd.f32 %v3674_v48, %v3634_v5 }
 0x7bf   :  { %v3637_v54 = vpop.f32.mrf.mxu1 }
 0x7c0   :  { %v3678_v46 = vpop.f32.mrf.mxu0  ;;  %v3677_v32 = vadd.f32 %v3676_v25, %v3636_v26 }
 0x7c1   :  { %v3638_v34 = vpop.f32.mrf.mxu1 }
 0x7c2   :  { %v3679_v15 = vpop.f32.mrf.mxu0  ;;  %v3686_v53 = vcombine.low %v3675_v55, %v3677_v32 }
 0x7c4   :  { %v3700_v61 = vrot.slane %v3686_v53, %v6797_v35 }
 0x7c6   :  { %v3701_v45 = vcombine.low %v3693_v47, %v3700_v61  ;;  %v3702_v36 = vcombine.high %v3693_v47, %v3700_v61 }
 0x7c8   :  { %v3709_v18 = vrot.slane %v3701_v45, %v6797_v35  ;;  %v3716_v59 = vrot.slane %v3702_v36, %v6797_v35 }
 0x7ca   :  { %v3720_v1 = vrot.slane %v3709_v18, %v6568_v56  ;;  %v3728_v3 = vrot.slane %v3709_v18, %v6816_v9  ;;  %v3724_v27 = vrot.slane %v3709_v18, %v6813_v13  ;;  %v3732_v16 = vrot.slane %v3709_v18, %v6819_v20 }
 0x7cb   :  { %v3887_v12 = vpop.f32.mrf.mxu1  ;;  %v3736_v28 = vrot.slane %v3716_v59, %v6568_v56  ;;  %v3744_v8 = vrot.slane %v3716_v59, %v6816_v9  ;;  %v3740_v33 = vrot.slane %v3716_v59, %v6813_v13  ;;  %v3748_v63 = vrot.slane %v3716_v59, %v6819_v20 }
 0x7cc   :  { %v3930_v17 = vpop.f32.mrf.mxu0  ;;  %v3939_v29 = vadd.f32 %v3887_v12, %v3720_v1 }
 0x7cd   :  { %v3941_v31 = vadd.f32 %v3930_v17, %v3728_v3  ;;  %v3889_v2 = vpop.f32.mrf.mxu1 }
 0x7ce   :  { %v3932_v40 = vpop.f32.mrf.mxu0  ;;  %v3940_v22 = vadd.f32 %v3889_v2, %v3724_v27  ;;  %v3951_v21 = vmul.f32 %v3939_v29, %v6552_v19 }
 0x7cf   :  { %v3942_v30 = vadd.f32 %v3932_v40, %v3732_v16  ;;  %v3891_v7 = vpop.f32.mrf.mxu1  ;;  %v3953_v42 = vmul.f32 %v3941_v31, %v6552_v19 }
 0x7d0   :  { %v3934_v24 = vpop.f32.mrf.mxu0  ;;  %v3943_v14 = vadd.f32 %v3891_v7, %v3736_v28  ;;  %v3952_v58 = vmul.f32 %v3940_v22, %v6552_v19 }
 0x7d1   :  { %v3945_v49 = vadd.f32 %v3934_v24, %v3744_v8  ;;  %v3893_v0 = vpop.f32.mrf.mxu1  ;;  %v3954_v6 = vmul.f32 %v3942_v30, %v6552_v19 }
 0x7d2   :  { %v3936_v44 = vpop.f32.mrf.mxu0  ;;  %v3955_v57 = vmul.f32 %v3943_v14, %v6555_v23  ;;  %v3944_v37 = vadd.f32 %v3893_v0, %v3740_v33 }
 0x7d3   :  { %v3957_v39 = vmul.f32 %v3945_v49, %v6555_v23  ;;  %v3946_v10 = vadd.f32 %v3936_v44, %v3748_v63 }
 0x7d4   :  { %v3959_v52 = vadd.f32 %v3955_v57, %v3951_v21  ;;  %v3956_v38 = vmul.f32 %v3944_v37, %v6555_v23 }
 0x7d5   :  { %v3973_v11 = vadd.f32 %v3957_v39, %v3953_v42  ;;  %v3958_v62 = vmul.f32 %v3946_v10, %v6555_v23 }
 0x7d6   :  { %v3960_v50 = vrot.slane %v3959_v52, 4  ;;  %v3966_v60 = vadd.f32 %v3956_v38, %v3952_v58 }
 0x7d7   :  { %v3974_v43 = vrot.slane %v3973_v11, 4  ;;  %v3980_v51 = vadd.f32 %v3958_v62, %v3954_v6 }
 0x7d8   :  { %v3961_v48 = vadd.f32 %v3960_v50, %v3959_v52  ;;  %v3967_v4 = vrot.slane %v3966_v60, 4 }
 0x7d9   :  { %v3975_v5 = vadd.f32 %v3974_v43, %v3973_v11  ;;  %v3981_v25 = vrot.slane %v3980_v51, 4 }
 0x7da   :  { %v3962_v26 = vrot.slane %v3961_v48, 2  ;;  %v3968_v46 = vadd.f32 %v3967_v4, %v3966_v60 }
 0x7db   :  { %v3976_v54 = vrot.slane %v3975_v5, 2  ;;  %v3982_v55 = vadd.f32 %v3981_v25, %v3980_v51 }
 0x7dc   :  { %v3963_v32 = vadd.f32 %v3962_v26, %v3961_v48  ;;  %v3969_v15 = vrot.slane %v3968_v46, 2 }
 0x7dd   :  { %v3977_v34 = vadd.f32 %v3976_v54, %v3975_v5  ;;  %v3983_v53 = vrot.slane %v3982_v55, 2 }
 0x7de   :  { %v3964_v47 = vrot.slane %v3963_v32, 1  ;;  %v3970_v45 = vadd.f32 %v3969_v15, %v3968_v46 }
 0x7df   :  { %v3978_v61 = vrot.slane %v3977_v34, 1  ;;  %v3984_v36 = vadd.f32 %v3983_v53, %v3982_v55 }
 0x7e0   :  { %v3965_v18 = vadd.f32 %v3964_v47, %v3963_v32  ;;  %v3971_v1 = vrot.slane %v3970_v45, 1 }
 0x7e1   :  { %v3979_v59 = vadd.f32 %v3978_v61, %v3977_v34  ;;  %v3985_v3 = vrot.slane %v3984_v36, 1 }
 0x7e2   :  { %v3987_v12 = vmul.f32 0.071428575, %v3965_v18  ;;  %v3972_v27 = vadd.f32 %v3971_v1, %v3970_v45 }
 0x7e3   :  { %v3989_v17 = vmul.f32 0.071428575, %v3979_v59  ;;  %v3986_v2 = vadd.f32 %v3985_v3, %v3984_v36 }
 0x7e4   :  { %v7126_v16 = vsub.f32 %v3939_v29, %v3987_v12  ;;  %v7128_v40 = vsub.f32 %v3943_v14, %v3987_v12  ;;  %v3988_v7 = vmul.f32 0.071428575, %v3972_v27 }
 0x7e5   :  { %v7130_v28 = vsub.f32 %v3941_v31, %v3989_v17  ;;  %v7132_v8 = vsub.f32 %v3945_v49, %v3989_v17  ;;  %v3990_v24 = vmul.f32 0.071428575, %v3986_v2 }
 0x7e6   :  { %v3999_v33 = vmul.f32 %v7126_v16, %v3951_v21  ;;  %v4003_v63 = vmul.f32 %v7128_v40, %v3955_v57  ;;  %v7138_v52 = vsub.f32 %v3940_v22, %v3988_v7  ;;  %v7140_v29 = vsub.f32 %v3944_v37, %v3988_v7 }
 0x7e7   :  { %v4001_v0 = vmul.f32 %v7130_v28, %v3953_v42  ;;  %v4005_v44 = vmul.f32 %v7132_v8, %v3957_v39  ;;  %v7142_v14 = vsub.f32 %v3942_v30, %v3990_v24  ;;  %v7144_v31 = vsub.f32 %v3946_v10, %v3990_v24 }
 0x7e8   :  { %v4007_v49 = vadd.f32 %v4003_v63, %v3999_v33  ;;  %v4000_v50 = vmul.f32 %v7138_v52, %v3952_v58  ;;  %v4004_v21 = vmul.f32 %v7140_v29, %v3956_v38 }
 0x7e9   :  { %v4021_v11 = vadd.f32 %v4005_v44, %v4001_v0  ;;  %v4002_v57 = vmul.f32 %v7142_v14, %v3954_v6  ;;  %v4006_v42 = vmul.f32 %v7144_v31, %v3958_v62 }
 0x7ea   :  { %v4008_v43 = vrot.slane %v4007_v49, 4  ;;  %v4014_v22 = vadd.f32 %v4004_v21, %v4000_v50 }
 0x7eb   :  { %v4022_v39 = vrot.slane %v4021_v11, 4  ;;  %v4028_v60 = vadd.f32 %v4006_v42, %v4002_v57  ;;  %v5441_v42 = vld [vmem:[%s7279_s12 + $0x18] ss:$2 sm:$0xf] }
 0x7ec   :  { %v4009_v37 = vadd.f32 %v4008_v43, %v4007_v49  ;;  %v4015_v30 = vrot.slane %v4014_v22, 4  ;;  %v5442_v43 = vld [vmem:[%s7279_s12 + $0x19] ss:$2 sm:$0xf] }
 0x7ed   :  { %v4023_v51 = vadd.f32 %v4022_v39, %v4021_v11  ;;  %v4029_v48 = vrot.slane %v4028_v60, 4 }
 0x7ee   :  { %v4010_v10 = vrot.slane %v4009_v37, 2  ;;  %v4016_v4 = vadd.f32 %v4015_v30, %v4014_v22 }
 0x7ef   :  { %v4024_v5 = vrot.slane %v4023_v51, 2  ;;  %v4030_v25 = vadd.f32 %v4029_v48, %v4028_v60  ;;  %v4126_v60 = vrot.slane %v5442_v43, %v6819_v20 }
 0x7f0   :  { %v4011_v26 = vadd.f32 %v4010_v10, %v4009_v37  ;;  %v4017_v54 = vrot.slane %v4016_v4, 2  ;;  %v4118_v37 = vrot.slane %v5442_v43, %v6813_v13 }
 0x7f1   :  { %v4025_v58 = vadd.f32 %v4024_v5, %v4023_v51  ;;  %v4031_v38 = vrot.slane %v4030_v25, 2  ;;  %v4114_v5 = vrot.slane %v5442_v43, %v6568_v56 }
 0x7f2   :  { %v4012_v46 = vrot.slane %v4011_v26, 1  ;;  %v4018_v55 = vadd.f32 %v4017_v54, %v4016_v4  ;;  %v4122_v4 = vrot.slane %v5442_v43, %v6816_v9  ;;  %v6228_v43 = vld [vmem:[%s7277_s10 + $0x10] sm:$0xff]  }
 0x7f3   :  { %v4026_v6 = vrot.slane %v4025_v58, 1  ;;  %v4032_v62 = vadd.f32 %v4031_v38, %v4030_v25 }
 0x7f4   :  { %v4013_v32 = vadd.f32 %v4012_v46, %v4011_v26  ;;  %v4019_v15 = vrot.slane %v4018_v55, 1 }
 0x7f5   :  { %v4027_v34 = vadd.f32 %v4026_v6, %v4025_v58  ;;  %v4033_v53 = vrot.slane %v4032_v62, 1 }
 0x7f6   :  { %v4035_v47 = vmul.f32 0.071428575, %v4013_v32  ;;  %v4020_v45 = vadd.f32 %v4019_v15, %v4018_v55 }
 0x7f7   :  { %v4037_v61 = vmul.f32 0.071428575, %v4027_v34  ;;  %v4034_v36 = vadd.f32 %v4033_v53, %v4032_v62 }
 0x7f8   :  { %v4039_v18 = vmax.f32 %v4035_v47, 0.0  ;;  %v4036_v1 = vmul.f32 0.071428575, %v4020_v45 }
 0x7f9   :  { %v4041_v59 = vmax.f32 %v4037_v61, 0.0  ;;  %v4038_v3 = vmul.f32 0.071428575, %v4034_v36 }
 0x7fa   :  { %v4043_v12 = vadd.f32 1e-05, %v4039_v18  ;;  %v4040_v27 = vmax.f32 %v4036_v1, 0.0 }
 0x7fb   :  { %v4045_v17 = vadd.f32 1e-05, %v4041_v59  ;;  %v4042_v2 = vmax.f32 %v4038_v3, 0.0 }
 0x7fc   :  { %6237 = vrsqrt.f32 %v4043_v12  ;;  %v4044_v7 = vadd.f32 1e-05, %v4040_v27 }
 0x7fd   :  { %v4046_v24 = vadd.f32 1e-05, %v4042_v2  ;;  %6239 = vrsqrt.f32 %v4045_v17 }
 0x7fe   :  { %6241 = vrsqrt.f32 %v4044_v7 }
 0x7ff   :  { %6243 = vrsqrt.f32 %v4046_v24  ;;  %v6217_v24 = vld [vmem:[%s7277_s10 + $0x78] sm:$0xff]  }
 0x800   :  { %5558 = vmatprep.subr.bf16.mxu1 %v6217_v24 }
 0x809   :  { %v6238_v33 = vpop.eup %6237 }
 0x80a   :  { %v6240_v63 = vpop.eup %6239 }
 0x80b   :  { %v6242_v0 = vpop.eup %6241 }
 0x80c   :  { %v6244_v44 = vpop.eup %6243  ;;  %v4055_v49 = vcombine.low %v6238_v33, %v6242_v0  ;;  %v6218_v33 = vld [vmem:[%s7277_s10 + $0x38] sm:$0xff]   ;;  %v6220_v0 = vld [vmem:[%s7277_s10 + $0x30] sm:$0xff]  }
 0x80d   :  { %v4056_v11 = vcombine.low %v6240_v63, %v6244_v44  ;;  %v6219_v63 = vld [vmem:[%s7277_s10 + $0x70] sm:$0xff]   ;;  %v6221_v44 = vld [vmem:[%s7277_s10 + $0x68] sm:$0xff]  }
 0x80e   :  { %v4063_v50 = vrot.slane %v4055_v49, %v6797_v35  ;;  %v6222_v49 = vld [vmem:[%s7277_s10 + $0x28] sm:$0xff]  }
 0x80f   :  { %v4070_v21 = vrot.slane %v4056_v11, %v6797_v35  ;;  %v6223_v11 = vld [vmem:[%s7277_s10 + $0x60] sm:$0xff]  }
 0x811   :  { %v4071_v57 = vcombine.low %v4063_v50, %v4070_v21  ;;  %v6224_v50 = vld [vmem:[%s7277_s10 + $0x20] sm:$0xff]   ;;  %v6225_v21 = vld [vmem:[%s7277_s10 + $0x58] sm:$0xff]  }
 0x813   :  { %v4078_v39 = vrot.slane %v4071_v57, %v6797_v35  ;;  %v6226_v57 = vld [vmem:[%s7277_s10 + $0x18] sm:$0xff]  }
 0x815   :  { %v4080_v22 = vmul.f32 %v5441_v42, %v4078_v39  ;;  %v6227_v42 = vld [vmem:[%s7277_s10 + $0x50] sm:$0xff]   ;;  %v6229_v39 = vld [vmem:[%s7277_s10 + $0x48] sm:$0xff]  }
 0x817   :  { %v4097_v51 = vrot.slane %v4080_v22, %v6819_v20  ;;  %v4089_v30 = vrot.slane %v4080_v22, %v6813_v13  ;;  %v4085_v48 = vrot.slane %v4080_v22, %v6568_v56  ;;  %v4093_v10 = vrot.slane %v4080_v22, %v6816_v9  ;;  %v6230_v22 = vld [vmem:[%s7277_s10 + $0x8] sm:$0xff]  }
 0x819   :  { %v4105_v25 = vmul.f32 %v4097_v51, %v7142_v14  ;;  %v4109_v26 = vmul.f32 %v4097_v51, %v7144_v31  ;;  %v4103_v58 = vmul.f32 %v4089_v30, %v7138_v52  ;;  %v4107_v54 = vmul.f32 %v4089_v30, %v7140_v29 }
 0x81a   :  { %v4102_v20 = vmul.f32 %v4085_v48, %v7126_v16  ;;  %v4106_v38 = vmul.f32 %v4085_v48, %v7128_v40  ;;  %v4104_v46 = vmul.f32 %v4093_v10, %v7130_v28  ;;  %v4108_v6 = vmul.f32 %v4093_v10, %v7132_v8 }
 0x81b   :  { %v4138_v55 = vadd.f32 %v4126_v60, %v4109_v26  ;;  %v4132_v62 = vadd.f32 %v4118_v37, %v4103_v58  ;;  %v4136_v32 = vadd.f32 %v4118_v37, %v4107_v54  ;;  %v4134_v9 = vadd.f32 %v4126_v60, %v4105_v25  ;;  %v6231_v60 = vld [vmem:[%s7277_s10 + $0x40] sm:$0xff]  }
 0x81c   :  { %v4131_v34 = vadd.f32 %v4114_v5, %v4102_v20  ;;  %v4135_v14 = vadd.f32 %v4114_v5, %v4106_v38  ;;  %v4133_v15 = vadd.f32 %v4122_v4, %v4104_v46  ;;  %v4137_v31 = vadd.f32 %v4122_v4, %v4108_v6  ;;  %v6232_v37 = vld [vmem:[%s7277_s10] sm:$0xff]  }
 0x81d   :  { %v4140_v53 = vmul.f32 0.01, %v4132_v62  ;;  %v4144_v52 = vmul.f32 0.01, %v4136_v32  ;;  %v4142_v47 = vmul.f32 0.01, %v4134_v9 }
 0x81e   :  { %v4146_v29 = vmul.f32 0.01, %v4138_v55  ;;  %v4139_v61 = vmul.f32 0.01, %v4131_v34  ;;  %v4143_v16 = vmul.f32 0.01, %v4135_v14 }
 0x81f   :  { %v4148_v45 = vmax.f32 %v4132_v62, %v4140_v53  ;;  %v4152_v40 = vmax.f32 %v4136_v32, %v4144_v52  ;;  %v4150_v36 = vmax.f32 %v4134_v9, %v4142_v47  ;;  %v4141_v28 = vmul.f32 0.01, %v4133_v15 }
 0x820   :  { %v4154_v18 = vmax.f32 %v4138_v55, %v4146_v29  ;;  %v4147_v8 = vmax.f32 %v4131_v34, %v4139_v61  ;;  %v4151_v59 = vmax.f32 %v4135_v14, %v4143_v16  ;;  %v4145_v1 = vmul.f32 0.01, %v4137_v31 }
 0x821   :  { %v4220_v3 = vpack.c.bf16 %v4152_v40, %v4148_v45  ;;  %v4149_v12 = vmax.f32 %v4133_v15, %v4141_v28 }
 0x822   :  { %v4222_v17 = vpack.c.bf16 %v4154_v18, %v4150_v36  ;;  %v4219_v27 = vpack.c.bf16 %v4151_v59, %v4147_v8  ;;  %v4153_v2 = vmax.f32 %v4137_v31, %v4145_v1 }
 0x823   :  { %4575 = vmatprep.mubr.bf16.mxu1 %v4220_v3 }
 0x824   :  { %4618 = vmatprep.mubr.bf16.mxu0 %v4222_v17  ;;  %4576 = vmatmul.mubr.bf16.vlgmr.msra.gmra.mxu1 %v4219_v27  ;;  %v4221_v7 = vpack.c.bf16 %v4153_v2, %v4149_v12 }
 0x825   :  { %5559 = vmatpush3.bf16.msra.mxu1 %v6218_v33 }
 0x826   :  { %4619 = vmatmul.mubr.bf16.vlgmr.msra.gmra.mxu0 %v4221_v7  ;;  %5560 = vmatprep.subr.bf16.mxu1 %v6219_v63 }
 0x827   :  { %5649 = vmatprep.mubr.msk.bf16.mxu0 %vm6389_vm0, %v7286_v41 }
 0x829   :  { %5561 = vmatpush3.bf16.msra.mxu1 %v6220_v0 }
 0x82a   :  { %5562 = vmatprep.subr.bf16.mxu1 %v6221_v44 }
 0x82d   :  { %5563 = vmatpush3.bf16.msra.mxu1 %v6222_v49 }
 0x82e   :  { %5564 = vmatprep.subr.bf16.mxu1 %v6223_v11 }
 0x831   :  { %5565 = vmatpush3.bf16.msra.mxu1 %v6224_v50 }
 0x832   :  { %5566 = vmatprep.subr.bf16.mxu1 %v6225_v21 }
 0x835   :  { %5567 = vmatpush3.bf16.msra.mxu1 %v6226_v57 }
 0x836   :  { %5568 = vmatprep.subr.bf16.mxu1 %v6227_v42 }
 0x839   :  { %5569 = vmatpush3.bf16.msra.mxu1 %v6228_v43 }
 0x83a   :  { %5570 = vmatprep.subr.bf16.mxu1 %v6229_v39 }
 0x83d   :  { %5571 = vmatpush3.bf16.msra.mxu1 %v6230_v22 }
 0x83e   :  { %5572 = vmatprep.subr.bf16.mxu1 %v6231_v60 }
 0x841   :  { %5573 = vmatpush3.bf16.msra.mxu1 %v6232_v37 }
 0x8e4   :  { %v4577_v51 = vpop.f32.mrf.mxu1 }
 0x8e6   :  { %v4620_v30 = vpop.f32.mrf.mxu0  ;;  %v4579_v48 = vpop.f32.mrf.mxu1 }
 0x8e7   :  { %v4621_v4 = vadd.f32 %v4620_v30, %v4577_v51 }
 0x8e8   :  { %v4622_v10 = vpop.f32.mrf.mxu0  ;;  %v4581_v5 = vpop.f32.mrf.mxu1 }
 0x8e9   :  { %v4623_v58 = vadd.f32 %v4622_v10, %v4579_v48  ;;  %v4633_v38 = vmul.f32 %v4621_v4, %v6552_v19 }
 0x8ea   :  { %v4624_v25 = vpop.f32.mrf.mxu0  ;;  %v4583_v26 = vpop.f32.mrf.mxu1 }
 0x8eb   :  { %v4625_v54 = vadd.f32 %v4624_v25, %v4581_v5  ;;  %v4634_v55 = vmul.f32 %v4623_v58, %v6552_v19  ;;  %v5507_v25 = vld [vmem:[%s7279_s12 + $0x20] ss:$2 sm:$0x3] }
 0x8ec   :  { %v4626_v20 = vpop.f32.mrf.mxu0 }
 0x8ed   :  { %v4635_v46 = vmul.f32 %v4625_v54, %v6555_v23  ;;  %v4627_v6 = vadd.f32 %v4626_v20, %v4583_v26 }
 0x8ef   :  { %v4637_v62 = vadd.f32 %v4635_v46, %v4633_v38  ;;  %v4636_v32 = vmul.f32 %v4627_v6, %v6555_v23 }
 0x8f1   :  { %v4638_v9 = vrot.slane %v4637_v62, 4  ;;  %v4644_v34 = vadd.f32 %v4636_v32, %v4634_v55 }
 0x8f3   :  { %v4639_v14 = vadd.f32 %v4638_v9, %v4637_v62  ;;  %v4645_v15 = vrot.slane %v4644_v34, 4 }
 0x8f5   :  { %v4640_v31 = vrot.slane %v4639_v14, 2  ;;  %v4646_v53 = vadd.f32 %v4645_v15, %v4644_v34 }
 0x8f7   :  { %v4641_v52 = vadd.f32 %v4640_v31, %v4639_v14  ;;  %v4647_v47 = vrot.slane %v4646_v53, 2 }
 0x8f9   :  { %v4642_v29 = vrot.slane %v4641_v52, 1  ;;  %v4648_v61 = vadd.f32 %v4647_v47, %v4646_v53 }
 0x8fb   :  { %v4643_v16 = vadd.f32 %v4642_v29, %v4641_v52  ;;  %v4649_v45 = vrot.slane %v4648_v61, 1 }
 0x8fd   :  { %v4651_v40 = vmul.f32 0.071428575, %v4643_v16  ;;  %v4650_v36 = vadd.f32 %v4649_v45, %v4648_v61 }
 0x8ff   :  { %v4653_v28 = vsub.f32 %v4621_v4, %v4651_v40  ;;  %v4655_v18 = vsub.f32 %v4625_v54, %v4651_v40  ;;  %v4652_v8 = vmul.f32 0.071428575, %v4650_v36 }
 0x901   :  { %v4657_v59 = vmul.f32 %v4653_v28, %v4633_v38  ;;  %v4659_v1 = vmul.f32 %v4655_v18, %v4635_v46  ;;  %v4654_v3 = vsub.f32 %v4623_v58, %v4652_v8  ;;  %v4656_v12 = vsub.f32 %v4627_v6, %v4652_v8  ;;  %v5508_v58 = vld [vmem:[%s7279_s12 + $0x21] ss:$2 sm:$0x3] }
 0x902   :  { %v4721_v46 = vrot.slane %v5508_v58, %v6568_v56  ;;  %v4725_v6 = vrot.slane %v5508_v58, %v6813_v13  ;;  %v6236_v8 = vld [vmem:[#allocation10] sm:$0xff]  }
 0x903   :  { %v4661_v17 = vadd.f32 %v4659_v1, %v4657_v59  ;;  %v4658_v27 = vmul.f32 %v4654_v3, %v4634_v55  ;;  %v4660_v2 = vmul.f32 %v4656_v12, %v4636_v32 }
 0x905   :  { %v4662_v7 = vrot.slane %v4661_v17, 4  ;;  %v4668_v24 = vadd.f32 %v4660_v2, %v4658_v27 }
 0x907   :  { %v4663_v33 = vadd.f32 %v4662_v7, %v4661_v17  ;;  %v4669_v63 = vrot.slane %v4668_v24, 4 }
 0x909   :  { %v4664_v0 = vrot.slane %v4663_v33, 2  ;;  %v4670_v44 = vadd.f32 %v4669_v63, %v4668_v24 }
 0x90b   :  { %v4665_v49 = vadd.f32 %v4664_v0, %v4663_v33  ;;  %v4671_v11 = vrot.slane %v4670_v44, 2 }
 0x90d   :  { %v4666_v50 = vrot.slane %v4665_v49, 1  ;;  %v4672_v21 = vadd.f32 %v4671_v11, %v4670_v44 }
 0x90f   :  { %v4667_v57 = vadd.f32 %v4666_v50, %v4665_v49  ;;  %v4673_v42 = vrot.slane %v4672_v21, 1 }
 0x911   :  { %v4675_v43 = vmul.f32 0.071428575, %v4667_v57  ;;  %v4674_v39 = vadd.f32 %v4673_v42, %v4672_v21 }
 0x913   :  { %v4677_v22 = vmax.f32 %v4675_v43, 0.0  ;;  %v4676_v60 = vmul.f32 0.071428575, %v4674_v39 }
 0x915   :  { %v4679_v37 = vadd.f32 1e-05, %v4677_v22  ;;  %v4678_v51 = vmax.f32 %v4676_v60, 0.0 }
 0x917   :  { %v4680_v30 = vadd.f32 1e-05, %v4678_v51  ;;  %6245 = vrsqrt.f32 %v4679_v37 }
 0x919   :  { %6247 = vrsqrt.f32 %v4680_v30 }
 0x924   :  { %v6246_v48 = vpop.eup %6245 }
 0x926   :  { %v6248_v10 = vpop.eup %6247 }
 0x927   :  { %v4685_v5 = vcombine.low %v6246_v48, %v6248_v10 }
 0x929   :  { %v4692_v4 = vrot.slane %v4685_v5, %v6797_v35 }
 0x92b   :  { %v4699_v26 = vrot.slane %v4692_v4, %v6797_v35 }
 0x92d   :  { %v4701_v54 = vmul.f32 %v5507_v25, %v4699_v26  ;;  %v4911_v26 = vld [vmem:[%s7279_s12 + $0x24] sm:$0x1] }
 0x92f   :  { %v4706_v20 = vrot.slane %v4701_v54, %v6568_v56  ;;  %v4710_v38 = vrot.slane %v4701_v54, %v6813_v13  ;;  %v6233_v13 = vld [vmem:[#allocation10 + $0x18] sm:$0xff]  }
 0x930   :  { %5642 = vmatpush3.bf16.msra.mxu0 %v6233_v13 }
 0x931   :  { %v4713_v55 = vmul.f32 %v4706_v20, %v4653_v28  ;;  %v4714_v62 = vmul.f32 %v4710_v38, %v4654_v3  ;;  %v4715_v32 = vmul.f32 %v4706_v20, %v4655_v18  ;;  %v4716_v9 = vmul.f32 %v4710_v38, %v4656_v12  ;;  %5643 = vmatprep.subr.bf16.mxu0 %v7286_v41  ;;  %v6234_v28 = vld [vmem:[#allocation10 + $0x10] sm:$0xff]   ;;  %v6235_v18 = vld [vmem:[#allocation10 + $0x8] sm:$0xff]   ;;  %v5525_v38 = vld [vmem:[%s7279_s12 + $0x25] ss:$0 sm:$0xff] }
 0x933   :  { %v4731_v34 = vadd.f32 %v4725_v6, %v4716_v9  ;;  %v4729_v14 = vadd.f32 %v4725_v6, %v4714_v62  ;;  %v4728_v35 = vadd.f32 %v4721_v46, %v4713_v55  ;;  %v4730_v15 = vadd.f32 %v4721_v46, %v4715_v32 }
 0x934   :  { %5644 = vmatpush3.bf16.msra.mxu0 %v6234_v28 }
 0x935   :  { %v4733_v31 = vmul.f32 0.01, %v4729_v14  ;;  %v4735_v53 = vmul.f32 0.01, %v4731_v34  ;;  %v4732_v52 = vmul.f32 0.01, %v4728_v35  ;;  %5645 = vmatprep.subr.bf16.mxu0 %v7286_v41 }
 0x936   :  { %v4734_v47 = vmul.f32 0.01, %v4730_v15 }
 0x937   :  { %v4737_v29 = vmax.f32 %v4729_v14, %v4733_v31  ;;  %v4739_v61 = vmax.f32 %v4731_v34, %v4735_v53  ;;  %v4736_v16 = vmax.f32 %v4728_v35, %v4732_v52 }
 0x938   :  { %v4738_v45 = vmax.f32 %v4730_v15, %v4734_v47  ;;  %5646 = vmatpush3.bf16.msra.mxu0 %v6235_v18  ;;  %v5526_v15 = vld [vmem:[%s7279_s12 + $0x26] ss:$0 sm:$0xff] }
 0x939   :  { %v4773_v40 = vpack.c.bf16 %v4739_v61, %v4737_v29  ;;  %5647 = vmatprep.subr.bf16.mxu0 %v7286_v41 }
 0x93a   :  { %v4772_v36 = vpack.c.bf16 %v4738_v45, %v4736_v16 }
 0x93b   :  { %4902 = vmatprep.mubr.bf16.mxu1 %v4773_v40 }
 0x93c   :  { %4903 = vmatmul.mubr.bf16.vlgmr.msra.gmra.mxu1 %v4772_v36  ;;  %5648 = vmatpush3.bf16.msra.mxu0 %v6236_v8 }
 0x9fc   :  { %v5574_v59 = vpop.f32.mrf.mxu1 }
 0x9fe   :  { %v5575_v1 = vpop.f32.mrf.mxu1 }
 0x9ff   :  { %v5576_v3 = vadd.f32 %v5575_v1, %v5574_v59 }
 0xa00   :  { %v5577_v12 = vpop.f32.mrf.mxu1 }
 0xa01   :  { %v4913_v27 = vmul.f32 %v5576_v3, %v6552_v19 }
 0xa02   :  { %v5578_v17 = vpop.f32.mrf.mxu1 }
 0xa03   :  { %v5579_v2 = vadd.f32 %v5578_v17, %v5577_v12  ;;  %v4915_v24 = vsel %vm230_vm1, %v4913_v27, 0.0 }
 0xa05   :  { %v4914_v7 = vmul.f32 %v5579_v2, %v6555_v23 }
 0xa07   :  { %v4916_v33 = vsel %vm230_vm1, %v4914_v7, 0.0 }
 0xa08   :  { %v4917_v63 = vadd.f32 %v4916_v33, %v4915_v24 }
 0xa0a   :  { %v4918_v0 = vrot.slane %v4917_v63, 4 }
 0xa0c   :  { %v4919_v44 = vadd.f32 %v4918_v0, %v4917_v63 }
 0xa0e   :  { %v4920_v41 = vrot.slane %v4919_v44, 2 }
 0xa10   :  { %v4921_v49 = vadd.f32 %v4920_v41, %v4919_v44 }
 0xa12   :  { %v4922_v11 = vrot.slane %v4921_v49, 1 }
 0xa14   :  { %v4923_v50 = vadd.f32 %v4922_v11, %v4921_v49 }
 0xa16   :  { %v4924_v21 = vmul.f32 0.071428575, %v4923_v50 }
 0xa18   :  { %v4925_v57 = vsub.f32 %v5576_v3, %v4924_v21  ;;  %v4926_v42 = vsub.f32 %v5579_v2, %v4924_v21 }
 0xa1a   :  { %v4927_v43 = vmul.f32 %v4925_v57, %v4913_v27  ;;  %v4928_v39 = vmul.f32 %v4926_v42, %v4914_v7 }
 0xa1c   :  { %v4929_v19 = vsel %vm230_vm1, %v4927_v43, 0.0  ;;  %v4930_v23 = vsel %vm230_vm1, %v4928_v39, 0.0 }
 0xa1d   :  { %v4931_v22 = vadd.f32 %v4930_v23, %v4929_v19 }
 0xa1f   :  { %v4932_v60 = vrot.slane %v4931_v22, 4 }
 0xa21   :  { %v4933_v37 = vadd.f32 %v4932_v60, %v4931_v22 }
 0xa23   :  { %v4934_v51 = vrot.slane %v4933_v37, 2 }
 0xa25   :  { %v4935_v30 = vadd.f32 %v4934_v51, %v4933_v37 }
 0xa27   :  { %v4936_v48 = vrot.slane %v4935_v30, 1 }
 0xa29   :  { %v4937_v10 = vadd.f32 %v4936_v48, %v4935_v30 }
 0xa2b   :  { %v4938_v5 = vmul.f32 0.071428575, %v4937_v10 }
 0xa2d   :  { %v4939_v4 = vmax.f32 %v4938_v5, 0.0 }
 0xa2f   :  { %v4940_v25 = vadd.f32 1e-05, %v4939_v4 }
 0xa31   :  { %6249 = vrsqrt.f32 %v4940_v25 }
 0xa3e   :  { %v6250_v58 = vpop.eup %6249 }
 0xa3f   :  { %v4942_v54 = vmul.f32 %v6250_v58, %v4911_v26 }
 0xa41   :  { %v4946_v20 = vrot.slane %v4942_v54, %v6568_v56 }
 0xa43   :  { %v4947_v46 = vmul.f32 %v4946_v20, %v4925_v57  ;;  %v4948_v6 = vmul.f32 %v4946_v20, %v4926_v42 }
 0xa45   :  { %v4953_v55 = vadd.f32 %v5525_v38, %v4947_v46  ;;  %v4954_v62 = vadd.f32 %v5525_v38, %v4948_v6 }
 0xa47   :  { %v4955_v32 = vmul.f32 0.01, %v4953_v55  ;;  %v4956_v9 = vmul.f32 0.01, %v4954_v62 }
 0xa49   :  { %v4958_v34 = vmax.f32 %v4954_v62, %v4956_v9  ;;  %v4957_v14 = vmax.f32 %v4953_v55, %v4955_v32 }
 0xa4b   :  { %v4967_v35 = vpack.c.bf16 %v4958_v34, %v4957_v14 }
 0xa4d   :  { %5650 = vmatmul.mubr.msk.bf16.vlgmr.msra.gmra.mxu0 %vm230_vm1, %v4967_v35 }
 0xb0d   :  { %v5034_v56 = vpop.f32.mrf.mxu0 }
 0xb0e   :  { %v5035_v31 = vadd.f32 %v5526_v15, %v5034_v56 }
 0xb0f   :  { %v5651_v53 = vpop.f32.mrf.mxu0 }
 0xb10   :  { %5041 = vst [vmem:[#allocation11] sm:$0xff] %v5035_v31 }
 0xb11   :  { %v5037_v52 = vpop.f32.mrf.mxu0 }
 0xb12   :  { %v5038_v47 = vadd.f32 %v5526_v15, %v5037_v52 }
 0xb13   :  { %v5652_v29 = vpop.f32.mrf.mxu0 }
 0xb14   :  { %5042 = vst [vmem:[#allocation11 + $0x8] sm:$0xff] %v5038_v47 }
 0xb15   :  { %6362 = shalt.err (!%p6359_p1)
}
 0xb16   :  { %5054 = dma.vmem_to_hbm [thread:$0]  %s5049_s30, 256, %s7280_s13, [#allocation7], %s6382_s28, %s6382_s28, %s6383_s29  }
 0xb17   :  { %6379 = dma.done.wait [#allocation7], 256  }
 0xb18   :  { %6380 = vsyncadd [#allocation7], 4294967040 }
 0xb19   :  { %5058 = vsyncpa [#allocation6], 1 }
 0xb1a   :  { %5059 = vsyncpa [#allocation9], 1 }
 0xb1b   :  { %5060 = vsyncpa [#allocation7], 1 }
 0xb1c   :  { %5061 = vsyncmov [#allocation4] }
 0xb1f   :  { %s5062_s15 = vpop.sfrf %5061 }
 0xb20   :  { %p5532_p2 = scmp.ne.s32.totalorder %s5062_s15, 0 }
 0xb22   :  { %5066 = shalt.err (%p5532_p2)  }
 0xb23   :  { %5068 = vsyncmov [#allocation4 + $0x1] }
 0xb26   :  { %s5069_s16 = vpop.sfrf %5068 }
 0xb27   :  { %p5533_p3 = scmp.ne.s32.totalorder %s5069_s16, 0 }
 0xb29   :  { %5073 = shalt.err (%p5533_p3)  }

</bundles_post_ra>
